<compile_context>
chip_gen: v6e
topology: v6e:2x2x1
jax: 0.10.0
libtpu: 0.0.40
codegen_flags: <defaults>
</compile_context>

<pallas_src>
from functools import partial

import numpy as np
import jax
import jax.numpy as jnp
from jax import lax
from jax.experimental import pallas as pl
from jax.experimental.pallas import tpu as pltpu

TP_MAX = 128          # max image pairs per grid step (2*TP images flow through the convs)
NB_HIDDEN_PAD = 128   # fc1 hidden units padded to a full lane register


def _round_up(v, m):
    return ((v + m - 1) // m) * m


# ----------------------------------------------------------------------------
# The single fused Pallas kernel:
#   conv1 (banded matmuls + running-max pool) + bias + relu
#   -> conv2 (K=192 packed tap matmuls) + pool + bias + relu
#   -> fc1 (single K=1024 dot over the concatenated [a|b] features) + relu -> fc2
# One batch tile of `tp` pairs per grid step; images are branch-major (a's then b's).
# ----------------------------------------------------------------------------
def fused_kernel(xu_ref, w1b_ref, b1t_ref, w2k_ref, b2_ref,
                 wf1_ref, bf1_ref, wf2_ref, bf2_ref, o_ref):
    tp = o_ref.shape[0]          # pairs in this tile
    n2 = 2 * tp                  # images in this tile

    # ---- conv1 + 2x2/stride-2 max-pool via 4 banded-Toeplitz dots + running max.
    # xu_ref[dy]: rows (oy, s, n), lanes = ky*16 + col  (row-unfolded, col padded 14->16).
    # w1b_ref[dx]: banded weight, cols = ox*64 + c.  Bias commutes with max (per-channel).
    y1p = None
    for dy in range(2):
        lhs = xu_ref[dy].reshape(6 * n2, 48)                           # bf16 [6*n2, 48]
        for dx in range(2):
            c = jnp.dot(lhs, w1b_ref[dx], preferred_element_type=jnp.float32)
            y1p = c if y1p is None else jnp.maximum(y1p, c)            # [6*n2, 384] f32
    y1 = jnp.maximum(y1p + b1t_ref[...], 0.0).astype(jnp.bfloat16)     # rows (oy,img), lanes (ox,c)

    # ---- conv2: per output column j2, accumulate 3 K=192 dots (kx,c1 packed per ky).
    acc = [None] * 4
    for j2 in range(4):
        for ky in range(3):
            tap = y1[ky * n2:(ky + 4) * n2, j2 * 64:j2 * 64 + 192]     # [4*n2, 192] bf16
            d = jnp.dot(tap, w2k_ref[ky], preferred_element_type=jnp.float32)
            acc[j2] = d if acc[j2] is None else acc[j2] + d            # [4*n2, 128] f32

    # ---- 2x2/stride-2 max-pool over (i2, j2), then bias + ReLU (bias commutes with max).
    def blk(j2, i2):
        return acc[j2][i2 * n2:(i2 + 1) * n2]                          # [n2, 128]

    y2 = []                                                            # index h*2 + w
    for h in range(2):
        for w in range(2):
            m = jnp.maximum(jnp.maximum(blk(2 * w, 2 * h), blk(2 * w, 2 * h + 1)),
                            jnp.maximum(blk(2 * w + 1, 2 * h), blk(2 * w + 1, 2 * h + 1)))
            y2.append(jnp.maximum(m + b2_ref[...], 0.0).astype(jnp.bfloat16))

    # ---- fc1 over the concatenated [a | b] 1024-feature vector (single K=1024 dot).
    # wf1_ref row index = ((s*2 + h)*2 + w)*128 + c2  (absorbs NCHW flatten + branch concat).
    feats = [y2[h * 2 + w][s * tp:(s + 1) * tp]
             for s in range(2) for h in range(2) for w in range(2)]    # 8 x [tp, 128] bf16
    feat = jnp.concatenate(feats, axis=1)                              # [tp, 1024] bf16
    hidden = jnp.dot(feat, wf1_ref[...], preferred_element_type=jnp.float32) + bf1_ref[...]
    hidden = jnp.maximum(hidden, 0.0).astype(jnp.bfloat16)             # [tp, 128]

    # ---- fc2 (output padded to 128 lanes for an unmasked store)
    o_ref[...] = jnp.dot(hidden, wf2_ref[...],
                         preferred_element_type=jnp.float32) + bf2_ref[...]


# ----------------------------------------------------------------------------
# Wrapper: light XLA prep (3x row-unfold of the raw images, ~2.3 KiB/pair) + pallas_call.
# ----------------------------------------------------------------------------
@partial(jax.jit, static_argnames=("tp_max",))
def ws_model1_forward(x, params, tp_max=TP_MAX):
    """x: [B, 2, 14, 14] float32 -> [B, 2] float32."""
    b = x.shape[0]
    tp = max(16, min(tp_max, _round_up((b + 1) // 2, 16)))   # >=2 tiles for small B (megacore)
    bp = _round_up(b, tp)

    # Row-unfolded, parity-split input: xu[dy, oy, s, n, ky*16 + col] = x[n, s, 2*oy+dy+ky, col]
    xb = x.astype(jnp.bfloat16)
    xb = jnp.pad(xb, ((0, bp - b), (0, 0), (0, 0), (0, 2)))                 # [bp,2,14,16]
    taps = jnp.stack([xb[:, :, ky:ky + 12, :] for ky in range(3)], axis=3)  # [bp,2,12,3,16]
    xu = taps.reshape(bp, 2, 6, 2, 48).transpose(3, 2, 1, 0, 4)             # [2,6,2,bp,48]

    def const_spec(*shape):  # whole-array block, constant index map -> VMEM-resident weight
        return pl.BlockSpec(shape, lambda t: (0,) * len(shape))

    out = pl.pallas_call(
        fused_kernel,
        out_shape=jax.ShapeDtypeStruct((bp, 128), jnp.float32),
        grid=(bp // tp,),
        in_specs=[
            pl.BlockSpec((2, 6, 2, tp, 48), lambda t: (0, 0, 0, t, 0)),  # images (tiled)
            const_spec(2, 48, 384), const_spec(1, 384),                  # conv1 banded W / bias
            const_spec(3, 192, 128), const_spec(1, 128),                 # conv2 packed taps / bias
            const_spec(1024, 128), const_spec(1, 128),                   # fc1 weight / bias
            const_spec(128, 128), const_spec(1, 128),                    # fc2 weight / bias
        ],
        out_specs=pl.BlockSpec((tp, 128), lambda t: (t, 0)),
        compiler_params=pltpu.CompilerParams(
            dimension_semantics=("parallel",),
            vmem_limit_bytes=48 * 1024 * 1024,
        ),
    )(xu, params["w1b"], params["b1t"], params["w2k"], params["b2r"],
      params["wf1c"], params["bf1p"], params["wf2p"], params["bf2p"])
    return out[:b, :2]


# ----------------------------------------------------------------------------
# Pure-JAX reference (mirrors the PyTorch NCHW ops exactly).  With mirror_bf16=True every
# matmul/conv input is rounded to bf16 (keeping f32 accumulation), mirroring the kernel.
# ----------------------------------------------------------------------------
def ref_forward(x, raw, mirror_bf16=True):
    def cast(v):
        return v.astype(jnp.bfloat16).astype(jnp.float32) if mirror_bf16 else v

    dn = ("NCHW", "OIHW", "NCHW")

    def conv_pool_relu(t, w, b):
        y = lax.conv_general_dilated(cast(t), cast(w), (1, 1), "VALID",
                                     dimension_numbers=dn,
                                     precision=lax.Precision.HIGHEST)
        y = y + b[None, :, None, None]
        y = lax.reduce_window(y, -jnp.inf, lax.max, (1, 1, 2, 2), (1, 1, 2, 2), "VALID")
        return jnp.maximum(y, 0.0)

    def branch(t):
        y = conv_pool_relu(t, raw["w1"], raw["b1"])
        y = conv_pool_relu(y, raw["w2"], raw["b2"])
        return y.reshape(y.shape[0], -1)                         # [B, 512] (C,H,W) order

    a = branch(x[:, 0:1])
    b = branch(x[:, 1:2])
    feat = jnp.concatenate([a, b], axis=1)                       # [B, 1024]
    h = jnp.dot(cast(feat), cast(raw["wf1"]).T,
                precision=lax.Precision.HIGHEST) + raw["bf1"]
    h = jnp.maximum(h, 0.0)
    return jnp.dot(cast(h), cast(raw["wf2"]).T,
                   precision=lax.Precision.HIGHEST) + raw["bf2"]


# ----------------------------------------------------------------------------
# Parameter construction: PyTorch-layout raws + kernel-layout (bf16, padded, K-packed,
# permutation-absorbed) params.
# ----------------------------------------------------------------------------
def make_params(key, nb_hidden=100):
    assert nb_hidden <= NB_HIDDEN_PAD
    ks = jax.random.split(key, 8)
    raw = {
        "w1": jax.random.normal(ks[0], (64, 1, 3, 3), jnp.float32) * 0.1,
        "b1": jax.random.normal(ks[1], (64,), jnp.float32) * 0.1,
        "w2": jax.random.normal(ks[2], (128, 64, 3, 3), jnp.float32) * 0.05,
        "b2": jax.random.normal(ks[3], (128,), jnp.float32) * 0.1,
        "wf1": jax.random.normal(ks[4], (nb_hidden, 1024), jnp.float32) * 0.05,
        "bf1": jax.random.normal(ks[5], (nb_hidden,), jnp.float32) * 0.1,
        "wf2": jax.random.normal(ks[6], (2, nb_hidden), jnp.float32) * 0.1,
        "bf2": jax.random.normal(ks[7], (2,), jnp.float32) * 0.1,
    }
    # conv1 banded-Toeplitz weights, one per horizontal pool offset dx:
    #   w1b[dx, ky*16 + (2*ox + dx + kx), ox*64 + c] = w1[c, 0, ky, kx]
    w1_np = np.asarray(raw["w1"])
    w1b = np.zeros((2, 48, 384), np.float32)
    for dx in range(2):
        for ky in range(3):
            for kx in range(3):
                for ox in range(6):
                    w1b[dx, ky * 16 + 2 * ox + dx + kx, ox * 64:(ox + 1) * 64] = \
                        w1_np[:, 0, ky, kx]
    # conv2: K = (kx, c1) packed per ky tap group -> [3, 192, 128]
    w2k = raw["w2"].transpose(2, 3, 1, 0).reshape(3, 192, 128)
    # fc1: absorb branch concat + NCHW flatten; single [1024, 128] (hidden 100 -> 128 pad).
    wf1c = raw["wf1"].reshape(nb_hidden, 2, 128, 2, 2).transpose(1, 3, 4, 2, 0)
    wf1c = jnp.pad(wf1c, ((0, 0),) * 4 + ((0, NB_HIDDEN_PAD - nb_hidden),)).reshape(1024, 128)
    # fc2: [hidden, 2] zero-padded to [128, 128] for a lane-dense output store.
    wf2p = jnp.zeros((NB_HIDDEN_PAD, 128), jnp.float32).at[:nb_hidden, :2].set(raw["wf2"].T)

    params = {
        "w1b": jnp.asarray(w1b).astype(jnp.bfloat16),
        "b1t": jnp.tile(raw["b1"], 6).reshape(1, 384),
        "w2k": w2k.astype(jnp.bfloat16),
        "b2r": raw["b2"].reshape(1, 128),
        "wf1c": wf1c.astype(jnp.bfloat16),
        "bf1p": jnp.pad(raw["bf1"], (0, NB_HIDDEN_PAD - nb_hidden)).reshape(1, NB_HIDDEN_PAD),
        "wf2p": wf2p.astype(jnp.bfloat16),
        "bf2p": jnp.zeros((1, 128), jnp.float32).at[0, :2].set(raw["bf2"]),
    }
    return params, raw


if __name__ == "__main__":
    key = jax.random.PRNGKey(0)
    pkey, xkey = jax.random.split(key)
    params, raw = make_params(pkey, nb_hidden=100)

    # B=24 -> tp=16, padded batch 32 -> a 2-step grid (one full tile + one tile with 8
    # padded tail pairs), exercising multi-tile pipelining, megacore split and padding.
    B = 24
    x = jax.random.normal(xkey, (B, 2, 14, 14), jnp.float32)
    out = jax.block_until_ready(ws_model1_forward(x, params))
    assert out.shape == (B, 2), out.shape

    ref = ref_forward(x, raw, mirror_bf16=True)
    assert jnp.allclose(out, ref, rtol=5e-3, atol=5e-3), (out, ref)

    print("KERNEL_OK")
</pallas_src>

<mosaic_0001>
module attributes {stable_mosaic.version = 11 : i64} {
  func.func @fused_kernel(%arg0: i32, %arg1: memref<2x6x2x16x48xbf16, #tpu.memory_space<vmem>>, %arg2: memref<2x48x384xbf16, #tpu.memory_space<vmem>>, %arg3: memref<1x384xf32, #tpu.memory_space<vmem>>, %arg4: memref<3x192x128xbf16, #tpu.memory_space<vmem>>, %arg5: memref<1x128xf32, #tpu.memory_space<vmem>>, %arg6: memref<1024x128xbf16, #tpu.memory_space<vmem>>, %arg7: memref<1x128xf32, #tpu.memory_space<vmem>>, %arg8: memref<128x128xbf16, #tpu.memory_space<vmem>>, %arg9: memref<1x128xf32, #tpu.memory_space<vmem>>, %arg10: memref<16x128xf32, #tpu.memory_space<vmem>>) attributes {dimension_semantics = [#tpu.dimension_semantics<parallel>], iteration_bounds = array<i64: 2>, scalar_prefetch = 0 : i64, scratch_operands = 0 : i64, tpu.core_type = #tpu.core_type<tc>, window_params = [{transform_indices = @transform_0, window_bounds = array<i64: 2, 6, 2, 16, 48>}, {pipeline_mode = #tpu.pipeline_mode<synchronous>, transform_indices = @transform_1, window_bounds = array<i64: 2, 48, 384>}, {pipeline_mode = #tpu.pipeline_mode<synchronous>, transform_indices = @transform_2, window_bounds = array<i64: 1, 384>}, {pipeline_mode = #tpu.pipeline_mode<synchronous>, transform_indices = @transform_3, window_bounds = array<i64: 3, 192, 128>}, {pipeline_mode = #tpu.pipeline_mode<synchronous>, transform_indices = @transform_4, window_bounds = array<i64: 1, 128>}, {pipeline_mode = #tpu.pipeline_mode<synchronous>, transform_indices = @transform_5, window_bounds = array<i64: 1024, 128>}, {pipeline_mode = #tpu.pipeline_mode<synchronous>, transform_indices = @transform_6, window_bounds = array<i64: 1, 128>}, {pipeline_mode = #tpu.pipeline_mode<synchronous>, transform_indices = @transform_7, window_bounds = array<i64: 128, 128>}, {pipeline_mode = #tpu.pipeline_mode<synchronous>, transform_indices = @transform_8, window_bounds = array<i64: 1, 128>}, {transform_indices = @transform_9, window_bounds = array<i64: 16, 128>}]} {
    %c0 = arith.constant 0 : index
    %c0_0 = arith.constant 0 : index
    %c0_1 = arith.constant 0 : index
    %c0_2 = arith.constant 0 : index
    %c0_3 = arith.constant 0 : index
    %0 = vector.load %arg1[%c0, %c0_0, %c0_1, %c0_2, %c0_3] : memref<2x6x2x16x48xbf16, #tpu.memory_space<vmem>>, vector<1x6x2x16x48xbf16>
    %1 = vector.shape_cast %0 : vector<1x6x2x16x48xbf16> to vector<6x2x16x48xbf16>
    %2 = vector.shape_cast %1 : vector<6x2x16x48xbf16> to vector<192x48xbf16>
    %c0_4 = arith.constant 0 : index
    %c0_5 = arith.constant 0 : index
    %c0_6 = arith.constant 0 : index
    %3 = vector.load %arg2[%c0_4, %c0_5, %c0_6] : memref<2x48x384xbf16, #tpu.memory_space<vmem>>, vector<1x48x384xbf16>
    %4 = vector.shape_cast %3 : vector<1x48x384xbf16> to vector<48x384xbf16>
    %cst = arith.constant dense<0.000000e+00> : vector<192x384xf32>
    %5 = tpu.matmul %2, %4, %cst {dimension_numbers = #tpu.dot_dimension_numbers<[1], [0], [0], [1], [0, 0, 1, 1], [], []>} : vector<192x48xbf16>, vector<48x384xbf16>, vector<192x384xf32> -> vector<192x384xf32>
    %c1 = arith.constant 1 : index
    %c0_7 = arith.constant 0 : index
    %c0_8 = arith.constant 0 : index
    %6 = vector.load %arg2[%c1, %c0_7, %c0_8] : memref<2x48x384xbf16, #tpu.memory_space<vmem>>, vector<1x48x384xbf16>
    %7 = vector.shape_cast %6 : vector<1x48x384xbf16> to vector<48x384xbf16>
    %cst_9 = arith.constant dense<0.000000e+00> : vector<192x384xf32>
    %8 = tpu.matmul %2, %7, %cst_9 {dimension_numbers = #tpu.dot_dimension_numbers<[1], [0], [0], [1], [0, 0, 1, 1], [], []>} : vector<192x48xbf16>, vector<48x384xbf16>, vector<192x384xf32> -> vector<192x384xf32>
    %9 = arith.maximumf %5, %8 : vector<192x384xf32>
    %c1_10 = arith.constant 1 : index
    %c0_11 = arith.constant 0 : index
    %c0_12 = arith.constant 0 : index
    %c0_13 = arith.constant 0 : index
    %c0_14 = arith.constant 0 : index
    %10 = vector.load %arg1[%c1_10, %c0_11, %c0_12, %c0_13, %c0_14] : memref<2x6x2x16x48xbf16, #tpu.memory_space<vmem>>, vector<1x6x2x16x48xbf16>
    %11 = vector.shape_cast %10 : vector<1x6x2x16x48xbf16> to vector<6x2x16x48xbf16>
    %12 = vector.shape_cast %11 : vector<6x2x16x48xbf16> to vector<192x48xbf16>
    %c0_15 = arith.constant 0 : index
    %c0_16 = arith.constant 0 : index
    %c0_17 = arith.constant 0 : index
    %13 = vector.load %arg2[%c0_15, %c0_16, %c0_17] : memref<2x48x384xbf16, #tpu.memory_space<vmem>>, vector<1x48x384xbf16>
    %14 = vector.shape_cast %13 : vector<1x48x384xbf16> to vector<48x384xbf16>
    %cst_18 = arith.constant dense<0.000000e+00> : vector<192x384xf32>
    %15 = tpu.matmul %12, %14, %cst_18 {dimension_numbers = #tpu.dot_dimension_numbers<[1], [0], [0], [1], [0, 0, 1, 1], [], []>} : vector<192x48xbf16>, vector<48x384xbf16>, vector<192x384xf32> -> vector<192x384xf32>
    %16 = arith.maximumf %9, %15 : vector<192x384xf32>
    %c1_19 = arith.constant 1 : index
    %c0_20 = arith.constant 0 : index
    %c0_21 = arith.constant 0 : index
    %17 = vector.load %arg2[%c1_19, %c0_20, %c0_21] : memref<2x48x384xbf16, #tpu.memory_space<vmem>>, vector<1x48x384xbf16>
    %18 = vector.shape_cast %17 : vector<1x48x384xbf16> to vector<48x384xbf16>
    %cst_22 = arith.constant dense<0.000000e+00> : vector<192x384xf32>
    %19 = tpu.matmul %12, %18, %cst_22 {dimension_numbers = #tpu.dot_dimension_numbers<[1], [0], [0], [1], [0, 0, 1, 1], [], []>} : vector<192x48xbf16>, vector<48x384xbf16>, vector<192x384xf32> -> vector<192x384xf32>
    %20 = arith.maximumf %16, %19 : vector<192x384xf32>
    %c0_23 = arith.constant 0 : index
    %c0_24 = arith.constant 0 : index
    %21 = vector.load %arg3[%c0_23, %c0_24] : memref<1x384xf32, #tpu.memory_space<vmem>>, vector<1x384xf32>
    %22 = vector.broadcast %21 : vector<1x384xf32> to vector<192x384xf32>
    %23 = arith.addf %20, %22 : vector<192x384xf32>
    %cst_25 = arith.constant 0.000000e+00 : f32
    %24 = vector.broadcast %cst_25 : f32 to vector<192x384xf32>
    %25 = arith.maximumf %23, %24 : vector<192x384xf32>
    %26 = arith.truncf %25 : vector<192x384xf32> to vector<192x384xbf16>
    %27 = vector.extract_strided_slice %26 {offsets = [0, 0], sizes = [128, 192], strides = [1, 1]} : vector<192x384xbf16> to vector<128x192xbf16>
    %c0_26 = arith.constant 0 : index
    %c0_27 = arith.constant 0 : index
    %c0_28 = arith.constant 0 : index
    %28 = vector.load %arg4[%c0_26, %c0_27, %c0_28] : memref<3x192x128xbf16, #tpu.memory_space<vmem>>, vector<1x192x128xbf16>
    %29 = vector.shape_cast %28 : vector<1x192x128xbf16> to vector<192x128xbf16>
    %cst_29 = arith.constant dense<0.000000e+00> : vector<128x128xf32>
    %30 = tpu.matmul %27, %29, %cst_29 {dimension_numbers = #tpu.dot_dimension_numbers<[1], [0], [0], [1], [0, 0, 1, 1], [], []>} : vector<128x192xbf16>, vector<192x128xbf16>, vector<128x128xf32> -> vector<128x128xf32>
    %31 = vector.extract_strided_slice %26 {offsets = [32, 0], sizes = [128, 192], strides = [1, 1]} : vector<192x384xbf16> to vector<128x192xbf16>
    %c1_30 = arith.constant 1 : index
    %c0_31 = arith.constant 0 : index
    %c0_32 = arith.constant 0 : index
    %32 = vector.load %arg4[%c1_30, %c0_31, %c0_32] : memref<3x192x128xbf16, #tpu.memory_space<vmem>>, vector<1x192x128xbf16>
    %33 = vector.shape_cast %32 : vector<1x192x128xbf16> to vector<192x128xbf16>
    %cst_33 = arith.constant dense<0.000000e+00> : vector<128x128xf32>
    %34 = tpu.matmul %31, %33, %cst_33 {dimension_numbers = #tpu.dot_dimension_numbers<[1], [0], [0], [1], [0, 0, 1, 1], [], []>} : vector<128x192xbf16>, vector<192x128xbf16>, vector<128x128xf32> -> vector<128x128xf32>
    %35 = arith.addf %30, %34 : vector<128x128xf32>
    %36 = vector.extract_strided_slice %26 {offsets = [64, 0], sizes = [128, 192], strides = [1, 1]} : vector<192x384xbf16> to vector<128x192xbf16>
    %c2 = arith.constant 2 : index
    %c0_34 = arith.constant 0 : index
    %c0_35 = arith.constant 0 : index
    %37 = vector.load %arg4[%c2, %c0_34, %c0_35] : memref<3x192x128xbf16, #tpu.memory_space<vmem>>, vector<1x192x128xbf16>
    %38 = vector.shape_cast %37 : vector<1x192x128xbf16> to vector<192x128xbf16>
    %cst_36 = arith.constant dense<0.000000e+00> : vector<128x128xf32>
    %39 = tpu.matmul %36, %38, %cst_36 {dimension_numbers = #tpu.dot_dimension_numbers<[1], [0], [0], [1], [0, 0, 1, 1], [], []>} : vector<128x192xbf16>, vector<192x128xbf16>, vector<128x128xf32> -> vector<128x128xf32>
    %40 = arith.addf %35, %39 : vector<128x128xf32>
    %41 = vector.extract_strided_slice %26 {offsets = [0, 64], sizes = [128, 192], strides = [1, 1]} : vector<192x384xbf16> to vector<128x192xbf16>
    %c0_37 = arith.constant 0 : index
    %c0_38 = arith.constant 0 : index
    %c0_39 = arith.constant 0 : index
    %42 = vector.load %arg4[%c0_37, %c0_38, %c0_39] : memref<3x192x128xbf16, #tpu.memory_space<vmem>>, vector<1x192x128xbf16>
    %43 = vector.shape_cast %42 : vector<1x192x128xbf16> to vector<192x128xbf16>
    %cst_40 = arith.constant dense<0.000000e+00> : vector<128x128xf32>
    %44 = tpu.matmul %41, %43, %cst_40 {dimension_numbers = #tpu.dot_dimension_numbers<[1], [0], [0], [1], [0, 0, 1, 1], [], []>} : vector<128x192xbf16>, vector<192x128xbf16>, vector<128x128xf32> -> vector<128x128xf32>
    %45 = vector.extract_strided_slice %26 {offsets = [32, 64], sizes = [128, 192], strides = [1, 1]} : vector<192x384xbf16> to vector<128x192xbf16>
    %c1_41 = arith.constant 1 : index
    %c0_42 = arith.constant 0 : index
    %c0_43 = arith.constant 0 : index
    %46 = vector.load %arg4[%c1_41, %c0_42, %c0_43] : memref<3x192x128xbf16, #tpu.memory_space<vmem>>, vector<1x192x128xbf16>
    %47 = vector.shape_cast %46 : vector<1x192x128xbf16> to vector<192x128xbf16>
    %cst_44 = arith.constant dense<0.000000e+00> : vector<128x128xf32>
    %48 = tpu.matmul %45, %47, %cst_44 {dimension_numbers = #tpu.dot_dimension_numbers<[1], [0], [0], [1], [0, 0, 1, 1], [], []>} : vector<128x192xbf16>, vector<192x128xbf16>, vector<128x128xf32> -> vector<128x128xf32>
    %49 = arith.addf %44, %48 : vector<128x128xf32>
    %50 = vector.extract_strided_slice %26 {offsets = [64, 64], sizes = [128, 192], strides = [1, 1]} : vector<192x384xbf16> to vector<128x192xbf16>
    %c2_45 = arith.constant 2 : index
    %c0_46 = arith.constant 0 : index
    %c0_47 = arith.constant 0 : index
    %51 = vector.load %arg4[%c2_45, %c0_46, %c0_47] : memref<3x192x128xbf16, #tpu.memory_space<vmem>>, vector<1x192x128xbf16>
    %52 = vector.shape_cast %51 : vector<1x192x128xbf16> to vector<192x128xbf16>
    %cst_48 = arith.constant dense<0.000000e+00> : vector<128x128xf32>
    %53 = tpu.matmul %50, %52, %cst_48 {dimension_numbers = #tpu.dot_dimension_numbers<[1], [0], [0], [1], [0, 0, 1, 1], [], []>} : vector<128x192xbf16>, vector<192x128xbf16>, vector<128x128xf32> -> vector<128x128xf32>
    %54 = arith.addf %49, %53 : vector<128x128xf32>
    %55 = vector.extract_strided_slice %26 {offsets = [0, 128], sizes = [128, 192], strides = [1, 1]} : vector<192x384xbf16> to vector<128x192xbf16>
    %c0_49 = arith.constant 0 : index
    %c0_50 = arith.constant 0 : index
    %c0_51 = arith.constant 0 : index
    %56 = vector.load %arg4[%c0_49, %c0_50, %c0_51] : memref<3x192x128xbf16, #tpu.memory_space<vmem>>, vector<1x192x128xbf16>
    %57 = vector.shape_cast %56 : vector<1x192x128xbf16> to vector<192x128xbf16>
    %cst_52 = arith.constant dense<0.000000e+00> : vector<128x128xf32>
    %58 = tpu.matmul %55, %57, %cst_52 {dimension_numbers = #tpu.dot_dimension_numbers<[1], [0], [0], [1], [0, 0, 1, 1], [], []>} : vector<128x192xbf16>, vector<192x128xbf16>, vector<128x128xf32> -> vector<128x128xf32>
    %59 = vector.extract_strided_slice %26 {offsets = [32, 128], sizes = [128, 192], strides = [1, 1]} : vector<192x384xbf16> to vector<128x192xbf16>
    %c1_53 = arith.constant 1 : index
    %c0_54 = arith.constant 0 : index
    %c0_55 = arith.constant 0 : index
    %60 = vector.load %arg4[%c1_53, %c0_54, %c0_55] : memref<3x192x128xbf16, #tpu.memory_space<vmem>>, vector<1x192x128xbf16>
    %61 = vector.shape_cast %60 : vector<1x192x128xbf16> to vector<192x128xbf16>
    %cst_56 = arith.constant dense<0.000000e+00> : vector<128x128xf32>
    %62 = tpu.matmul %59, %61, %cst_56 {dimension_numbers = #tpu.dot_dimension_numbers<[1], [0], [0], [1], [0, 0, 1, 1], [], []>} : vector<128x192xbf16>, vector<192x128xbf16>, vector<128x128xf32> -> vector<128x128xf32>
    %63 = arith.addf %58, %62 : vector<128x128xf32>
    %64 = vector.extract_strided_slice %26 {offsets = [64, 128], sizes = [128, 192], strides = [1, 1]} : vector<192x384xbf16> to vector<128x192xbf16>
    %c2_57 = arith.constant 2 : index
    %c0_58 = arith.constant 0 : index
    %c0_59 = arith.constant 0 : index
    %65 = vector.load %arg4[%c2_57, %c0_58, %c0_59] : memref<3x192x128xbf16, #tpu.memory_space<vmem>>, vector<1x192x128xbf16>
    %66 = vector.shape_cast %65 : vector<1x192x128xbf16> to vector<192x128xbf16>
    %cst_60 = arith.constant dense<0.000000e+00> : vector<128x128xf32>
    %67 = tpu.matmul %64, %66, %cst_60 {dimension_numbers = #tpu.dot_dimension_numbers<[1], [0], [0], [1], [0, 0, 1, 1], [], []>} : vector<128x192xbf16>, vector<192x128xbf16>, vector<128x128xf32> -> vector<128x128xf32>
    %68 = arith.addf %63, %67 : vector<128x128xf32>
    %69 = vector.extract_strided_slice %26 {offsets = [0, 192], sizes = [128, 192], strides = [1, 1]} : vector<192x384xbf16> to vector<128x192xbf16>
    %c0_61 = arith.constant 0 : index
    %c0_62 = arith.constant 0 : index
    %c0_63 = arith.constant 0 : index
    %70 = vector.load %arg4[%c0_61, %c0_62, %c0_63] : memref<3x192x128xbf16, #tpu.memory_space<vmem>>, vector<1x192x128xbf16>
    %71 = vector.shape_cast %70 : vector<1x192x128xbf16> to vector<192x128xbf16>
    %cst_64 = arith.constant dense<0.000000e+00> : vector<128x128xf32>
    %72 = tpu.matmul %69, %71, %cst_64 {dimension_numbers = #tpu.dot_dimension_numbers<[1], [0], [0], [1], [0, 0, 1, 1], [], []>} : vector<128x192xbf16>, vector<192x128xbf16>, vector<128x128xf32> -> vector<128x128xf32>
    %73 = vector.extract_strided_slice %26 {offsets = [32, 192], sizes = [128, 192], strides = [1, 1]} : vector<192x384xbf16> to vector<128x192xbf16>
    %c1_65 = arith.constant 1 : index
    %c0_66 = arith.constant 0 : index
    %c0_67 = arith.constant 0 : index
    %74 = vector.load %arg4[%c1_65, %c0_66, %c0_67] : memref<3x192x128xbf16, #tpu.memory_space<vmem>>, vector<1x192x128xbf16>
    %75 = vector.shape_cast %74 : vector<1x192x128xbf16> to vector<192x128xbf16>
    %cst_68 = arith.constant dense<0.000000e+00> : vector<128x128xf32>
    %76 = tpu.matmul %73, %75, %cst_68 {dimension_numbers = #tpu.dot_dimension_numbers<[1], [0], [0], [1], [0, 0, 1, 1], [], []>} : vector<128x192xbf16>, vector<192x128xbf16>, vector<128x128xf32> -> vector<128x128xf32>
    %77 = arith.addf %72, %76 : vector<128x128xf32>
    %78 = vector.extract_strided_slice %26 {offsets = [64, 192], sizes = [128, 192], strides = [1, 1]} : vector<192x384xbf16> to vector<128x192xbf16>
    %c2_69 = arith.constant 2 : index
    %c0_70 = arith.constant 0 : index
    %c0_71 = arith.constant 0 : index
    %79 = vector.load %arg4[%c2_69, %c0_70, %c0_71] : memref<3x192x128xbf16, #tpu.memory_space<vmem>>, vector<1x192x128xbf16>
    %80 = vector.shape_cast %79 : vector<1x192x128xbf16> to vector<192x128xbf16>
    %cst_72 = arith.constant dense<0.000000e+00> : vector<128x128xf32>
    %81 = tpu.matmul %78, %80, %cst_72 {dimension_numbers = #tpu.dot_dimension_numbers<[1], [0], [0], [1], [0, 0, 1, 1], [], []>} : vector<128x192xbf16>, vector<192x128xbf16>, vector<128x128xf32> -> vector<128x128xf32>
    %82 = arith.addf %77, %81 : vector<128x128xf32>
    %83 = vector.extract_strided_slice %40 {offsets = [0, 0], sizes = [32, 128], strides = [1, 1]} : vector<128x128xf32> to vector<32x128xf32>
    %84 = vector.extract_strided_slice %40 {offsets = [32, 0], sizes = [32, 128], strides = [1, 1]} : vector<128x128xf32> to vector<32x128xf32>
    %85 = arith.maximumf %83, %84 : vector<32x128xf32>
    %86 = vector.extract_strided_slice %54 {offsets = [0, 0], sizes = [32, 128], strides = [1, 1]} : vector<128x128xf32> to vector<32x128xf32>
    %87 = vector.extract_strided_slice %54 {offsets = [32, 0], sizes = [32, 128], strides = [1, 1]} : vector<128x128xf32> to vector<32x128xf32>
    %88 = arith.maximumf %86, %87 : vector<32x128xf32>
    %89 = arith.maximumf %85, %88 : vector<32x128xf32>
    %c0_73 = arith.constant 0 : index
    %c0_74 = arith.constant 0 : index
    %90 = vector.load %arg5[%c0_73, %c0_74] : memref<1x128xf32, #tpu.memory_space<vmem>>, vector<1x128xf32>
    %91 = vector.broadcast %90 : vector<1x128xf32> to vector<32x128xf32>
    %92 = arith.addf %89, %91 : vector<32x128xf32>
    %cst_75 = arith.constant 0.000000e+00 : f32
    %93 = vector.broadcast %cst_75 : f32 to vector<32x128xf32>
    %94 = arith.maximumf %92, %93 : vector<32x128xf32>
    %95 = arith.truncf %94 : vector<32x128xf32> to vector<32x128xbf16>
    %96 = vector.extract_strided_slice %68 {offsets = [0, 0], sizes = [32, 128], strides = [1, 1]} : vector<128x128xf32> to vector<32x128xf32>
    %97 = vector.extract_strided_slice %68 {offsets = [32, 0], sizes = [32, 128], strides = [1, 1]} : vector<128x128xf32> to vector<32x128xf32>
    %98 = arith.maximumf %96, %97 : vector<32x128xf32>
    %99 = vector.extract_strided_slice %82 {offsets = [0, 0], sizes = [32, 128], strides = [1, 1]} : vector<128x128xf32> to vector<32x128xf32>
    %100 = vector.extract_strided_slice %82 {offsets = [32, 0], sizes = [32, 128], strides = [1, 1]} : vector<128x128xf32> to vector<32x128xf32>
    %101 = arith.maximumf %99, %100 : vector<32x128xf32>
    %102 = arith.maximumf %98, %101 : vector<32x128xf32>
    %c0_76 = arith.constant 0 : index
    %c0_77 = arith.constant 0 : index
    %103 = vector.load %arg5[%c0_76, %c0_77] : memref<1x128xf32, #tpu.memory_space<vmem>>, vector<1x128xf32>
    %104 = vector.broadcast %103 : vector<1x128xf32> to vector<32x128xf32>
    %105 = arith.addf %102, %104 : vector<32x128xf32>
    %cst_78 = arith.constant 0.000000e+00 : f32
    %106 = vector.broadcast %cst_78 : f32 to vector<32x128xf32>
    %107 = arith.maximumf %105, %106 : vector<32x128xf32>
    %108 = arith.truncf %107 : vector<32x128xf32> to vector<32x128xbf16>
    %109 = vector.extract_strided_slice %40 {offsets = [64, 0], sizes = [32, 128], strides = [1, 1]} : vector<128x128xf32> to vector<32x128xf32>
    %110 = vector.extract_strided_slice %40 {offsets = [96, 0], sizes = [32, 128], strides = [1, 1]} : vector<128x128xf32> to vector<32x128xf32>
    %111 = arith.maximumf %109, %110 : vector<32x128xf32>
    %112 = vector.extract_strided_slice %54 {offsets = [64, 0], sizes = [32, 128], strides = [1, 1]} : vector<128x128xf32> to vector<32x128xf32>
    %113 = vector.extract_strided_slice %54 {offsets = [96, 0], sizes = [32, 128], strides = [1, 1]} : vector<128x128xf32> to vector<32x128xf32>
    %114 = arith.maximumf %112, %113 : vector<32x128xf32>
    %115 = arith.maximumf %111, %114 : vector<32x128xf32>
    %c0_79 = arith.constant 0 : index
    %c0_80 = arith.constant 0 : index
    %116 = vector.load %arg5[%c0_79, %c0_80] : memref<1x128xf32, #tpu.memory_space<vmem>>, vector<1x128xf32>
    %117 = vector.broadcast %116 : vector<1x128xf32> to vector<32x128xf32>
    %118 = arith.addf %115, %117 : vector<32x128xf32>
    %cst_81 = arith.constant 0.000000e+00 : f32
    %119 = vector.broadcast %cst_81 : f32 to vector<32x128xf32>
    %120 = arith.maximumf %118, %119 : vector<32x128xf32>
    %121 = arith.truncf %120 : vector<32x128xf32> to vector<32x128xbf16>
    %122 = vector.extract_strided_slice %68 {offsets = [64, 0], sizes = [32, 128], strides = [1, 1]} : vector<128x128xf32> to vector<32x128xf32>
    %123 = vector.extract_strided_slice %68 {offsets = [96, 0], sizes = [32, 128], strides = [1, 1]} : vector<128x128xf32> to vector<32x128xf32>
    %124 = arith.maximumf %122, %123 : vector<32x128xf32>
    %125 = vector.extract_strided_slice %82 {offsets = [64, 0], sizes = [32, 128], strides = [1, 1]} : vector<128x128xf32> to vector<32x128xf32>
    %126 = vector.extract_strided_slice %82 {offsets = [96, 0], sizes = [32, 128], strides = [1, 1]} : vector<128x128xf32> to vector<32x128xf32>
    %127 = arith.maximumf %125, %126 : vector<32x128xf32>
    %128 = arith.maximumf %124, %127 : vector<32x128xf32>
    %c0_82 = arith.constant 0 : index
    %c0_83 = arith.constant 0 : index
    %129 = vector.load %arg5[%c0_82, %c0_83] : memref<1x128xf32, #tpu.memory_space<vmem>>, vector<1x128xf32>
    %130 = vector.broadcast %129 : vector<1x128xf32> to vector<32x128xf32>
    %131 = arith.addf %128, %130 : vector<32x128xf32>
    %cst_84 = arith.constant 0.000000e+00 : f32
    %132 = vector.broadcast %cst_84 : f32 to vector<32x128xf32>
    %133 = arith.maximumf %131, %132 : vector<32x128xf32>
    %134 = arith.truncf %133 : vector<32x128xf32> to vector<32x128xbf16>
    %135 = vector.extract_strided_slice %95 {offsets = [0, 0], sizes = [16, 128], strides = [1, 1]} : vector<32x128xbf16> to vector<16x128xbf16>
    %136 = vector.extract_strided_slice %108 {offsets = [0, 0], sizes = [16, 128], strides = [1, 1]} : vector<32x128xbf16> to vector<16x128xbf16>
    %137 = vector.extract_strided_slice %121 {offsets = [0, 0], sizes = [16, 128], strides = [1, 1]} : vector<32x128xbf16> to vector<16x128xbf16>
    %138 = vector.extract_strided_slice %134 {offsets = [0, 0], sizes = [16, 128], strides = [1, 1]} : vector<32x128xbf16> to vector<16x128xbf16>
    %139 = vector.extract_strided_slice %95 {offsets = [16, 0], sizes = [16, 128], strides = [1, 1]} : vector<32x128xbf16> to vector<16x128xbf16>
    %140 = vector.extract_strided_slice %108 {offsets = [16, 0], sizes = [16, 128], strides = [1, 1]} : vector<32x128xbf16> to vector<16x128xbf16>
    %141 = vector.extract_strided_slice %121 {offsets = [16, 0], sizes = [16, 128], strides = [1, 1]} : vector<32x128xbf16> to vector<16x128xbf16>
    %142 = vector.extract_strided_slice %134 {offsets = [16, 0], sizes = [16, 128], strides = [1, 1]} : vector<32x128xbf16> to vector<16x128xbf16>
    %143 = tpu.concatenate %135, %136, %137, %138, %139, %140, %141, %142 in 1 : vector<16x128xbf16>, vector<16x128xbf16>, vector<16x128xbf16>, vector<16x128xbf16>, vector<16x128xbf16>, vector<16x128xbf16>, vector<16x128xbf16>, vector<16x128xbf16> -> vector<16x1024xbf16>
    %c0_85 = arith.constant 0 : index
    %c0_86 = arith.constant 0 : index
    %144 = vector.load %arg6[%c0_85, %c0_86] : memref<1024x128xbf16, #tpu.memory_space<vmem>>, vector<1024x128xbf16>
    %cst_87 = arith.constant dense<0.000000e+00> : vector<16x128xf32>
    %145 = tpu.matmul %143, %144, %cst_87 {dimension_numbers = #tpu.dot_dimension_numbers<[1], [0], [0], [1], [0, 0, 1, 1], [], []>} : vector<16x1024xbf16>, vector<1024x128xbf16>, vector<16x128xf32> -> vector<16x128xf32>
    %c0_88 = arith.constant 0 : index
    %c0_89 = arith.constant 0 : index
    %146 = vector.load %arg7[%c0_88, %c0_89] : memref<1x128xf32, #tpu.memory_space<vmem>>, vector<1x128xf32>
    %147 = vector.broadcast %146 : vector<1x128xf32> to vector<16x128xf32>
    %148 = arith.addf %145, %147 : vector<16x128xf32>
    %cst_90 = arith.constant 0.000000e+00 : f32
    %149 = vector.broadcast %cst_90 : f32 to vector<16x128xf32>
    %150 = arith.maximumf %148, %149 : vector<16x128xf32>
    %151 = arith.truncf %150 : vector<16x128xf32> to vector<16x128xbf16>
    %c0_91 = arith.constant 0 : index
    %c0_92 = arith.constant 0 : index
    %152 = vector.load %arg8[%c0_91, %c0_92] : memref<128x128xbf16, #tpu.memory_space<vmem>>, vector<128x128xbf16>
    %cst_93 = arith.constant dense<0.000000e+00> : vector<16x128xf32>
    %153 = tpu.matmul %151, %152, %cst_93 {dimension_numbers = #tpu.dot_dimension_numbers<[1], [0], [0], [1], [0, 0, 1, 1], [], []>} : vector<16x128xbf16>, vector<128x128xbf16>, vector<16x128xf32> -> vector<16x128xf32>
    %c0_94 = arith.constant 0 : index
    %c0_95 = arith.constant 0 : index
    %154 = vector.load %arg9[%c0_94, %c0_95] : memref<1x128xf32, #tpu.memory_space<vmem>>, vector<1x128xf32>
    %155 = vector.broadcast %154 : vector<1x128xf32> to vector<16x128xf32>
    %156 = arith.addf %153, %155 : vector<16x128xf32>
    %c0_96 = arith.constant 0 : index
    %c0_97 = arith.constant 0 : index
    %157 = vector.load %arg10[%c0_96, %c0_97] : memref<16x128xf32, #tpu.memory_space<vmem>>, vector<16x128xf32>
    tpu.vector_store %arg10[%c0_96, %c0_97], %156 {strides = array<i32>} : memref<16x128xf32, #tpu.memory_space<vmem>>, vector<16x128xf32>,
    return
  }
  func.func @transform_0(%arg0: i32) -> (i32, i32, i32, i32, i32) {
    %c0_i32 = arith.constant 0 : i32
    %c0_i32_0 = arith.constant 0 : i32
    %c0_i32_1 = arith.constant 0 : i32
    %c0_i32_2 = arith.constant 0 : i32
    %c0_i32_3 = arith.constant 0 : i32
    return %c0_i32, %c0_i32_0, %c0_i32_1, %arg0, %c0_i32_2 : i32, i32, i32, i32, i32
  }
  func.func @transform_1(%arg0: i32) -> (i32, i32, i32) {
    %c0_i32 = arith.constant 0 : i32
    %c0_i32_0 = arith.constant 0 : i32
    %c0_i32_1 = arith.constant 0 : i32
    %c0_i32_2 = arith.constant 0 : i32
    return %c0_i32, %c0_i32_0, %c0_i32_1 : i32, i32, i32
  }
  func.func @transform_2(%arg0: i32) -> (i32, i32) {
    %c0_i32 = arith.constant 0 : i32
    %c0_i32_0 = arith.constant 0 : i32
    %c0_i32_1 = arith.constant 0 : i32
    return %c0_i32, %c0_i32_0 : i32, i32
  }
  func.func @transform_3(%arg0: i32) -> (i32, i32, i32) {
    %c0_i32 = arith.constant 0 : i32
    %c0_i32_0 = arith.constant 0 : i32
    %c0_i32_1 = arith.constant 0 : i32
    %c0_i32_2 = arith.constant 0 : i32
    return %c0_i32, %c0_i32_0, %c0_i32_1 : i32, i32, i32
  }
  func.func @transform_4(%arg0: i32) -> (i32, i32) {
    %c0_i32 = arith.constant 0 : i32
    %c0_i32_0 = arith.constant 0 : i32
    %c0_i32_1 = arith.constant 0 : i32
    return %c0_i32, %c0_i32_0 : i32, i32
  }
  func.func @transform_5(%arg0: i32) -> (i32, i32) {
    %c0_i32 = arith.constant 0 : i32
    %c0_i32_0 = arith.constant 0 : i32
    %c0_i32_1 = arith.constant 0 : i32
    return %c0_i32, %c0_i32_0 : i32, i32
  }
  func.func @transform_6(%arg0: i32) -> (i32, i32) {
    %c0_i32 = arith.constant 0 : i32
    %c0_i32_0 = arith.constant 0 : i32
    %c0_i32_1 = arith.constant 0 : i32
    return %c0_i32, %c0_i32_0 : i32, i32
  }
  func.func @transform_7(%arg0: i32) -> (i32, i32) {
    %c0_i32 = arith.constant 0 : i32
    %c0_i32_0 = arith.constant 0 : i32
    %c0_i32_1 = arith.constant 0 : i32
    return %c0_i32, %c0_i32_0 : i32, i32
  }
  func.func @transform_8(%arg0: i32) -> (i32, i32) {
    %c0_i32 = arith.constant 0 : i32
    %c0_i32_0 = arith.constant 0 : i32
    %c0_i32_1 = arith.constant 0 : i32
    return %c0_i32, %c0_i32_0 : i32, i32
  }
  func.func @transform_9(%arg0: i32) -> (i32, i32) {
    %c0_i32 = arith.constant 0 : i32
    %c0_i32_0 = arith.constant 0 : i32
    return %arg0, %c0_i32 : i32, i32
  }
}

</mosaic_0001>

<bundles_post_ra>
// kernel: ws_model1_forward.1
= control target key start
LH: loop header
LB: loop body
LE: loop exit
PB: predicated region body
PF: predicated region fallthrough
CT: control target
= control target key end

     0   :  { %s6296_s30 = smov 0   ;;  %s6298_s10 = smov 0   ;;  %s9547_s0 = inlined_call_operand.vmem [shape: bf16[2,6,2,32,48], index: 0, kind: input, shape index: {}]   ;;  %s9548_s1 = inlined_call_operand.vmem [shape: bf16[2,48,384], index: 1, kind: input, shape index: {}]   ;;  %s9549_s2 = inlined_call_operand.vmem [shape: f32[1,384], index: 2, kind: input, shape index: {}]   ;;  %s9550_s3 = inlined_call_operand.vmem [shape: bf16[3,192,128], index: 3, kind: input, shape index: {}]   ;;  %s9551_s4 = inlined_call_operand.vmem [shape: f32[1,128], index: 4, kind: input, shape index: {}]   ;;  %s9552_s5 = inlined_call_operand.vmem [shape: bf16[1024,128], index: 5, kind: input, shape index: {}]   ;;  %s9553_s6 = inlined_call_operand.vmem [shape: f32[1,128], index: 6, kind: input, shape index: {}]   ;;  %s9554_s7 = inlined_call_operand.vmem [shape: bf16[128,128], index: 7, kind: input, shape index: {}]   ;;  %s9555_s8 = inlined_call_operand.vmem [shape: f32[1,128], index: 8, kind: input, shape index: {}]   ;;  %s9556_s9 = inlined_call_operand.vmem [shape: f32[32,128], index: 9, kind: output, shape index: {}]  }
   0x1   :  { %s6300_s11 = smov 0  }
   0x2 LB: > { %s5249_s12 = sadd.s32 4294967295, %s6240_s11   ;;  %s6313_s13 = sadd.s32 1, %s6240_s11   ;;  %s6240_s11 = sphi %s6300_s11, %s10148_s11   ;;  %s6236_s10 = sphi %s6298_s10, %s10147_s10   ;;  %s6232_s30 = sphi %s6296_s30, %s10146_s30  }
   0x3   : > { %s23_s14 = ssub.s32 %s6240_s11, %s6313_s13  ;;  %s26_s15 = sadd.s32 1, %s6236_s10 }
   0x4   : > { %p24_p0 = scmp.eq.s32.totalorder %s23_s14, 0  ;;  %p33_p1 = scmp.ne.s32.totalorder %s6236_s10, %s6232_s30 }
   0x5   : > { %p34_p2 = scmp.eq.s32.totalorder %s6240_s11, 0  ;;  %p5252_p4 = scmp.ge.s32.totalorder %s6240_s11, 2 }
   0x6   : > { %s6322_s16 = scalar_select %p24_p0, %s6236_s10, %s26_s15  }
   0x7   : > { %p35_p3 = por %p34_p2, %p33_p1  ;;  %277 = sbr.rel (%p5252_p4) target bundleno = 28 (0x1c), region = 48 }
   0xc   : > { %280 = sbr.rel (!%p35_p3) target bundleno = 28 (0x1c), region = 52  ;;  %s282_s17 = sand.u32 (%p35_p3), 1, %s6236_s10  }
   0xd   : > { %s5689_s18 = sshll.u32 (%p35_p3), %s6240_s11, 3  ;;  %s5993_s19 = smul.u32 (%p35_p3), 192, %s282_s17 }
   0xe   : > { %s6330_s22 = scalar_lea.vmem (%p35_p3), %s9547_s0, %s5689_s18 }
   0xf   : > { %v304_v0 = vld [vmem:[%s6330_s22] sm:$0xff] (%p35_p3)   ;;  %v308_v1 = vld [vmem:[%s6330_s22 + $0x10] sm:$0xff] (%p35_p3)   ;;  %s6338_s23 = scalar_lea.vmem (%p35_p3), [#allocation2], %s5993_s19 }
  0x10   : > { %v312_v2 = vld [vmem:[%s6330_s22 + $0x20] sm:$0xff] (%p35_p3)   ;;  %v316_v3 = vld [vmem:[%s6330_s22 + $0x30] sm:$0xff] (%p35_p3)   ;;  %305 = vst [vmem:[%s6338_s23] sm:$0xff] (%p35_p3), %v304_v0   ;;  %309 = vst [vmem:[%s6338_s23 + $0x8] sm:$0xff] (%p35_p3), %v308_v1  }
  0x11   : > { %v320_v4 = vld [vmem:[%s6330_s22 + $0x40] sm:$0xff]   ;;  %v324_v5 = vld [vmem:[%s6330_s22 + $0x50] sm:$0xff]   ;;  %313 = vst [vmem:[%s6338_s23 + $0x10] sm:$0xff] %v312_v2   ;;  %317 = vst [vmem:[%s6338_s23 + $0x18] sm:$0xff] %v316_v3  }
  0x12   : > { %321 = vst [vmem:[%s6338_s23 + $0x20] sm:$0xff] %v320_v4   ;;  %325 = vst [vmem:[%s6338_s23 + $0x28] sm:$0xff] %v324_v5   ;;  %v328_v6 = vld [vmem:[%s6330_s22 + $0x60] sm:$0xff]   ;;  %v332_v7 = vld [vmem:[%s6330_s22 + $0x70] sm:$0xff]  }
  0x13   : > { %v336_v8 = vld [vmem:[%s6330_s22 + $0x80] sm:$0xff]   ;;  %329 = vst [vmem:[%s6338_s23 + $0x30] sm:$0xff] %v328_v6   ;;  %333 = vst [vmem:[%s6338_s23 + $0x38] sm:$0xff] %v332_v7   ;;  %v340_v9 = vld [vmem:[%s6330_s22 + $0x90] sm:$0xff]  }
  0x14   : > { %337 = vst [vmem:[%s6338_s23 + $0x40] sm:$0xff] %v336_v8   ;;  %v344_v10 = vld [vmem:[%s6330_s22 + $0xa0] sm:$0xff]   ;;  %v348_v11 = vld [vmem:[%s6330_s22 + $0xb0] sm:$0xff]   ;;  %341 = vst [vmem:[%s6338_s23 + $0x48] sm:$0xff] %v340_v9  }
  0x15   : > { %345 = vst [vmem:[%s6338_s23 + $0x50] sm:$0xff] %v344_v10   ;;  %349 = vst [vmem:[%s6338_s23 + $0x58] sm:$0xff] %v348_v11   ;;  %v352_v12 = vld [vmem:[%s6330_s22 + $0xc0] sm:$0xff]   ;;  %v356_v13 = vld [vmem:[%s6330_s22 + $0xd0] sm:$0xff]  }
  0x16   : > { %v360_v14 = vld [vmem:[%s6330_s22 + $0xe0] sm:$0xff]   ;;  %353 = vst [vmem:[%s6338_s23 + $0x60] sm:$0xff] %v352_v12   ;;  %357 = vst [vmem:[%s6338_s23 + $0x68] sm:$0xff] %v356_v13   ;;  %v364_v15 = vld [vmem:[%s6330_s22 + $0xf0] sm:$0xff]  }
  0x17   : > { %361 = vst [vmem:[%s6338_s23 + $0x70] sm:$0xff] %v360_v14   ;;  %v368_v16 = vld [vmem:[%s6330_s22 + $0x100] sm:$0xff]   ;;  %v372_v17 = vld [vmem:[%s6330_s22 + $0x110] sm:$0xff]   ;;  %365 = vst [vmem:[%s6338_s23 + $0x78] sm:$0xff] %v364_v15  }
  0x18   : > { %369 = vst [vmem:[%s6338_s23 + $0x80] sm:$0xff] %v368_v16   ;;  %373 = vst [vmem:[%s6338_s23 + $0x88] sm:$0xff] %v372_v17   ;;  %v376_v18 = vld [vmem:[%s6330_s22 + $0x120] sm:$0xff]   ;;  %v380_v19 = vld [vmem:[%s6330_s22 + $0x130] sm:$0xff]  }
  0x19   : > { %v384_v20 = vld [vmem:[%s6330_s22 + $0x140] sm:$0xff]   ;;  %377 = vst [vmem:[%s6338_s23 + $0x90] sm:$0xff] %v376_v18   ;;  %381 = vst [vmem:[%s6338_s23 + $0x98] sm:$0xff] %v380_v19   ;;  %v388_v21 = vld [vmem:[%s6330_s22 + $0x150] sm:$0xff]  }
  0x1a   : > { %385 = vst [vmem:[%s6338_s23 + $0xa0] sm:$0xff] %v384_v20   ;;  %v392_v22 = vld [vmem:[%s6330_s22 + $0x160] sm:$0xff]   ;;  %v396_v23 = vld [vmem:[%s6330_s22 + $0x170] sm:$0xff]   ;;  %389 = vst [vmem:[%s6338_s23 + $0xa8] sm:$0xff] %v388_v21  }
  0x1b   : > { %393 = vst [vmem:[%s6338_s23 + $0xb0] sm:$0xff] %v392_v22   ;;  %397 = vst [vmem:[%s6338_s23 + $0xb8] sm:$0xff] %v396_v23  }
  0x1c PF: > { %p5255_p5 = scmp.ge.s32.totalorder %s6240_s11, 1  ;;  %p518_p6 = scmp.lt.s32.totalorder %s6240_s11, 3 }
  0x1e   : > { %p519_p7 = pnand %p5255_p5, %p518_p6 }
  0x20   : > { %522 = sbr.rel (%p519_p7) target bundleno = 1561 (0x619), region = 93 }
  0x25   : > { %v6387_v24 = vld [vmem:[%s9548_s1 + $0x34] ss:$12 sps:$4 sm:$0xff]   ;;  %s525_s26 = sand.u32 1, %s6232_s30   ;;  %v6393_v25 = vld [vmem:[%s9548_s1 + $0x30] ss:$12 sps:$4 sm:$0xff]   ;;  %v9566_v26 = vmov 0  }
  0x26   : > { %781 = vmatprep.mubr.bf16.mxu0 %v9566_v26  ;;  %881 = vmatprep.mubr.bf16.mxu1 %v9566_v26  ;;  %s5994_s29 = smul.u32 192, %s525_s26  ;;  %v6402_v27 = vld [vmem:[%s9548_s1 + $0x1c] ss:$12 sps:$4 sm:$0xff]   ;;  %v6409_v28 = vld [vmem:[%s9548_s1 + $0x18] ss:$12 sps:$4 sm:$0xff]   ;;  %vm712_vm0 = vcmask 392192  }
  0x27   : > { %759 = vmatprep.subr.bf16.mxu0 %v6387_v24  ;;  %5987 = vmatprep.subr.bf16.mxu1 %v6387_v24  ;;  %v6416_v29 = vld [vmem:[%s9548_s1 + $0x4] ss:$12 sps:$4 sm:$0xff]   ;;  %v6425_v30 = vld [vmem:[%s9548_s1] ss:$12 sps:$4 sm:$0xff]   ;;  %v6459_v35 = vld [vmem:[%s9548_s1 + $0x8] ss:$12 sps:$4 sm:$0xff]  }
  0x28   : > { %760 = vmatpush1.bf16.msra.mxu0 %v6393_v25  ;;  %5990 = vmatpush1.bf16.msra.mxu1 %v6393_v25  ;;  %s6418_s20 = scalar_lea.vmem [#allocation2], %s5994_s29  ;;  %v6432_v31 = vld [vmem:[%s9548_s1 + $0x38] ss:$12 sps:$4 sm:$0xff]   ;;  %v6446_v34 = vld [vmem:[%s9548_s1 + $0x20] ss:$12 sps:$4 sm:$0xff]   ;;  %vm2593_vm1 = vcmask 523264  }
  0x29   : > { %761 = vmatprep.subr.bf16.mxu0 %v6402_v27  ;;  %5988 = vmatprep.subr.bf16.mxu1 %v6402_v27  ;;  %v6435_v32 = vld [vmem:[%s6418_s20] sm:$0xff]   ;;  %v6438_v33 = vld [vmem:[%s6418_s20 + $0x50] sm:$0xff]   ;;  %v6462_v36 = vld [vmem:[%s6418_s20 + $0x8] sm:$0xff]   ;;  %s6243_s19 = smov 64   ;;  %vm6245_vm2 = vmmov 0   ;;  %s5256_s15 = sshll.u32 %s5249_s12, 1 }
  0x2a   : > { %v6465_v37 = vld [vmem:[%s6418_s20 + $0x58] sm:$0xff]   ;;  %v6483_v39 = vld [vmem:[%s9548_s1 + $0x80] ss:$12 sps:$4 sm:$0xff]   ;;  %v6491_v40 = vld [vmem:[%s9548_s1 + $0x68] ss:$12 sps:$4 sm:$0xff]   ;;  %p562_p8 = scmp.lt.s32.totalorder %s5256_s15, 3 }
  0x2b   : > { %v6472_v38 = vld [vmem:[%s9548_s1 + $0x7c] ss:$12 sps:$4 sm:$0xff]   ;;  %v6494_v41 = vld [vmem:[%s6418_s20 + $0x10] sm:$0xff]   ;;  %v6500_v42 = vld [vmem:[%s9548_s1 + $0x78] ss:$12 sps:$4 sm:$0xff]  }
  0x2c   : > { %762 = vmatpush1.bf16.msra.mxu0 %v6409_v28  ;;  %5991 = vmatpush1.bf16.msra.mxu1 %v6409_v28  ;;  %v6506_v43 = vld [vmem:[%s9548_s1 + $0x64] ss:$12 sps:$4 sm:$0xff]   ;;  %v6517_v45 = vld [vmem:[%s9548_s1 + $0x60] ss:$12 sps:$4 sm:$0xff]   ;;  %v6043_v47 = vld [vmem:[%s6418_s20 + $0x18] sm:$0xff]   ;;  %s10150_s15 = smov (!%p562_p8, %s5256_s15), 3 }
  0x2d   : > { %763 = vmatprep.subr.bf16.mxu0 %v6416_v29  ;;  %5989 = vmatprep.subr.bf16.mxu1 %v6416_v29  ;;  %v6512_v44 = vld [vmem:[%s9548_s1 + $0x50] ss:$12 sps:$4 sm:$0xff]   ;;  %v6526_v46 = vld [vmem:[%s9548_s1 + $0x4c] ss:$12 sps:$4 sm:$0xff]   ;;  %v6535_v48 = vld [vmem:[%s6418_s20 + $0x20] sm:$0xff]  }
  0x2e   : > { %v6543_v49 = vld [vmem:[%s9548_s1 + $0x48] ss:$12 sps:$4 sm:$0xff]   ;;  %v6050_v52 = vld [vmem:[%s6418_s20 + $0x38] sm:$0xff]   ;;  %v6051_v53 = vld [vmem:[%s6418_s20 + $0x40] sm:$0xff]  }
  0x2f   : > { %v6045_v50 = vld [vmem:[%s6418_s20 + $0x28] sm:$0xff]   ;;  %v6049_v51 = vld [vmem:[%s6418_s20 + $0x30] sm:$0xff]   ;;  %v6639_v55 = vld [vmem:[%s6418_s20 + $0x60] sm:$0xff]  }
  0x30   : > { %764 = vmatpush1.bf16.msra.mxu0 %v6425_v30  ;;  %5992 = vmatpush1.bf16.msra.mxu1 %v6425_v30  ;;  %v6569_v54 = vld [vmem:[%s6418_s20 + $0x48] sm:$0xff]   ;;  %v6662_v57 = vld [vmem:[%s6418_s20 + $0x70] sm:$0xff]   ;;  %v6671_v58 = vld [vmem:[%s6418_s20 + $0x78] sm:$0xff]  }
  0x31   : > { %5847 = vmatprep.subr.bf16.mxu1 %v6432_v31  ;;  %5877 = vmatprep.subr.bf16.mxu0 %v6483_v39  ;;  %v6649_v56 = vld [vmem:[%s6418_s20 + $0x68] sm:$0xff]   ;;  %v6681_v59 = vld [vmem:[%s6418_s20 + $0x80] sm:$0xff]   ;;  %v6707_v61 = vld [vmem:[%s6418_s20 + $0x90] sm:$0xff]  }
  0x32   : > { %v6693_v60 = vld [vmem:[%s6418_s20 + $0x88] sm:$0xff]   ;;  %v6717_v62 = vld [vmem:[%s6418_s20 + $0x98] sm:$0xff]   ;;  %v6720_v63 = vld [vmem:[%s6418_s20 + $0xa0] sm:$0xff]  }
  0x33   : > { %5279 = vmatmul.mubr.msk.bf16.vlgmr.msra.gmra.mxu0 %vm712_vm0, %v6435_v32  ;;  %5289 = vmatmul.mubr.msk.bf16.vlgmr.msra.gmra.mxu1 %vm712_vm0, %v6438_v33  ;;  %v6730_v0 = vld [vmem:[%s6418_s20 + $0xa8] sm:$0xff]   ;;  %v6733_v1 = vld [vmem:[%s6418_s20 + $0xb0] sm:$0xff]   ;;  %v6755_v8 = vld [vmem:[%s6418_s20 + $0xb8] sm:$0xff]   ;;  %s5257_s20 = sshll.u32 %s10150_s15, 3 }
  0x34   : > { %5848 = vmatpush3.bf16.msra.mxu1 %v6432_v31  ;;  %791 = vmatprep.mubr.bf16.mxu0 %v9566_v26  ;;  %s565_s22 = scalar_lea.vmem %s9556_s9, %s5257_s20 }
  0x35   : > { %5849 = vmatprep.subr.bf16.mxu1 %v6446_v34  ;;  %891 = vmatprep.mubr.bf16.mxu1 %v9566_v26 }
  0x36   : > { %5878 = vmatpush3.bf16.msra.mxu0 %v6483_v39 }
  0x37   : > { %5879 = vmatprep.subr.bf16.mxu0 %v6491_v40 }
  0x38   : > { %5850 = vmatpush3.bf16.msra.mxu1 %v6446_v34 }
  0x39   : > { %5851 = vmatprep.subr.bf16.mxu1 %v6459_v35 }
  0x3a   : > { %5880 = vmatpush3.bf16.msra.mxu0 %v6491_v40 }
  0x3b   : > { %5280 = vmatmul.mubr.msk.bf16.gmra.mxu0 %vm712_vm0, %v6462_v36  ;;  %5290 = vmatmul.mubr.msk.bf16.gmra.mxu1 %vm712_vm0, %v6465_v37 }
  0x3c   : > { %5852 = vmatpush3.bf16.msra.mxu1 %v6459_v35  ;;  %801 = vmatprep.mubr.bf16.mxu0 %v9566_v26 }
  0x3d   : > { %5853 = vmatprep.mubr.msk.bf16.mxu1 %vm712_vm0, %v6435_v32  ;;  %1102 = vmatprep.subr.bf16.mxu1 %v6472_v38 }
  0x3e   : > { %5881 = vmatprep.subr.bf16.mxu0 %v6512_v44 }
  0x3f   : > { %5882 = vmatpush3.bf16.msra.mxu0 %v6512_v44 }
  0x40   : > { %1577 = vmatprep.subr.bf16.mxu0 %v6387_v24 }
  0x43   : > { %5281 = vmatmul.mubr.msk.bf16.gmra.mxu0 %vm712_vm0, %v6494_v41  ;;  %5854 = vmatmul.mubr.msk.bf16.vlgmr.msra.gmra.mxu1 %vm712_vm0, %v6462_v36 }
  0x44   : > { %1103 = vmatpush1.bf16.msra.mxu1 %v6500_v42  ;;  %811 = vmatprep.mubr.bf16.mxu0 %v9566_v26 }
  0x45   : > { %5857 = vmatprep.mubr.msk.bf16.mxu1 %vm712_vm0, %v6494_v41  ;;  %1104 = vmatprep.subr.bf16.mxu1 %v6506_v43 }
  0x48   : > { %1105 = vmatpush1.bf16.msra.mxu1 %v6517_v45 }
  0x49   : > { %1106 = vmatprep.subr.bf16.mxu1 %v6526_v46 }
  0x4b   : > { %5282 = vmatmul.mubr.msk.bf16.gmra.mxu0 %vm712_vm0, %v6043_v47  ;;  %5858 = vmatmul.mubr.msk.bf16.gmra.mxu1 %vm712_vm0, %v6043_v47 }
  0x4c   : > { %821 = vmatprep.mubr.bf16.mxu0 %v9566_v26  ;;  %5861 = vmatprep.mubr.msk.bf16.mxu1 %vm712_vm0, %v6535_v48 }
  0x4d   : > { %1107 = vmatpush1.bf16.msra.mxu1 %v6543_v49 }
  0x4e   : > { %5907 = vmatprep.subr.bf16.mxu1 %v6432_v31 }
  0x53   : > { %5283 = vmatmul.mubr.msk.bf16.gmra.mxu0 %vm712_vm0, %v6535_v48  ;;  %5862 = vmatmul.mubr.msk.bf16.gmra.mxu1 %vm712_vm0, %v6045_v50 }
  0x54   : > { %831 = vmatprep.mubr.bf16.mxu0 %v9566_v26  ;;  %5865 = vmatprep.mubr.msk.bf16.mxu1 %vm712_vm0, %v6049_v51 }
  0x5b   : > { %5284 = vmatmul.mubr.msk.bf16.gmra.mxu0 %vm712_vm0, %v6045_v50  ;;  %5866 = vmatmul.mubr.msk.bf16.gmra.mxu1 %vm712_vm0, %v6050_v52 }
  0x5c   : > { %841 = vmatprep.mubr.bf16.mxu0 %v9566_v26  ;;  %5869 = vmatprep.mubr.msk.bf16.mxu1 %vm712_vm0, %v6051_v53 }
  0x63   : > { %5285 = vmatmul.mubr.msk.bf16.gmra.mxu0 %vm712_vm0, %v6049_v51  ;;  %5870 = vmatmul.mubr.msk.bf16.gmra.mxu1 %vm712_vm0, %v6569_v54 }
  0x64   : > { %851 = vmatprep.mubr.bf16.mxu0 %v9566_v26  ;;  %5873 = vmatprep.mubr.msk.bf16.mxu1 %vm712_vm0, %v6438_v33 }
  0x6b   : > { %5286 = vmatmul.mubr.msk.bf16.gmra.mxu0 %vm712_vm0, %v6050_v52  ;;  %5874 = vmatmul.mubr.msk.bf16.gmra.mxu1 %vm712_vm0, %v6465_v37 }
  0x6c   : > { %861 = vmatprep.mubr.bf16.mxu0 %v9566_v26  ;;  %1124 = vmatprep.mubr.bf16.mxu1 %v9566_v26 }
  0x73   : > { %5287 = vmatmul.mubr.msk.bf16.gmra.mxu0 %vm712_vm0, %v6051_v53  ;;  %5324 = vmatmul.mubr.msk.bf16.vlgmr.msra.gmra.mxu1 %vm712_vm0, %v6435_v32 }
  0x74   : > { %5908 = vmatpush3.bf16.msra.mxu1 %v6432_v31  ;;  %871 = vmatprep.mubr.bf16.mxu0 %v9566_v26 }
  0x75   : > { %1134 = vmatprep.mubr.bf16.mxu1 %v9566_v26  ;;  %5909 = vmatprep.subr.bf16.mxu1 %v6446_v34 }
  0x78   : > { %5910 = vmatpush3.bf16.msra.mxu1 %v6446_v34 }
  0x79   : > { %5911 = vmatprep.subr.bf16.mxu1 %v6459_v35 }
  0x7b   : > { %5288 = vmatmul.mubr.msk.bf16.gmra.mxu0 %vm712_vm0, %v6569_v54  ;;  %5325 = vmatmul.mubr.msk.bf16.gmra.mxu1 %vm712_vm0, %v6462_v36 }
  0x7c   : > { %1144 = vmatprep.mubr.bf16.mxu1 %v9566_v26  ;;  %5883 = vmatprep.mubr.msk.bf16.mxu0 %vm712_vm0, %v6435_v32 }
  0x7d   : > { %5912 = vmatpush3.bf16.msra.mxu1 %v6459_v35 }
  0x7e   : > { %1931 = vmatprep.subr.bf16.mxu1 %v6472_v38 }
  0x83   : > { %5326 = vmatmul.mubr.msk.bf16.gmra.mxu1 %vm712_vm0, %v6494_v41  ;;  %5884 = vmatmul.mubr.msk.bf16.vlgmr.msra.gmra.mxu0 %vm712_vm0, %v6462_v36 }
  0x84   : > { %1154 = vmatprep.mubr.bf16.mxu1 %v9566_v26  ;;  %5887 = vmatprep.mubr.msk.bf16.mxu0 %vm712_vm0, %v6494_v41 }
  0x85   : > { %1578 = vmatpush1.bf16.msra.mxu0 %v6393_v25 }
  0x86   : > { %1579 = vmatprep.subr.bf16.mxu0 %v6402_v27 }
  0x89   : > { %1580 = vmatpush1.bf16.msra.mxu0 %v6409_v28 }
  0x8a   : > { %1581 = vmatprep.subr.bf16.mxu0 %v6416_v29 }
  0x8b   : > { %5327 = vmatmul.mubr.msk.bf16.gmra.mxu1 %vm712_vm0, %v6043_v47  ;;  %5888 = vmatmul.mubr.msk.bf16.gmra.mxu0 %vm712_vm0, %v6043_v47 }
  0x8c   : > { %1164 = vmatprep.mubr.bf16.mxu1 %v9566_v26  ;;  %5891 = vmatprep.mubr.msk.bf16.mxu0 %vm712_vm0, %v6535_v48 }
  0x8d   : > { %1582 = vmatpush1.bf16.msra.mxu0 %v6425_v30 }
  0x8e   : > { %5937 = vmatprep.subr.bf16.mxu0 %v6483_v39 }
  0x93   : > { %5328 = vmatmul.mubr.msk.bf16.gmra.mxu1 %vm712_vm0, %v6535_v48  ;;  %5892 = vmatmul.mubr.msk.bf16.gmra.mxu0 %vm712_vm0, %v6045_v50 }
  0x94   : > { %1174 = vmatprep.mubr.bf16.mxu1 %v9566_v26  ;;  %5895 = vmatprep.mubr.msk.bf16.mxu0 %vm712_vm0, %v6049_v51 }
  0x9b   : > { %5329 = vmatmul.mubr.msk.bf16.gmra.mxu1 %vm712_vm0, %v6045_v50  ;;  %5896 = vmatmul.mubr.msk.bf16.gmra.mxu0 %vm712_vm0, %v6050_v52 }
  0x9c   : > { %1184 = vmatprep.mubr.bf16.mxu1 %v9566_v26  ;;  %5899 = vmatprep.mubr.msk.bf16.mxu0 %vm712_vm0, %v6051_v53 }
  0xa3   : > { %5330 = vmatmul.mubr.msk.bf16.gmra.mxu1 %vm712_vm0, %v6049_v51  ;;  %5900 = vmatmul.mubr.msk.bf16.gmra.mxu0 %vm712_vm0, %v6569_v54 }
  0xa4   : > { %1194 = vmatprep.mubr.bf16.mxu1 %v9566_v26  ;;  %5903 = vmatprep.mubr.msk.bf16.mxu0 %vm712_vm0, %v6438_v33 }
  0xab   : > { %5331 = vmatmul.mubr.msk.bf16.gmra.mxu1 %vm712_vm0, %v6050_v52  ;;  %5904 = vmatmul.mubr.msk.bf16.gmra.mxu0 %vm712_vm0, %v6465_v37  ;;  %v6071_v52 = vld [vmem:[%s9550_s3 + $0x38] sm:$0xff]  }
  0xac   : > { %1204 = vmatprep.mubr.bf16.mxu1 %v9566_v26  ;;  %1599 = vmatprep.mubr.bf16.mxu0 %v9566_v26 }
  0xb3   : > { %5332 = vmatmul.mubr.msk.bf16.gmra.mxu1 %vm712_vm0, %v6051_v53  ;;  %5384 = vmatmul.mubr.msk.bf16.vlgmr.msra.gmra.mxu0 %vm712_vm0, %v6639_v55 }
  0xb4   : > { %1214 = vmatprep.mubr.bf16.mxu1 %v9566_v26  ;;  %1609 = vmatprep.mubr.bf16.mxu0 %v9566_v26 }
  0xb5   : > { %5938 = vmatpush3.bf16.msra.mxu0 %v6483_v39 }
  0xb6   : > { %5939 = vmatprep.subr.bf16.mxu0 %v6491_v40 }
  0xb9   : > { %5940 = vmatpush3.bf16.msra.mxu0 %v6491_v40 }
  0xba   : > { %5941 = vmatprep.subr.bf16.mxu0 %v6512_v44 }
  0xbb   : > { %5333 = vmatmul.mubr.msk.bf16.gmra.mxu1 %vm712_vm0, %v6569_v54  ;;  %5385 = vmatmul.mubr.msk.bf16.gmra.mxu0 %vm712_vm0, %v6649_v56 }
  0xbc   : > { %1224 = vmatprep.mubr.bf16.mxu1 %v9566_v26  ;;  %1619 = vmatprep.mubr.bf16.mxu0 %v9566_v26 }
  0xbd   : > { %5942 = vmatpush3.bf16.msra.mxu0 %v6512_v44 }
  0xbe   : > { %2618 = vmatprep.subr.bf16.mxu0 %v9566_v26 }
  0xc3   : > { %5334 = vmatmul.mubr.msk.bf16.gmra.mxu1 %vm712_vm0, %v6438_v33  ;;  %5386 = vmatmul.mubr.msk.bf16.gmra.mxu0 %vm712_vm0, %v6662_v57 }
  0xc4   : > { %1234 = vmatprep.mubr.bf16.mxu1 %v9566_v26  ;;  %1629 = vmatprep.mubr.bf16.mxu0 %v9566_v26 }
  0xcb   : > { %5335 = vmatmul.mubr.msk.bf16.gmra.mxu1 %vm712_vm0, %v6465_v37  ;;  %5387 = vmatmul.mubr.msk.bf16.gmra.mxu0 %vm712_vm0, %v6671_v58 }
  0xcc   : > { %1639 = vmatprep.mubr.bf16.mxu0 %v9566_v26  ;;  %5913 = vmatprep.mubr.msk.bf16.mxu1 %vm712_vm0, %v6639_v55 }
  0xd3   : > { %5388 = vmatmul.mubr.msk.bf16.gmra.mxu0 %vm712_vm0, %v6681_v59  ;;  %5914 = vmatmul.mubr.msk.bf16.vlgmr.msra.gmra.mxu1 %vm712_vm0, %v6649_v56 }
  0xd4   : > { %1932 = vmatpush1.bf16.msra.mxu1 %v6500_v42  ;;  %1649 = vmatprep.mubr.bf16.mxu0 %v9566_v26 }
  0xd5   : > { %5917 = vmatprep.mubr.msk.bf16.mxu1 %vm712_vm0, %v6662_v57  ;;  %1933 = vmatprep.subr.bf16.mxu1 %v6506_v43 }
  0xd8   : > { %1934 = vmatpush1.bf16.msra.mxu1 %v6517_v45 }
  0xd9   : > { %1935 = vmatprep.subr.bf16.mxu1 %v6526_v46 }
  0xdb   : > { %5389 = vmatmul.mubr.msk.bf16.gmra.mxu0 %vm712_vm0, %v6693_v60  ;;  %5918 = vmatmul.mubr.msk.bf16.gmra.mxu1 %vm712_vm0, %v6671_v58 }
  0xdc   : > { %1659 = vmatprep.mubr.bf16.mxu0 %v9566_v26  ;;  %5921 = vmatprep.mubr.msk.bf16.mxu1 %vm712_vm0, %v6681_v59 }
  0xdd   : > { %1936 = vmatpush1.bf16.msra.mxu1 %v6543_v49 }
  0xde   : > { %2793 = vmatprep.subr.bf16.mxu1 %v9566_v26 }
  0xe3   : > { %5390 = vmatmul.mubr.msk.bf16.gmra.mxu0 %vm712_vm0, %v6707_v61  ;;  %5922 = vmatmul.mubr.msk.bf16.gmra.mxu1 %vm712_vm0, %v6693_v60 }
  0xe4   : > { %1669 = vmatprep.mubr.bf16.mxu0 %v9566_v26  ;;  %5925 = vmatprep.mubr.msk.bf16.mxu1 %vm712_vm0, %v6707_v61 }
  0xeb   : > { %5391 = vmatmul.mubr.msk.bf16.gmra.mxu0 %vm712_vm0, %v6717_v62  ;;  %5926 = vmatmul.mubr.msk.bf16.gmra.mxu1 %vm712_vm0, %v6717_v62 }
  0xec   : > { %1679 = vmatprep.mubr.bf16.mxu0 %v9566_v26  ;;  %5929 = vmatprep.mubr.msk.bf16.mxu1 %vm712_vm0, %v6720_v63 }
  0xf3   : > { %v6735_v2 = vpop.f32.mrf.mxu0  ;;  %v6737_v3 = vpop.f32.mrf.mxu1  ;;  %5392 = vmatmul.mubr.msk.bf16.gmra.mxu0 %vm712_vm0, %v6720_v63  ;;  %5930 = vmatmul.mubr.msk.bf16.gmra.mxu1 %vm712_vm0, %v6730_v0 }
  0xf4   : > { %9685 = vst [vmem:[#allocation3_spill] sm:$0xff] %v6737_v3  ;;  %1689 = vmatprep.mubr.bf16.mxu0 %v9566_v26  ;;  %5933 = vmatprep.mubr.msk.bf16.mxu1 %vm712_vm0, %v6733_v1 }
  0xf5   : > { %v6746_v4 = vpop.f32.mrf.mxu0  ;;  %v6748_v5 = vpop.f32.mrf.mxu1 }
  0xf6   : > { %9686 = vst [vmem:[#allocation4_spill] sm:$0xff] %v6748_v5  ;;  %v6074_v5 = vld [vmem:[%s9550_s3 + $0x20] sm:$0xff]  }
  0xf7   : > { %v6750_v6 = vpop.f32.mrf.mxu0  ;;  %v6752_v7 = vpop.f32.mrf.mxu1 }
  0xf8   : > { %9687 = vst [vmem:[#allocation5_spill] sm:$0xff] %v6752_v7 }
  0xf9   : > { %v6757_v9 = vpop.f32.mrf.mxu0  ;;  %v6759_v10 = vpop.f32.mrf.mxu1 }
  0xfa   : > { %9688 = vst [vmem:[#allocation6_spill] sm:$0xff] %v6757_v9  ;;  %9689 = vst [vmem:[#allocation7_spill] sm:$0xff] %v6759_v10 }
  0xfb   : > { %v6761_v11 = vpop.f32.mrf.mxu0  ;;  %v6763_v12 = vpop.f32.mrf.mxu1  ;;  %5393 = vmatmul.mubr.msk.bf16.gmra.mxu0 %vm712_vm0, %v6730_v0  ;;  %5934 = vmatmul.mubr.msk.bf16.gmra.mxu1 %vm712_vm0, %v6755_v8 }
  0xfc   : > { %9690 = vst [vmem:[#allocation8_spill] sm:$0xff] %v6761_v11  ;;  %9691 = vst [vmem:[#allocation9_spill] sm:$0xff] %v6763_v12  ;;  %1699 = vmatprep.mubr.bf16.mxu0 %v9566_v26  ;;  %1953 = vmatprep.mubr.bf16.mxu1 %v9566_v26  ;;  %v7043_v11 = vld [vmem:[%s9550_s3 + $0x78] sm:$0xff]  }
  0xfd   : > { %v6771_v13 = vpop.f32.mrf.mxu0  ;;  %v6773_v14 = vpop.f32.mrf.mxu1  ;;  %9746 = vst [vmem:[#allocation63_spill] sm:$0xff] %v7043_v11 }
  0xfe   : > { %9692 = vst [vmem:[#allocation10_spill] sm:$0xff] %v6771_v13  ;;  %9693 = vst [vmem:[#allocation11_spill] sm:$0xff] %v6773_v14  ;;  %v6086_v13 = vld [vmem:[%s9550_s3 + $0x50] sm:$0xff]  }
  0xff   : > { %v6775_v15 = vpop.f32.mrf.mxu0  ;;  %v6777_v16 = vpop.f32.mrf.mxu1 }
 0x100   : > { %9694 = vst [vmem:[#allocation12_spill] sm:$0xff] %v6775_v15  ;;  %9695 = vst [vmem:[#allocation13_spill] sm:$0xff] %v6777_v16  ;;  %v2277_v15 = vlaneseq }
 0x101   : > { %v6779_v17 = vpop.f32.mrf.mxu0  ;;  %v6781_v18 = vpop.f32.mrf.mxu1 }
 0x102   : > { %9696 = vst [vmem:[#allocation14_spill] sm:$0xff] %v6779_v17  ;;  %9697 = vst [vmem:[#allocation15_spill] sm:$0xff] %v6781_v18 }
 0x103   : > { %v6783_v19 = vpop.f32.mrf.mxu0  ;;  %v6785_v20 = vpop.f32.mrf.mxu1  ;;  %5394 = vmatmul.mubr.msk.bf16.gmra.mxu0 %vm712_vm0, %v6733_v1  ;;  %5408 = vmatmul.mubr.msk.bf16.vlgmr.msra.gmra.mxu1 %vm712_vm0, %v6639_v55 }
 0x104   : > { %9698 = vst [vmem:[#allocation16_spill] sm:$0xff] %v6783_v19  ;;  %1709 = vmatprep.mubr.bf16.mxu0 %v9566_v26  ;;  %1963 = vmatprep.mubr.bf16.mxu1 %v9566_v26 }
 0x105   : > { %v6793_v21 = vpop.f32.mrf.mxu0  ;;  %v6795_v22 = vpop.f32.mrf.mxu1  ;;  %2794 = vmatpush1.bf16.msra.mxu1 %v6071_v52  ;;  %v6073_v52 = vld [vmem:[%s9550_s3 + $0x28] sm:$0xff]  }
 0x106   : > { %9699 = vst [vmem:[#allocation17_spill] sm:$0xff] %v6793_v21  ;;  %2795 = vmatprep.subr.bf16.mxu1 %v9566_v26 }
 0x107   : > { %v6797_v23 = vpop.f32.mrf.mxu0  ;;  %v6799_v24 = vpop.f32.mrf.mxu1 }
 0x108   : > { %9700 = vst [vmem:[#allocation18_spill] sm:$0xff] %v6797_v23 }
 0x109   : > { %v6801_v25 = vpop.f32.mrf.mxu0  ;;  %v6803_v27 = vpop.f32.mrf.mxu1 }
 0x10a   : > { %9701 = vst [vmem:[#allocation19_spill] sm:$0xff] %v6801_v25  ;;  %9702 = vst [vmem:[#allocation20_spill] sm:$0xff] %v6803_v27  ;;  %v6992_v27 = vld [vmem:[%s9550_s3 + $0x88] sm:$0xff]  }
 0x10b   : > { %v6805_v28 = vpop.f32.mrf.mxu0  ;;  %v6807_v29 = vpop.f32.mrf.mxu1  ;;  %5395 = vmatmul.mubr.msk.bf16.gmra.mxu0 %vm712_vm0, %v6755_v8  ;;  %5409 = vmatmul.mubr.msk.bf16.gmra.mxu1 %vm712_vm0, %v6649_v56  ;;  %9736 = vst [vmem:[#allocation53_spill] sm:$0xff] %v6992_v27 }
 0x10c   : > { %9703 = vst [vmem:[#allocation21_spill] sm:$0xff] %v6805_v28  ;;  %1973 = vmatprep.mubr.bf16.mxu1 %v9566_v26  ;;  %5943 = vmatprep.mubr.msk.bf16.mxu0 %vm712_vm0, %v6639_v55 }
 0x10d   : > { %v6816_v30 = vpop.f32.mrf.mxu0  ;;  %v6818_v31 = vpop.f32.mrf.mxu1 }
 0x10e   : > { %9704 = vst [vmem:[#allocation22_spill] sm:$0xff] %v6816_v30  ;;  %v7143_v30 = vshrl.u32 %v2277_v15, 7  ;;  %v7158_v15 = vld [vmem:[%s9550_s3 + $0xb8] sm:$0xff]  }
 0x10f   : > { %v6820_v32 = vpop.f32.mrf.mxu0  ;;  %v6822_v33 = vpop.f32.mrf.mxu1  ;;  %9759 = vst [vmem:[#allocation76_spill] sm:$0xff] %v7158_v15 }
 0x110   : > { %9705 = vst [vmem:[#allocation23_spill] sm:$0xff] %v6820_v32 }
 0x111   : > { %v6824_v34 = vpop.f32.mrf.mxu0  ;;  %v6826_v35 = vpop.f32.mrf.mxu1 }
 0x112   : > { %9706 = vst [vmem:[#allocation24_spill] sm:$0xff] %v6824_v34  ;;  %9707 = vst [vmem:[#allocation25_spill] sm:$0xff] %v6826_v35  ;;  %v9735_v34 = vmov 0  }
 0x113   : > { %v6828_v36 = vpop.f32.mrf.mxu0  ;;  %v6830_v37 = vpop.f32.mrf.mxu1  ;;  %5410 = vmatmul.mubr.msk.bf16.gmra.mxu1 %vm712_vm0, %v6662_v57  ;;  %5944 = vmatmul.mubr.msk.bf16.vlgmr.msra.gmra.mxu0 %vm712_vm0, %v6649_v56 }
 0x114   : > { %9708 = vst [vmem:[#allocation26_spill] sm:$0xff] %v6828_v36  ;;  %1983 = vmatprep.mubr.bf16.mxu1 %v9566_v26  ;;  %5947 = vmatprep.mubr.msk.bf16.mxu0 %vm712_vm0, %v6662_v57  ;;  %v6072_v57 = vld [vmem:[%s9550_s3 + $0x30] sm:$0xff]  }
 0x115   : > { %v6839_v38 = vpop.f32.mrf.mxu0  ;;  %v6841_v39 = vpop.f32.mrf.mxu1  ;;  %2796 = vmatpush1.bf16.msra.mxu1 %v6072_v57 }
 0x116   : > { %9709 = vst [vmem:[#allocation27_spill] sm:$0xff] %v6839_v38  ;;  %2797 = vmatprep.subr.bf16.mxu1 %v9566_v26 }
 0x117   : > { %v6843_v40 = vpop.f32.mrf.mxu0  ;;  %v6845_v41 = vpop.f32.mrf.mxu1 }
 0x118   : > { %9710 = vst [vmem:[#allocation28_spill] sm:$0xff] %v6843_v40 }
 0x119   : > { %v6847_v42 = vpop.f32.mrf.mxu0  ;;  %v6849_v43 = vpop.f32.mrf.mxu1  ;;  %2798 = vmatpush1.bf16.msra.mxu1 %v6073_v52  ;;  %v6939_v52 = vld [vmem:[%s9550_s3 + $0x98] sm:$0xff]  }
 0x11a   : > { %9711 = vst [vmem:[#allocation29_spill] sm:$0xff] %v6847_v42  ;;  %9712 = vst [vmem:[#allocation30_spill] sm:$0xff] %v6849_v43  ;;  %2799 = vmatprep.subr.bf16.mxu1 %v9566_v26  ;;  %2619 = vmatpush1.bf16.msra.mxu0 %v6939_v52  ;;  %v6078_v43 = vld [vmem:[%s9550_s3 + $0x10] sm:$0xff]  }
 0x11b   : > { %v6851_v44 = vpop.f32.mrf.mxu0  ;;  %v6853_v45 = vpop.f32.mrf.mxu1  ;;  %5411 = vmatmul.mubr.msk.bf16.gmra.mxu1 %vm712_vm0, %v6671_v58  ;;  %5948 = vmatmul.mubr.msk.bf16.gmra.mxu0 %vm712_vm0, %v6671_v58  ;;  %9728 = vst [vmem:[#allocation46_spill] sm:$0xff] %v6939_v52 }
 0x11c   : > { %9713 = vst [vmem:[#allocation31_spill] sm:$0xff] %v6851_v44  ;;  %1993 = vmatprep.mubr.bf16.mxu1 %v9566_v26  ;;  %5951 = vmatprep.mubr.msk.bf16.mxu0 %vm712_vm0, %v6681_v59 }
 0x11d   : > { %v6862_v46 = vpop.f32.mrf.mxu0  ;;  %v6864_v47 = vpop.f32.mrf.mxu1  ;;  %2800 = vmatpush1.bf16.msra.mxu1 %v6074_v5  ;;  %2620 = vmatprep.subr.bf16.mxu0 %v9566_v26  ;;  %v6969_v5 = vld [vmem:[%s9550_s3 + $0x90] sm:$0xff]  }
 0x11e   : > { %9714 = vst [vmem:[#allocation32_spill] sm:$0xff] %v6862_v46  ;;  %2801 = vmatprep.subr.bf16.mxu1 %v9566_v26  ;;  %9731 = vst [vmem:[#allocation49_spill] sm:$0xff] %v6969_v5  ;;  %2621 = vmatpush1.bf16.msra.mxu0 %v6969_v5 }
 0x11f   : > { %v6866_v48 = vpop.f32.mrf.mxu0  ;;  %v6868_v49 = vpop.f32.mrf.mxu1  ;;  %2622 = vmatprep.subr.bf16.mxu0 %v9735_v34 }
 0x120   : > { %9715 = vst [vmem:[#allocation33_spill] sm:$0xff] %v6866_v48 }
 0x121   : > { %v6870_v50 = vpop.f32.mrf.mxu0  ;;  %v6872_v51 = vpop.f32.mrf.mxu1 }
 0x122   : > { %9716 = vst [vmem:[#allocation34_spill] sm:$0xff] %v6870_v50  ;;  %9717 = vst [vmem:[#allocation35_spill] sm:$0xff] %v6872_v51  ;;  %2623 = vmatpush1.bf16.msra.mxu0 %v6992_v27 }
 0x123   : > { %v6877_v53 = vpop.f32.mrf.mxu0  ;;  %v6879_v54 = vpop.f32.mrf.mxu1  ;;  %5412 = vmatmul.mubr.msk.bf16.gmra.mxu1 %vm712_vm0, %v6681_v59  ;;  %5952 = vmatmul.mubr.msk.bf16.gmra.mxu0 %vm712_vm0, %v6693_v60 }
 0x124   : > { %9718 = vst [vmem:[#allocation36_spill] sm:$0xff] %v6877_v53  ;;  %2003 = vmatprep.mubr.bf16.mxu1 %v9566_v26  ;;  %5955 = vmatprep.mubr.msk.bf16.mxu0 %vm712_vm0, %v6707_v61 }
 0x125   : > { %v6888_v55 = vpop.f32.mrf.mxu0  ;;  %v6890_v56 = vpop.f32.mrf.mxu1  ;;  %2624 = vmatprep.subr.bf16.mxu0 %v9735_v34 }
 0x126   : > { %9719 = vst [vmem:[#allocation37_spill] sm:$0xff] %v6888_v55 }
 0x127   : > { %v6896_v58 = vpop.f32.mrf.mxu0  ;;  %v6898_v59 = vpop.f32.mrf.mxu1 }
 0x128   : > { %9720 = vst [vmem:[#allocation38_spill] sm:$0xff] %v6896_v58 }
 0x129   : > { %v6900_v18 = vpop.f32.mrf.mxu0  ;;  %v6902_v16 = vpop.f32.mrf.mxu1 }
 0x12a   : > { %9721 = vst [vmem:[#allocation39_spill] sm:$0xff] %v6900_v18  ;;  %9722 = vst [vmem:[#allocation40_spill] sm:$0xff] %v6902_v16  ;;  %v6076_v18 = vld [vmem:[%s9550_s3 + $0x18] sm:$0xff]  }
 0x12b   : > { %v6908_v14 = vpop.f32.mrf.mxu0  ;;  %v6910_v12 = vpop.f32.mrf.mxu1  ;;  %5413 = vmatmul.mubr.msk.bf16.gmra.mxu1 %vm712_vm0, %v6693_v60  ;;  %5956 = vmatmul.mubr.msk.bf16.gmra.mxu0 %vm712_vm0, %v6717_v62 }
 0x12c   : > { %9723 = vst [vmem:[#allocation41_spill] sm:$0xff] %v6908_v14  ;;  %2013 = vmatprep.mubr.bf16.mxu1 %v9566_v26  ;;  %5959 = vmatprep.mubr.msk.bf16.mxu0 %vm712_vm0, %v6720_v63 }
 0x12d   : > { %v6919_v57 = vpop.f32.mrf.mxu0  ;;  %v6921_v10 = vpop.f32.mrf.mxu1  ;;  %2802 = vmatpush1.bf16.msra.mxu1 %v6076_v18  ;;  %v6080_v18 = vld [vmem:[%s9550_s3 + $0x8] sm:$0xff]  }
 0x12e   : > { %9724 = vst [vmem:[#allocation42_spill] sm:$0xff] %v6919_v57  ;;  %2803 = vmatprep.subr.bf16.mxu1 %v9566_v26 }
 0x12f   : > { %v6927_v60 = vpop.f32.mrf.mxu0  ;;  %v6929_v7 = vpop.f32.mrf.mxu1 }
 0x130   : > { %9725 = vst [vmem:[#allocation43_spill] sm:$0xff] %v6927_v60 }
 0x131   : > { %v6931_v3 = vpop.f32.mrf.mxu0  ;;  %v6933_v16 = vpop.f32.mrf.mxu1  ;;  %2804 = vmatpush1.bf16.msra.mxu1 %v6078_v43  ;;  %v6082_v43 = vld [vmem:[%s9550_s3] sm:$0xff]  }
 0x132   : > { %9726 = vst [vmem:[#allocation44_spill] sm:$0xff] %v6931_v3  ;;  %9727 = vst [vmem:[#allocation45_spill] sm:$0xff] %v6933_v16  ;;  %2805 = vmatprep.subr.bf16.mxu1 %v9735_v34 }
 0x133   : > { %v6944_v51 = vpop.f32.mrf.mxu0  ;;  %v6946_v50 = vpop.f32.mrf.mxu1  ;;  %5414 = vmatmul.mubr.msk.bf16.gmra.mxu1 %vm712_vm0, %v6707_v61  ;;  %5960 = vmatmul.mubr.msk.bf16.gmra.mxu0 %vm712_vm0, %v6730_v0 }
 0x134   : > { %9729 = vst [vmem:[#allocation47_spill] sm:$0xff] %v6944_v51  ;;  %2023 = vmatprep.mubr.bf16.mxu1 %v9566_v26  ;;  %5963 = vmatprep.mubr.msk.bf16.mxu0 %vm712_vm0, %v6733_v1 }
 0x135   : > { %v6957_v16 = vpop.f32.mrf.mxu0  ;;  %v6959_v3 = vpop.f32.mrf.mxu1  ;;  %2806 = vmatpush1.bf16.msra.mxu1 %v6080_v18  ;;  %v6084_v18 = vld [vmem:[%s9550_s3 + $0x58] sm:$0xff]  }
 0x136   : > { %9730 = vst [vmem:[#allocation48_spill] sm:$0xff] %v6957_v16  ;;  %2807 = vmatprep.subr.bf16.mxu1 %v9735_v34 }
 0x137   : > { %v6974_v42 = vpop.f32.mrf.mxu0  ;;  %v6976_v52 = vpop.f32.mrf.mxu1 }
 0x138   : > { %9732 = vst [vmem:[#allocation50_spill] sm:$0xff] %v6974_v42 }
 0x139   : > { %v6980_v61 = vpop.f32.mrf.mxu0  ;;  %v6982_v35 = vpop.f32.mrf.mxu1  ;;  %2808 = vmatpush1.bf16.msra.mxu1 %v6082_v43  ;;  %v7073_v43 = vld [vmem:[%s9550_s3 + $0x70] sm:$0xff]  }
 0x13a   : > { %9733 = vst [vmem:[#allocation51_spill] sm:$0xff] %v6980_v61  ;;  %9734 = vst [vmem:[#allocation52_spill] sm:$0xff] %v6982_v35  ;;  %2817 = vmatprep.subr.bf16.mxu1 %v9735_v34 }
 0x13b   : > { %v6997_v61 = vpop.f32.mrf.mxu0  ;;  %v6999_v5 = vpop.f32.mrf.mxu1  ;;  %5415 = vmatmul.mubr.msk.bf16.gmra.mxu1 %vm712_vm0, %v6717_v62  ;;  %5964 = vmatmul.mubr.msk.bf16.gmra.mxu0 %vm712_vm0, %v6755_v8  ;;  %v7020_v62 = vld [vmem:[%s9550_s3 + $0x80] sm:$0xff]   ;;  %9749 = vst [vmem:[#allocation66_spill] sm:$0xff] %v7073_v43 }
 0x13c   : > { %9737 = vst [vmem:[#allocation54_spill] sm:$0xff] %v6997_v61  ;;  %9738 = vst [vmem:[#allocation55_spill] sm:$0xff] %v6999_v5  ;;  %2033 = vmatprep.mubr.bf16.mxu1 %v9735_v34  ;;  %2625 = vmatpush1.bf16.msra.mxu0 %v7020_v62 }
 0x13d   : > { %v7008_v26 = vpop.f32.mrf.mxu0  ;;  %v7010_v35 = vpop.f32.mrf.mxu1  ;;  %9741 = vst [vmem:[#allocation58_spill] sm:$0xff] %v7020_v62  ;;  %2626 = vmatprep.subr.bf16.mxu0 %v9735_v34  ;;  %2818 = vmatpush2.bf16.msra.mxu1 %v6084_v18 }
 0x13e   : > { %9739 = vst [vmem:[#allocation56_spill] sm:$0xff] %v7008_v26  ;;  %9740 = vst [vmem:[#allocation57_spill] sm:$0xff] %v7010_v35  ;;  %2819 = vmatprep.subr.bf16.mxu1 %v9735_v34 }
 0x13f   : > { %v7025_v5 = vpop.f32.mrf.mxu0  ;;  %v7027_v27 = vpop.f32.mrf.mxu1 }
 0x140   : > { %9742 = vst [vmem:[#allocation59_spill] sm:$0xff] %v7025_v5  ;;  %9743 = vst [vmem:[#allocation60_spill] sm:$0xff] %v7027_v27  ;;  %2627 = vmatpush1.bf16.msra.mxu0 %v7043_v11  ;;  %v6088_v27 = vld [vmem:[%s9550_s3 + $0x48] sm:$0xff]  }
 0x141   : > { %v7031_v9 = vpop.f32.mrf.mxu0  ;;  %v7033_v35 = vpop.f32.mrf.mxu1  ;;  %2628 = vmatprep.subr.bf16.mxu0 %v9735_v34  ;;  %2820 = vmatpush2.bf16.msra.mxu1 %v6086_v13 }
 0x142   : > { %9744 = vst [vmem:[#allocation61_spill] sm:$0xff] %v7031_v9  ;;  %9745 = vst [vmem:[#allocation62_spill] sm:$0xff] %v7033_v35  ;;  %2821 = vmatprep.subr.bf16.mxu1 %v9735_v34 }
 0x143   : > { %v7048_v9 = vpop.f32.mrf.mxu1  ;;  %v7050_v62 = vpop.f32.mrf.mxu0  ;;  %5416 = vmatmul.mubr.msk.bf16.gmra.mxu1 %vm712_vm0, %v6720_v63 }
 0x144   : > { %9747 = vst [vmem:[#allocation64_spill] sm:$0xff] %v7048_v9  ;;  %2043 = vmatprep.mubr.bf16.mxu1 %v9735_v34  ;;  %2629 = vmatpush1.bf16.msra.mxu0 %v7073_v43  ;;  %v7096_v9 = vld [vmem:[%s9550_s3 + $0x68] sm:$0xff]  }
 0x145   : > { %v7059_v35 = vpop.f32.mrf.mxu1  ;;  %v7061_v17 = vpop.f32.mrf.mxu0  ;;  %2630 = vmatprep.subr.bf16.mxu0 %v9735_v34  ;;  %9752 = vst [vmem:[#allocation69_spill] sm:$0xff] %v7096_v9  ;;  %2822 = vmatpush2.bf16.msra.mxu1 %v6088_v27  ;;  %v6090_v27 = vld [vmem:[%s9550_s3 + $0x40] sm:$0xff]  }
 0x146   : > { %9748 = vst [vmem:[#allocation65_spill] sm:$0xff] %v7059_v35  ;;  %2823 = vmatprep.subr.bf16.mxu1 %v9735_v34 }
 0x147   : > { %v7078_v18 = vpop.f32.mrf.mxu1  ;;  %v7080_v11 = vpop.f32.mrf.mxu0 }
 0x148   : > { %9750 = vst [vmem:[#allocation67_spill] sm:$0xff] %v7078_v18  ;;  %2631 = vmatpush1.bf16.msra.mxu0 %v7096_v9 }
 0x149   : > { %v7086_v35 = vpop.f32.mrf.mxu1  ;;  %v7088_v21 = vpop.f32.mrf.mxu0  ;;  %2632 = vmatprep.subr.bf16.mxu0 %v9735_v34  ;;  %2824 = vmatpush2.bf16.msra.mxu1 %v6090_v27 }
 0x14a   : > { %9751 = vst [vmem:[#allocation68_spill] sm:$0xff] %v7088_v21  ;;  %3195 = vmatprep.subr.bf16.mxu1 %v9735_v34  ;;  %v2287_v21 = vsub.s32 2, %v7143_v30 }
 0x14b   : > { %v7101_v63 = vpop.f32.mrf.mxu1  ;;  %v7103_v18 = vpop.f32.mrf.mxu0  ;;  %5417 = vmatmul.mubr.msk.bf16.gmra.mxu1 %vm712_vm0, %v6730_v0 }
 0x14c   : > { %9753 = vst [vmem:[#allocation70_spill] sm:$0xff] %v7101_v63  ;;  %2053 = vmatprep.mubr.bf16.mxu1 %v9735_v34  ;;  %v7130_v63 = vld [vmem:[%s9550_s3 + $0x60] sm:$0xff]  }
 0x14d   : > { %v7112_v23 = vpop.f32.mrf.mxu1  ;;  %v7114_v19 = vpop.f32.mrf.mxu0  ;;  %9756 = vst [vmem:[#allocation73_spill] sm:$0xff] %v7130_v63  ;;  %2633 = vmatpush1.bf16.msra.mxu0 %v7130_v63  ;;  %v7168_v63 = vld [vmem:[%s9549_s2] sm:$0x7] }
 0x14e   : > { %9754 = vst [vmem:[#allocation71_spill] sm:$0xff] %v7112_v23  ;;  %2642 = vmatprep.subr.bf16.mxu0 %v9735_v34  ;;  %v7175_v32 = vrot.slane %v7168_v63, %v2287_v21  ;;  %v6093_v21 = vld [vmem:[%s9550_s3 + $0xa8] sm:$0xff]  }
 0x14f   : > { %v7123_v13 = vpop.f32.mrf.mxu1  ;;  %v7125_v43 = vpop.f32.mrf.mxu0 }
 0x150   : > { %9755 = vst [vmem:[#allocation72_spill] sm:$0xff] %v7123_v13  ;;  %9761 = vst [vmem:[#allocation78_spill] sm:$0xff] %v7175_v32 }
 0x151   : > { %v7139_v9 = vpop.f32.mrf.mxu1  ;;  %v7141_v23 = vpop.f32.mrf.mxu0  ;;  %2643 = vmatpush2.bf16.msra.mxu0 %v7158_v15  ;;  %v6094_v15 = vld [vmem:[%s9550_s3 + $0xa0] sm:$0xff]  }
 0x152   : > { %9757 = vst [vmem:[#allocation74_spill] sm:$0xff] %v7141_v23  ;;  %2644 = vmatprep.subr.bf16.mxu0 %v9735_v34  ;;  %v6092_v23 = vld [vmem:[%s9550_s3 + $0xb0] sm:$0xff]  }
 0x153   : > { %v7148_v28 = vpop.f32.mrf.mxu1  ;;  %v7150_v25 = vpop.f32.mrf.mxu0  ;;  %5418 = vmatmul.mubr.msk.bf16.gmra.mxu1 %vm712_vm0, %v6733_v1 }
 0x154   : > { %9758 = vst [vmem:[#allocation75_spill] sm:$0xff] %v7148_v28  ;;  %2063 = vmatprep.mubr.bf16.mxu1 %v9735_v34 }
 0x155   : > { %v7170_v1 = vpop.f32.mrf.mxu1  ;;  %v7172_v13 = vpop.f32.mrf.mxu0  ;;  %2645 = vmatpush2.bf16.msra.mxu0 %v6092_v23 }
 0x156   : > { %9760 = vst [vmem:[#allocation77_spill] sm:$0xff] %v7170_v1  ;;  %2646 = vmatprep.subr.bf16.mxu0 %v9735_v34 }
 0x157   : > { %v7183_v28 = vpop.f32.mrf.mxu1  ;;  %v7185_v36 = vpop.f32.mrf.mxu0 }
 0x158   : > { %9762 = vst [vmem:[#allocation79_spill] sm:$0xff] %v7183_v28 }
 0x159   : > { %v7194_v27 = vpop.f32.mrf.mxu1  ;;  %v7196_v32 = vpop.f32.mrf.mxu0  ;;  %2647 = vmatpush2.bf16.msra.mxu0 %v6093_v21 }
 0x15a   : > { %9763 = vst [vmem:[#allocation80_spill] sm:$0xff] %v7194_v27  ;;  %9764 = vst [vmem:[#allocation81_spill] sm:$0xff] %v7196_v32  ;;  %2648 = vmatprep.subr.bf16.mxu0 %v9735_v34 }
 0x15b   : > { %v7199_v0 = vpop.f32.mrf.mxu1  ;;  %v7201_v1 = vpop.f32.mrf.mxu0  ;;  %5419 = vmatmul.mubr.msk.bf16.gmra.mxu1 %vm712_vm0, %v6755_v8 }
 0x15c   : > { %9765 = vst [vmem:[#allocation82_spill] sm:$0xff] %v7199_v0 }
 0x15d   : > { %v7212_v23 = vpop.f32.mrf.mxu1  ;;  %v7214_v40 = vpop.f32.mrf.mxu0  ;;  %2649 = vmatpush2.bf16.msra.mxu0 %v6094_v15 }
 0x15e   : > { %9766 = vst [vmem:[#allocation83_spill] sm:$0xff] %v7212_v23  ;;  %2993 = vmatprep.subr.bf16.mxu0 %v9735_v34 }
 0x15f   : > { %v7221_v32 = vpop.f32.mrf.mxu1  ;;  %v7223_v27 = vpop.f32.mrf.mxu0 }
 0x160   : > { %9767 = vst [vmem:[#allocation84_spill] sm:$0xff] %v7221_v32 }
 0x161   : > { %v7232_v38 = vpop.f32.mrf.mxu1  ;;  %v7234_v23 = vpop.f32.mrf.mxu0 }
 0x162   : > { %9768 = vst [vmem:[#allocation85_spill] sm:$0xff] %v7232_v38  ;;  %9769 = vst [vmem:[#allocation86_spill] sm:$0xff] %v7234_v23 }
 0x163   : > { %v7237_v8 = vpop.f32.mrf.mxu1  ;;  %v7239_v46 = vpop.f32.mrf.mxu0 }
 0x164   : > { %9770 = vst [vmem:[#allocation87_spill] sm:$0xff] %v7237_v8 }
 0x165   : > { %v7245_v32 = vpop.f32.mrf.mxu1  ;;  %v7247_v21 = vpop.f32.mrf.mxu0 }
 0x166   : > { %9771 = vst [vmem:[#allocation88_spill] sm:$0xff] %v7245_v32 }
 0x167   : > { %v7253_v34 = vpop.f32.mrf.mxu1  ;;  %v7255_v44 = vpop.f32.mrf.mxu0 }
 0x168   : > { %9772 = vst [vmem:[#allocation89_spill] sm:$0xff] %v7253_v34 }
 0x169   : > { %v7261_v8 = vpop.f32.mrf.mxu1  ;;  %v7263_v53 = vpop.f32.mrf.mxu0 }
 0x16a   : > { %9773 = vst [vmem:[#allocation90_spill] sm:$0xff] %v7261_v8  ;;  %9774 = vst [vmem:[#allocation91_spill] sm:$0xff] %v7263_v53 }
 0x16b   : > { %v7265_v23 = vpop.f32.mrf.mxu1  ;;  %v7267_v48 = vpop.f32.mrf.mxu0 }
 0x16c   : > { %9775 = vst [vmem:[#allocation92_spill] sm:$0xff] %v7265_v23 }
 0x16d   : > { %v7273_v55 = vpop.f32.mrf.mxu1  ;;  %v7275_v0 = vpop.f32.mrf.mxu0 }
 0x16e   : > { %9776 = vst [vmem:[#allocation93_spill] sm:$0xff] %v7273_v55 }
 0x16f   : > { %v7281_v58 = vpop.f32.mrf.mxu1  ;;  %v7283_v53 = vpop.f32.mrf.mxu0 }
 0x170   : > { %9777 = vst [vmem:[#allocation94_spill] sm:$0xff] %v7281_v58 }
 0x171   : > { %v7289_v23 = vpop.f32.mrf.mxu1  ;;  %v7291_v14 = vpop.f32.mrf.mxu0 }
 0x172   : > { %9778 = vst [vmem:[#allocation95_spill] sm:$0xff] %v7289_v23  ;;  %9779 = vst [vmem:[#allocation96_spill] sm:$0xff] %v7291_v14 }
 0x173   : > { %v7293_v8 = vpop.f32.mrf.mxu1  ;;  %v7295_v28 = vpop.f32.mrf.mxu0 }
 0x174   : > { %9780 = vst [vmem:[#allocation97_spill] sm:$0xff] %v7293_v8 }
 0x175   : > { %v7299_v55 = vpop.f32.mrf.mxu1  ;;  %v7301_v57 = vpop.f32.mrf.mxu0 }
 0x176   : > { %9781 = vst [vmem:[#allocation98_spill] sm:$0xff] %v7299_v55 }
 0x177   : > { %v7305_v58 = vpop.f32.mrf.mxu1  ;;  %v7307_v32 = vpop.f32.mrf.mxu0 }
 0x178   : > { %9782 = vst [vmem:[#allocation99_spill] sm:$0xff] %v7305_v58 }
 0x179   : > { %v7311_v14 = vpop.f32.mrf.mxu1  ;;  %v7313_v23 = vpop.f32.mrf.mxu0 }
 0x17a   : > { %9783 = vst [vmem:[#allocation100_spill] sm:$0xff] %v7311_v14 }
 0x17b   : > { %v7315_v38 = vpop.f32.mrf.mxu1  ;;  %v7317_v34 = vpop.f32.mrf.mxu0 }
 0x17c   : > { %9784 = vst [vmem:[#allocation101_spill] sm:$0xff] %v7315_v38  ;;  %9785 = vst [vmem:[#allocation102_spill] sm:$0xff] %v7317_v34 }
 0x17d   : > { %v7321_v51 = vpop.f32.mrf.mxu1  ;;  %v7323_v15 = vpop.f32.mrf.mxu0 }
 0x17e   : > { %9786 = vst [vmem:[#allocation103_spill] sm:$0xff] %v7321_v51 }
 0x17f   : > { %v7327_v16 = vpop.f32.mrf.mxu1  ;;  %v7329_v60 = vpop.f32.mrf.mxu0 }
 0x180   : > { %9787 = vst [vmem:[#allocation104_spill] sm:$0xff] %v7327_v16  ;;  %9788 = vst [vmem:[#allocation105_spill] sm:$0xff] %v7329_v60 }
 0x181   : > { %v7333_v42 = vpop.f32.mrf.mxu1  ;;  %v7335_v14 = vpop.f32.mrf.mxu0 }
 0x182   : > { %9789 = vst [vmem:[#allocation106_spill] sm:$0xff] %v7333_v42 }
 0x183   : > { %v7337_v34 = vpop.f32.mrf.mxu1  ;;  %v7339_v8 = vpop.f32.mrf.mxu0 }
 0x184   : > { %9790 = vst [vmem:[#allocation107_spill] sm:$0xff] %v7337_v34  ;;  %9791 = vst [vmem:[#allocation108_spill] sm:$0xff] %v7339_v8 }
 0x185   : > { %v7341_v38 = vpop.f32.mrf.mxu1  ;;  %v7343_v61 = vpop.f32.mrf.mxu0 }
 0x186   : > { %9792 = vst [vmem:[#allocation109_spill] sm:$0xff] %v7341_v38  ;;  %9793 = vst [vmem:[#allocation110_spill] sm:$0xff] %v7343_v61 }
 0x187   : > { %v7345_v55 = vpop.f32.mrf.mxu1  ;;  %v7347_v51 = vpop.f32.mrf.mxu0 }
 0x188   : > { %9794 = vst [vmem:[#allocation111_spill] sm:$0xff] %v7345_v55  ;;  %9795 = vst [vmem:[#allocation112_spill] sm:$0xff] %v7347_v51 }
 0x189   : > { %v7349_v26 = vpop.f32.mrf.mxu1  ;;  %v7351_v60 = vpop.f32.mrf.mxu0 }
 0x18a   : > { %9796 = vst [vmem:[#allocation113_spill] sm:$0xff] %v7349_v26  ;;  %9797 = vst [vmem:[#allocation114_spill] sm:$0xff] %v7351_v60 }
 0x18b   : > { %v7353_v58 = vpop.f32.mrf.mxu1  ;;  %v7355_v16 = vpop.f32.mrf.mxu0 }
 0x18c   : > { %9798 = vst [vmem:[#allocation115_spill] sm:$0xff] %v7353_v58  ;;  %9799 = vst [vmem:[#allocation116_spill] sm:$0xff] %v7355_v16  ;;  %v9807_v58 = vmax.f32 %v6785_v20, %v7050_v62  ;;  %v9815_v62 = vmax.f32 %v6822_v33, %v7125_v43  ;;  %v9819_v33 = vmax.f32 %v6841_v39, %v7172_v13 }
 0x18d   : > { %v7357_v5 = vpop.f32.mrf.mxu1  ;;  %v7359_v34 = vpop.f32.mrf.mxu0  ;;  %v9823_v39 = vmax.f32 %v6853_v45, %v7201_v1 }
 0x18e   : > { %9800 = vst [vmem:[#allocation117_spill] sm:$0xff] %v7357_v5  ;;  %9801 = vst [vmem:[#allocation118_spill] sm:$0xff] %v7359_v34 }
 0x18f   : > { %v7361_v42 = vpop.f32.mrf.mxu1  ;;  %v7363_v38 = vpop.f32.mrf.mxu0 }
 0x190   : > { %9802 = vst [vmem:[#allocation119_spill] sm:$0xff] %v7361_v42  ;;  %9803 = vst [vmem:[#allocation120_spill] sm:$0xff] %v7363_v38  ;;  %v9808_v42 = vmax.f32 %v6795_v22, %v7061_v17  ;;  %v9812_v17 = vmax.f32 %v6807_v29, %v7103_v18 }
 0x191   : > { %v7365_v61 = vpop.f32.mrf.mxu1  ;;  %v7367_v55 = vpop.f32.mrf.mxu0 }
 0x192   : > { %9804 = vst [vmem:[#allocation121_spill] sm:$0xff] %v7365_v61  ;;  %9805 = vst [vmem:[#allocation122_spill] sm:$0xff] %v7367_v55 }
 0x193   : > { %v7369_v51 = vpop.f32.mrf.mxu0  ;;  %v5915_v26 = vpop.f32.mrf.mxu1 }
 0x194   : > { %9806 = vst [vmem:[#allocation123_spill] sm:$0xff] %v7369_v51  ;;  %v7374_v60 = vmax.f32 %v9807_v58, %v5915_v26  ;;  %v9810_v51 = vmax.f32 %v6799_v24, %v7080_v11  ;;  %v9813_v11 = vmax.f32 %v6818_v31, %v7114_v19  ;;  %v9817_v19 = vmax.f32 %v6830_v37, %v7150_v25 }
 0x195   : > { %v7376_v16 = vpop.f32.mrf.mxu0  ;;  %v1754_v5 = vpop.f32.mrf.mxu1 }
 0x196   : > { %v7381_v34 = vmax.f32 %v9808_v42, %v1754_v5 }
 0x197   : > { %v7383_v38 = vpop.f32.mrf.mxu0  ;;  %v5916_v61 = vpop.f32.mrf.mxu1 }
 0x198   : > { %9809 = vst [vmem:[#allocation124_spill] sm:$0xff] %v7381_v34  ;;  %v7388_v55 = vmax.f32 %v9810_v51, %v5916_v61 }
 0x199   : > { %v7390_v8 = vpop.f32.mrf.mxu0  ;;  %v7392_v26 = vpop.f32.mrf.mxu1 }
 0x19a   : > { %9811 = vst [vmem:[#allocation125_spill] sm:$0xff] %v7388_v55 }
 0x19b   : > { %v7394_v20 = vpop.f32.mrf.mxu0  ;;  %v5919_v58 = vpop.f32.mrf.mxu1 }
 0x19c   : > { %v7399_v22 = vmax.f32 %v9812_v17, %v5919_v58 }
 0x19d   : > { %v7401_v42 = vpop.f32.mrf.mxu0  ;;  %v1770_v5 = vpop.f32.mrf.mxu1 }
 0x19e   : > { %v7406_v24 = vmax.f32 %v9813_v11, %v1770_v5 }
 0x19f   : > { %v7408_v51 = vpop.f32.mrf.mxu0  ;;  %v5920_v61 = vpop.f32.mrf.mxu1 }
 0x1a0   : > { %9814 = vst [vmem:[#allocation126_spill] sm:$0xff] %v7406_v24  ;;  %v7413_v55 = vmax.f32 %v9815_v62, %v5920_v61  ;;  %v9821_v62 = vmax.f32 %v6845_v41, %v7185_v36  ;;  %v9825_v36 = vmax.f32 %v6864_v47, %v7214_v40  ;;  %v9832_v40 = vmax.f32 %v6879_v54, %v7239_v46 }
 0x1a1   : > { %v7415_v34 = vpop.f32.mrf.mxu0  ;;  %v7417_v29 = vpop.f32.mrf.mxu1 }
 0x1a2   : > { %9816 = vst [vmem:[#allocation127_spill] sm:$0xff] %v7413_v55 }
 0x1a3   : > { %v7419_v18 = vpop.f32.mrf.mxu0  ;;  %v5923_v58 = vpop.f32.mrf.mxu1 }
 0x1a4   : > { %v7424_v31 = vmax.f32 %v9817_v19, %v5923_v58 }
 0x1a5   : > { %v7426_v17 = vpop.f32.mrf.mxu0  ;;  %v1786_v5 = vpop.f32.mrf.mxu1 }
 0x1a6   : > { %9818 = vst [vmem:[#allocation128_spill] sm:$0xff] %v7424_v31  ;;  %v7431_v43 = vmax.f32 %v9819_v33, %v1786_v5 }
 0x1a7   : > { %v7433_v11 = vpop.f32.mrf.mxu0  ;;  %v5924_v61 = vpop.f32.mrf.mxu1 }
 0x1a8   : > { %9820 = vst [vmem:[#allocation129_spill] sm:$0xff] %v7431_v43  ;;  %v7438_v55 = vmax.f32 %v9821_v62, %v5924_v61  ;;  %v9827_v62 = vmax.f32 %v6868_v49, %v7223_v27  ;;  %v9835_v49 = vmax.f32 %v6890_v56, %v7247_v21  ;;  %v9843_v56 = vmax.f32 %v6910_v12, %v7267_v48 }
 0x1a9   : > { %v7440_v24 = vpop.f32.mrf.mxu0  ;;  %v7442_v25 = vpop.f32.mrf.mxu1  ;;  %v2279_v12 = vsub.s32 0, %v7143_v30 }
 0x1aa   : > { %9822 = vst [vmem:[#allocation130_spill] sm:$0xff] %v7438_v55 }
 0x1ab   : > { %v7444_v37 = vpop.f32.mrf.mxu0  ;;  %v5927_v58 = vpop.f32.mrf.mxu1 }
 0x1ac   : > { %v7449_v13 = vmax.f32 %v9823_v39, %v5927_v58 }
 0x1ad   : > { %v7451_v19 = vpop.f32.mrf.mxu0  ;;  %v1802_v5 = vpop.f32.mrf.mxu1 }
 0x1ae   : > { %9824 = vst [vmem:[#allocation131_spill] sm:$0xff] %v7449_v13  ;;  %v7456_v41 = vmax.f32 %v9825_v36, %v1802_v5 }
 0x1af   : > { %v7458_v33 = vpop.f32.mrf.mxu0  ;;  %v5928_v61 = vpop.f32.mrf.mxu1 }
 0x1b0   : > { %9826 = vst [vmem:[#allocation132_spill] sm:$0xff] %v7456_v41  ;;  %v7463_v55 = vmax.f32 %v9827_v62, %v5928_v61  ;;  %v9838_v62 = vmax.f32 %v6898_v59, %v7255_v44  ;;  %v9846_v44 = vmax.f32 %v6921_v10, %v7275_v0  ;;  %v9853_v10 = vmax.f32 %v6735_v2, %v6946_v50 }
 0x1b1   : > { %v7465_v43 = vpop.f32.mrf.mxu0  ;;  %v7467_v45 = vpop.f32.mrf.mxu1  ;;  %v9857_v2 = vmax.f32 %v6750_v6, %v6976_v52  ;;  %v9866_v52 = vld [vmem:[#allocation52_spill] sm:$0xff] }
 0x1b2   : > { %9828 = vst [vmem:[#allocation133_spill] sm:$0xff] %v7463_v55  ;;  %9829 = vst [vmem:[#allocation134_spill] sm:$0xff] %v7465_v43  ;;  %v1849_v0 = vmax.f32 %v9853_v10, %v7295_v28  ;;  %v9858_v10 = vld [vmem:[#allocation19_spill] sm:$0xff]  ;;  %v9897_v43 = vld [vmem:[#allocation14_spill] sm:$0xff] }
 0x1b3   : > { %9830 = vst [vmem:[#allocation135_spill] sm:$0xff] %v7467_v45  ;;  %v7469_v1 = vpop.f32.mrf.mxu0  ;;  %v5931_v58 = vpop.f32.mrf.mxu1  ;;  %v1852_v28 = vmax.f32 %v9857_v2, %v7307_v32  ;;  %v9865_v32 = vld [vmem:[#allocation6_spill] sm:$0xff]  ;;  %v9869_v2 = vld [vmem:[#allocation29_spill] sm:$0xff] }
 0x1b4   : > { %9831 = vst [vmem:[#allocation136_spill] sm:$0xff] %v7469_v1  ;;  %v7474_v47 = vmax.f32 %v9832_v40, %v5931_v58 }
 0x1b5   : > { %v7476_v39 = vpop.f32.mrf.mxu0  ;;  %v1818_v5 = vpop.f32.mrf.mxu1 }
 0x1b6   : > { %9833 = vst [vmem:[#allocation137_spill] sm:$0xff] %v7474_v47  ;;  %9834 = vst [vmem:[#allocation138_spill] sm:$0xff] %v7476_v39  ;;  %v7481_v27 = vmax.f32 %v9835_v49, %v1818_v5  ;;  %v9898_v47 = vld [vmem:[#allocation62_spill] sm:$0xff] }
 0x1b7   : > { %v7483_v36 = vpop.f32.mrf.mxu0  ;;  %v5932_v61 = vpop.f32.mrf.mxu1 }
 0x1b8   : > { %9836 = vst [vmem:[#allocation139_spill] sm:$0xff] %v7481_v27  ;;  %9837 = vst [vmem:[#allocation140_spill] sm:$0xff] %v7483_v36  ;;  %v7488_v1 = vmax.f32 %v9838_v62, %v5932_v61  ;;  %v9849_v62 = vmax.f32 %v6929_v7, %v7283_v53  ;;  %v9855_v7 = vmax.f32 %v6746_v4, %v6959_v3  ;;  %v9859_v4 = vld [vmem:[#allocation68_spill] sm:$0xff]  ;;  %v9927_v36 = vld [vmem:[#allocation122_spill] sm:$0xff] }
 0x1b9   : > { %v7490_v55 = vpop.f32.mrf.mxu0  ;;  %v7492_v46 = vpop.f32.mrf.mxu1  ;;  %v1390_v3 = vmax.f32 %v9858_v10, %v7086_v35  ;;  %v9902_v27 = vld [vmem:[#allocation64_spill] sm:$0xff] }
 0x1ba   : > { %9839 = vst [vmem:[#allocation141_spill] sm:$0xff] %v7488_v1  ;;  %9840 = vst [vmem:[#allocation142_spill] sm:$0xff] %v7490_v55  ;;  %v1850_v53 = vmax.f32 %v9855_v7, %v7301_v57  ;;  %v9860_v57 = vld [vmem:[#allocation20_spill] sm:$0xff]  ;;  %v9862_v7 = vld [vmem:[#allocation74_spill] sm:$0xff] }
 0x1bb   : > { %9841 = vst [vmem:[#allocation143_spill] sm:$0xff] %v7492_v46  ;;  %v7494_v54 = vpop.f32.mrf.mxu0  ;;  %v5935_v58 = vpop.f32.mrf.mxu1  ;;  %v9893_v1 = vld [vmem:[#allocation105_spill] sm:$0xff]  ;;  %v9894_v55 = vld [vmem:[#allocation12_spill] sm:$0xff] }
 0x1bc   : > { %9842 = vst [vmem:[#allocation144_spill] sm:$0xff] %v7494_v54  ;;  %v7499_v21 = vmax.f32 %v9843_v56, %v5935_v58  ;;  %v2283_v56 = vsub.s32 1, %v7143_v30 }
 0x1bd   : > { %v7501_v40 = vpop.f32.mrf.mxu0  ;;  %v1834_v5 = vpop.f32.mrf.mxu1 }
 0x1be   : > { %9844 = vst [vmem:[#allocation145_spill] sm:$0xff] %v7499_v21  ;;  %9845 = vst [vmem:[#allocation146_spill] sm:$0xff] %v7501_v40  ;;  %v7506_v59 = vmax.f32 %v9846_v44, %v1834_v5  ;;  %v7541_v50 = vrot.slane %v7168_v63, %v2283_v56 }
 0x1bf   : > { %v7508_v49 = vpop.f32.mrf.mxu0  ;;  %v5936_v61 = vpop.f32.mrf.mxu1 }
 0x1c0   : > { %9847 = vst [vmem:[#allocation147_spill] sm:$0xff] %v7506_v59  ;;  %9848 = vst [vmem:[#allocation148_spill] sm:$0xff] %v7508_v49  ;;  %v7513_v54 = vmax.f32 %v9849_v62, %v5936_v61  ;;  %v7532_v62 = vrot.slane %v7168_v63, %v2279_v12  ;;  %v9861_v12 = vld [vmem:[#allocation24_spill] sm:$0xff]  ;;  %v9867_v63 = vmax.f32 %v9865_v32, %v9866_v52  ;;  %v9882_v59 = vld [vmem:[#allocation39_spill] sm:$0xff] }
 0x1c1   : > { %v7516_v48 = vpop.f32.mrf.mxu0  ;;  %v7518_v58 = vpop.f32.mrf.mxu1  ;;  %v9878_v52 = vld [vmem:[#allocation8_spill] sm:$0xff] }
 0x1c2   : > { %9850 = vst [vmem:[#allocation149_spill] sm:$0xff] %v7513_v54  ;;  %9851 = vst [vmem:[#allocation150_spill] sm:$0xff] %v7516_v48 }
 0x1c3   : > { %9852 = vst [vmem:[#allocation151_spill] sm:$0xff] %v7518_v58  ;;  %v7525_v5 = vpop.f32.mrf.mxu0  ;;  %v1955_v44 = vpop.f32.mrf.mxu1  ;;  %v9895_v58 = vld [vmem:[#allocation60_spill] sm:$0xff] }
 0x1c4   : > { %9854 = vst [vmem:[#allocation152_spill] sm:$0xff] %v7525_v5  ;;  %v2203_v61 = vmax.f32 %v1849_v0, %v1955_v44  ;;  %v1379_v0 = vmax.f32 %v9860_v57, %v9859_v4  ;;  %v1396_v44 = vmax.f32 %v9861_v12, %v7139_v9  ;;  %v9870_v4 = vld [vmem:[#allocation81_spill] sm:$0xff]  ;;  %v9871_v9 = vld [vmem:[#allocation30_spill] sm:$0xff] }
 0x1c5   : > { %v7534_v48 = vpop.f32.mrf.mxu0  ;;  %v1957_v49 = vpop.f32.mrf.mxu1  ;;  %v9872_v12 = vld [vmem:[#allocation85_spill] sm:$0xff]  ;;  %v9873_v5 = vld [vmem:[#allocation34_spill] sm:$0xff] }
 0x1c6   : > { %9856 = vst [vmem:[#allocation153_spill] sm:$0xff] %v7534_v48  ;;  %v2204_v30 = vmax.f32 %v1850_v53, %v1957_v49  ;;  %v9863_v48 = vld [vmem:[#allocation25_spill] sm:$0xff]  ;;  %v1853_v49 = vmax.f32 %v9867_v63, %v7313_v23  ;;  %v2292_v56 = vadd.f32 %v7532_v62, %v2203_v61  ;;  %v9868_v53 = vld [vmem:[#allocation80_spill] sm:$0xff]  ;;  %v9877_v23 = vld [vmem:[#allocation102_spill] sm:$0xff]  ;;  %v7642_v45 = vmax.f32 %v1396_v44, %v9927_v36 }
 0x1c7   : > { %v7551_v40 = vpop.f32.mrf.mxu0  ;;  %v1959_v6 = vpop.f32.mrf.mxu1  ;;  %v1402_v10 = vmax.f32 %v9869_v2, %v9868_v53  ;;  %v9879_v61 = vld [vmem:[#allocation55_spill] sm:$0xff]  ;;  %v9881_v57 = vld [vmem:[#allocation90_spill] sm:$0xff] }
 0x1c8   : > { %9864 = vst [vmem:[#allocation19_spill] sm:$0xff] %v7551_v40  ;;  %v2206_v35 = vmax.f32 %v1852_v28, %v1959_v6  ;;  %v9880_v28 = vmax.f32 %v9878_v52, %v9879_v61  ;;  %v2293_v63 = vadd.f32 %v7541_v50, %v2204_v30  ;;  %v2364_v52 = vmax.f32 %v2292_v56, 0.0  ;;  %v9891_v61 = vld [vmem:[#allocation57_spill] sm:$0xff]  ;;  %v9900_v56 = vld [vmem:[#allocation108_spill] sm:$0xff] }
 0x1c9   : > { %v7566_v54 = vpop.f32.mrf.mxu0  ;;  %v1961_v32 = vpop.f32.mrf.mxu1 }
 0x1ca   : > { %9876 = vst [vmem:[#allocation68_spill] sm:$0xff] %v7566_v54  ;;  %v1855_v6 = vmax.f32 %v9880_v28, %v9877_v23  ;;  %v2295_v53 = vadd.f32 %v7532_v62, %v2206_v35  ;;  %v2207_v2 = vmax.f32 %v1853_v49, %v1961_v32  ;;  %v9890_v32 = vld [vmem:[#allocation10_spill] sm:$0xff]  ;;  %v9896_v54 = vmax.f32 %v9894_v55, %v9895_v58  ;;  %v9909_v58 = vld [vmem:[#allocation112_spill] sm:$0xff] }
 0x1cb   : > { %v7582_v41 = vpop.f32.mrf.mxu0  ;;  %v1965_v23 = vpop.f32.mrf.mxu1  ;;  %v9892_v28 = vmax.f32 %v9890_v32, %v9891_v61  ;;  %v9905_v32 = vld [vmem:[#allocation110_spill] sm:$0xff]  ;;  %v9907_v61 = vld [vmem:[#allocation65_spill] sm:$0xff]  ;;  %v2365_v55 = vmax.f32 %v2293_v63, 0.0 }
 0x1cc   : > { %9889 = vst [vmem:[#allocation20_spill] sm:$0xff] %v7582_v41  ;;  %v2367_v30 = vmax.f32 %v2295_v53, 0.0  ;;  %v2296_v35 = vadd.f32 %v7541_v50, %v2207_v2  ;;  %v2209_v49 = vmax.f32 %v1855_v6, %v1965_v23  ;;  %v1858_v39 = vmax.f32 %v9896_v54, %v9893_v1  ;;  %v9901_v53 = vld [vmem:[#allocation16_spill] sm:$0xff]  ;;  %v9916_v63 = vld [vmem:[#allocation21_spill] sm:$0xff] }
 0x1cd   : > { %v1856_v21 = vmax.f32 %v9892_v28, %v7323_v15  ;;  %v9899_v41 = vmax.f32 %v9897_v43, %v9898_v47  ;;  %v9903_v2 = vmax.f32 %v9901_v53, %v9902_v27  ;;  %v7601_v23 = vpop.f32.mrf.mxu0  ;;  %v1967_v13 = vpop.f32.mrf.mxu1  ;;  %v9906_v15 = vld [vmem:[#allocation17_spill] sm:$0xff]  ;;  %v9910_v43 = vld [vmem:[#allocation18_spill] sm:$0xff] }
 0x1ce   : > { %9904 = vst [vmem:[#allocation24_spill] sm:$0xff] %v7601_v23  ;;  %v9908_v28 = vmax.f32 %v9906_v15, %v9907_v61  ;;  %v7607_v1 = vpack.c.bf16 %v2367_v30, %v2364_v52  ;;  %v2368_v54 = vmax.f32 %v2296_v35, 0.0  ;;  %v9913_v27 = vld [vmem:[#allocation114_spill] sm:$0xff]  ;;  %v2298_v53 = vadd.f32 %v7532_v62, %v2209_v49  ;;  %v9923_v49 = vld [vmem:[#allocation120_spill] sm:$0xff] }
 0x1cf   : > { %v1859_v46 = vmax.f32 %v9899_v41, %v7335_v14  ;;  %v1861_v6 = vmax.f32 %v9903_v2, %v9900_v56  ;;  %v9911_v14 = vld [vmem:[#allocation67_spill] sm:$0xff]  ;;  %v7616_v56 = vmax.f32 %v1390_v3, %v9913_v27  ;;  %v2210_v2 = vmax.f32 %v1856_v21, %v1967_v13  ;;  %v7619_v23 = vpop.f32.mrf.mxu0  ;;  %v1969_v15 = vpop.f32.mrf.mxu1  ;;  %v9917_v52 = vld [vmem:[#allocation70_spill] sm:$0xff]  ;;  %v9925_v21 = vld [vmem:[#allocation72_spill] sm:$0xff] }
 0x1d0   : > { %v1862_v40 = vmax.f32 %v9908_v28, %v9905_v32  ;;  %v9912_v41 = vmax.f32 %v9910_v43, %v9911_v14  ;;  %9914 = vst [vmem:[#allocation74_spill] sm:$0xff] %v7619_v23  ;;  %v9915_v32 = vld [vmem:[#allocation116_spill] sm:$0xff]  ;;  %v9918_v30 = vmax.f32 %v9916_v63, %v9917_v52  ;;  %v9919_v61 = vld [vmem:[#allocation118_spill] sm:$0xff]  ;;  %v9921_v43 = vld [vmem:[#allocation71_spill] sm:$0xff]  ;;  %v7633_v3 = vpack.c.bf16 %v2368_v54, %v2365_v55 }
 0x1d1   : > { %v9920_v28 = vld [vmem:[#allocation22_spill] sm:$0xff]  ;;  %v9924_v13 = vld [vmem:[#allocation23_spill] sm:$0xff]  ;;  %v9933_v55 = vld [vmem:[#allocation77_spill] sm:$0xff] }
 0x1d2   : > { %v7613_v47 = vmax.f32 %v9912_v41, %v9909_v58  ;;  %v7625_v35 = vmax.f32 %v9918_v30, %v9915_v32  ;;  %v9922_v58 = vmax.f32 %v9920_v28, %v9921_v43  ;;  %v2212_v41 = vmax.f32 %v1858_v39, %v1969_v15  ;;  %v9928_v32 = vld [vmem:[#allocation123_spill] sm:$0xff]  ;;  %v9929_v63 = vld [vmem:[#allocation26_spill] sm:$0xff]  ;;  %v7656_v15 = vpop.f32.mrf.mxu0  ;;  %v1971_v28 = vpop.f32.mrf.mxu1  ;;  %v9935_v43 = vld [vmem:[#allocation28_spill] sm:$0xff]  ;;  %5488 = vmatprep.mubr.msk.bf16.mxu1 %vm2593_vm1, %v7633_v3 }
 0x1d3   : > { %v9926_v27 = vmax.f32 %v9924_v13, %v9925_v21  ;;  %v9930_v52 = vld [vmem:[#allocation75_spill] sm:$0xff]  ;;  %v2213_v21 = vmax.f32 %v1859_v46, %v1971_v28  ;;  %2826 = vmatmul.mubr.bf16.vlgmr.msra.gmra.mxu1 %v7607_v1 }
 0x1d4   : > { %v7631_v14 = vmax.f32 %v9922_v58, %v9919_v61  ;;  %v9931_v30 = vmax.f32 %v9929_v63, %v9930_v52  ;;  %v9932_v61 = vld [vmem:[#allocation27_spill] sm:$0xff]  ;;  %v2301_v13 = vadd.f32 %v7532_v62, %v2212_v41  ;;  %v9939_v63 = vld [vmem:[#allocation82_spill] sm:$0xff] }
 0x1d5   : > { %v7639_v23 = vmax.f32 %v9926_v27, %v9923_v49  ;;  %v9934_v54 = vmax.f32 %v9932_v61, %v9933_v55  ;;  %v9936_v58 = vld [vmem:[#allocation79_spill] sm:$0xff]  ;;  %v2299_v49 = vadd.f32 %v7541_v50, %v2210_v2  ;;  %v1854_v27 = vmax.f32 %v1379_v0, %v7392_v26  ;;  %v1975_v61 = vpop.f32.mrf.mxu1  ;;  %v5945_v2 = vpop.f32.mrf.mxu0  ;;  %v9942_v26 = vld [vmem:[#allocation32_spill] sm:$0xff] }
 0x1d6   : > { %v7648_v31 = vmax.f32 %v9931_v30, %v9928_v32  ;;  %v9937_v36 = vmax.f32 %v9935_v43, %v9936_v58  ;;  %v9938_v32 = vld [vmem:[#allocation31_spill] sm:$0xff]  ;;  %v2373_v46 = vmax.f32 %v2301_v13, 0.0  ;;  %v2302_v41 = vadd.f32 %v7541_v50, %v2213_v21 }
 0x1d7   : > { %v7654_v39 = vmax.f32 %v9934_v54, %v7376_v16  ;;  %v7669_v16 = vmax.f32 %v1402_v10, %v7390_v8  ;;  %v9940_v52 = vmax.f32 %v9938_v32, %v9939_v63  ;;  %v2215_v55 = vmax.f32 %v1861_v6, %v1975_v61  ;;  %v9941_v10 = vld [vmem:[#allocation46_spill] sm:$0xff]  ;;  %v9943_v0 = vld [vmem:[#allocation83_spill] sm:$0xff]  ;;  %v2108_v21 = vpop.f32.mrf.mxu0 }
 0x1d8   : > { %v7662_v44 = vmax.f32 %v9937_v36, %v7383_v38  ;;  %v2370_v38 = vmax.f32 %v2298_v53, 0.0  ;;  %v2211_v8 = vmax.f32 %v7374_v60, %v5945_v2  ;;  %3196 = vmatpush1.bf16.msra.mxu1 %v9941_v10  ;;  %v9944_v54 = vmax.f32 %v9942_v26, %v9943_v0  ;;  %v9946_v53 = vld [vmem:[#allocation84_spill] sm:$0xff]  ;;  %v9951_v61 = vld [vmem:[#allocation78_spill] sm:$0xff] }
 0x1d9   : > { %v7676_v30 = vmax.f32 %v9940_v52, %v7394_v20  ;;  %v9945_v20 = vld [vmem:[#allocation33_spill] sm:$0xff]  ;;  %v9948_v6 = vmax.f32 %v9873_v5, %v9872_v12  ;;  %v9949_v60 = vmax.f32 %v9863_v48, %v9862_v7  ;;  %v9950_v32 = vmov 0   ;;  %v9952_v5 = vld [vmem:[#allocation36_spill] sm:$0xff] }
 0x1da   : > { %v7686_v28 = vmax.f32 %v9944_v54, %v7401_v42  ;;  %v9947_v43 = vmax.f32 %v9945_v20, %v9946_v53  ;;  %v1977_v42 = vpop.f32.mrf.mxu1  ;;  %3197 = vmatprep.subr.bf16.mxu1 %v9950_v32  ;;  %v2371_v63 = vmax.f32 %v2299_v49, 0.0  ;;  %v7707_v52 = vpack.c.bf16 %v2373_v46, %v2370_v38  ;;  %v9955_v7 = vld [vmem:[#allocation124_spill] sm:$0xff]  ;;  %v5946_v54 = vpop.f32.mrf.mxu0  ;;  %v9956_v49 = vld [vmem:[#allocation37_spill] sm:$0xff] }
 0x1db   : > { %v7698_v36 = vmax.f32 %v9948_v6, %v7415_v34  ;;  %v7704_v13 = vmax.f32 %v9949_v60, %v7417_v29  ;;  %v2300_v2 = vadd.f32 %v9951_v61, %v2211_v8  ;;  %v9953_v34 = vld [vmem:[#allocation87_spill] sm:$0xff]  ;;  %v2304_v48 = vadd.f32 %v7532_v62, %v2215_v55  ;;  %v9957_v38 = vld [vmem:[#allocation88_spill] sm:$0xff]  ;;  %v9959_v8 = vld [vmem:[#allocation38_spill] sm:$0xff] }
 0x1dc   : > { %v7692_v58 = vmax.f32 %v9947_v43, %v7408_v51  ;;  %v2374_v51 = vmax.f32 %v2302_v41, 0.0  ;;  %v9954_v12 = vmax.f32 %v9952_v5, %v9953_v34  ;;  %v2216_v29 = vmax.f32 %v1862_v40, %v1977_v42  ;;  %v1979_v0 = vpop.f32.mrf.mxu1  ;;  %v9960_v20 = vld [vmem:[#allocation89_spill] sm:$0xff]  ;;  %v2111_v34 = vpop.f32.mrf.mxu0 }
 0x1dd   : > { %v2205_v26 = vmax.f32 %v9955_v7, %v2108_v21  ;;  %v9958_v46 = vmax.f32 %v9956_v49, %v9957_v38  ;;  %v9961_v53 = vmax.f32 %v9959_v8, %v9960_v20  ;;  %v2218_v40 = vmax.f32 %v7613_v47, %v1979_v0  ;;  %v9962_v55 = vld [vmem:[#allocation49_spill] sm:$0xff] }
 0x1de   : > { %v7714_v10 = vmax.f32 %v9954_v12, %v7419_v18  ;;  %v7730_v18 = vpack.c.bf16 %v2374_v51, %v2371_v63  ;;  %3198 = vmatpush1.bf16.msra.mxu1 %v9962_v55  ;;  %v9963_v6 = vmax.f32 %v9882_v59, %v9881_v57  ;;  %v9964_v21 = vld [vmem:[#allocation125_spill] sm:$0xff]  ;;  %v9965_v47 = vmax.f32 %v9871_v9, %v9870_v4  ;;  %v9967_v12 = vld [vmem:[#allocation92_spill] sm:$0xff]  ;;  %v5949_v9 = vpop.f32.mrf.mxu0 }
 0x1df   : > { %v7722_v41 = vmax.f32 %v9958_v46, %v7426_v17  ;;  %v7728_v43 = vmax.f32 %v9961_v53, %v7433_v11  ;;  %v2305_v17 = vadd.f32 %v7541_v50, %v2216_v29  ;;  %v2294_v42 = vadd.f32 %v9951_v61, %v2205_v26  ;;  %v1981_v11 = vpop.f32.mrf.mxu1  ;;  %3199 = vmatprep.subr.bf16.mxu1 %v9950_v32  ;;  %v9966_v51 = vld [vmem:[#allocation41_spill] sm:$0xff] }
 0x1e0   : > { %v7738_v60 = vmax.f32 %v9963_v6, %v7440_v24  ;;  %v2214_v5 = vmax.f32 %v9964_v21, %v5946_v54  ;;  %v7748_v63 = vmax.f32 %v9965_v47, %v7442_v25  ;;  %v2307_v59 = vadd.f32 %v7532_v62, %v2218_v40  ;;  %5489 = vmatprep.mubr.msk.bf16.mxu1 %vm2593_vm1, %v7730_v18  ;;  %v9969_v38 = vld [vmem:[#allocation53_spill] sm:$0xff]  ;;  %v2124_v20 = vpop.f32.mrf.mxu0 }
 0x1e1   : > { %v2219_v24 = vmax.f32 %v7616_v56, %v1981_v11  ;;  %v2208_v57 = vmax.f32 %v1854_v27, %v2111_v34  ;;  %v9968_v29 = vmax.f32 %v9966_v51, %v9967_v12  ;;  %v2376_v26 = vmax.f32 %v2304_v48, 0.0  ;;  %v1985_v25 = vpop.f32.mrf.mxu1  ;;  %2834 = vmatmul.mubr.bf16.gmra.mxu1 %v7707_v52  ;;  %v9972_v47 = vld [vmem:[#allocation93_spill] sm:$0xff]  ;;  %v7787_v12 = vld [vmem:[%s9550_s3 + $0xf8] sm:$0xff]  }
 0x1e2   : > { %v2372_v0 = vmax.f32 %v2300_v2, 0.0  ;;  %v2303_v4 = vadd.f32 %v9951_v61, %v2214_v5  ;;  %v2379_v54 = vmax.f32 %v2307_v59, 0.0  ;;  %v2221_v49 = vmax.f32 %v7625_v35, %v1985_v25  ;;  %3200 = vmatpush1.bf16.msra.mxu1 %v9969_v38  ;;  %v9970_v35 = vld [vmem:[#allocation126_spill] sm:$0xff] }
 0x1e3   : > { %v7758_v7 = vmax.f32 %v9968_v29, %v7444_v37  ;;  %v2308_v56 = vadd.f32 %v7541_v50, %v2219_v24  ;;  %v2297_v27 = vadd.f32 %v9951_v61, %v2208_v57  ;;  %v2377_v46 = vmax.f32 %v2305_v17, 0.0  ;;  %v1987_v48 = vpop.f32.mrf.mxu1  ;;  %3201 = vmatprep.subr.bf16.mxu1 %v9950_v32  ;;  %v5950_v17 = vpop.f32.mrf.mxu0  ;;  %v9975_v29 = vld [vmem:[#allocation58_spill] sm:$0xff] }
 0x1e4   : > { %v2366_v37 = vmax.f32 %v2294_v42, 0.0  ;;  %v2375_v8 = vmax.f32 %v2303_v4, 0.0  ;;  %v2223_v2 = vmax.f32 %v7399_v22, %v5949_v9  ;;  %v2310_v55 = vadd.f32 %v7532_v62, %v2221_v49  ;;  %v9971_v22 = vld [vmem:[#allocation42_spill] sm:$0xff] }
 0x1e5   : > { %v2380_v53 = vmax.f32 %v2308_v56, 0.0  ;;  %v2369_v40 = vmax.f32 %v2297_v27, 0.0  ;;  %v2222_v6 = vmax.f32 %v7631_v14, %v1987_v48  ;;  %v2217_v5 = vmax.f32 %v9970_v35, %v2124_v20  ;;  %v1989_v11 = vpop.f32.mrf.mxu1  ;;  %v2127_v25 = vpop.f32.mrf.mxu0  ;;  %v9977_v27 = vld [vmem:[#allocation43_spill] sm:$0xff]  ;;  %v9978_v49 = vld [vmem:[#allocation94_spill] sm:$0xff] }
 0x1e6   : > { %v2312_v21 = vadd.f32 %v9951_v61, %v2223_v2  ;;  %v2442_v42 = vpack.c.bf16 %v2379_v54, %v2376_v26  ;;  %v7772_v34 = vpack.c.bf16 %v2375_v8, %v2372_v0  ;;  %v9973_v59 = vmax.f32 %v9971_v22, %v9972_v47  ;;  %3202 = vmatpush1.bf16.msra.mxu1 %v9975_v29  ;;  %v9976_v0 = vld [vmem:[#allocation127_spill] sm:$0xff] }
 0x1e7   : > { %v7780_v57 = vpack.c.bf16 %v2380_v53, %v2377_v46  ;;  %v2311_v51 = vadd.f32 %v7541_v50, %v2222_v6  ;;  %v2224_v14 = vmax.f32 %v7639_v23, %v1989_v11  ;;  %v2306_v26 = vadd.f32 %v9951_v61, %v2217_v5  ;;  %3203 = vmatprep.subr.bf16.mxu1 %v9950_v32  ;;  %v9981_v5 = vld [vmem:[#allocation128_spill] sm:$0xff] }
 0x1e8   : > { %v7778_v24 = vmax.f32 %v9973_v59, %v7451_v19  ;;  %v2226_v4 = vmax.f32 %v9976_v0, %v5950_v17  ;;  %3122 = vrot.lane.b32.xlu0 %v2442_v42, %s6243_s19  ;;  %v1991_v19 = vpop.f32.mrf.mxu1  ;;  %v7794_v9 = vpack.c.bf16 %v2369_v40, %v2366_v37  ;;  %v2220_v56 = vmax.f32 %v7704_v13, %v2127_v25 }
 0x1e9   : > { %9974 = vst [vmem:[#allocation25_spill] sm:$0xff] %v7780_v57  ;;  %v2313_v23 = vadd.f32 %v7532_v62, %v2224_v14  ;;  %v2225_v54 = vmax.f32 %v7642_v45, %v1991_v19  ;;  %5468 = vmatprep.mubr.msk.bf16.mxu0 %vm2593_vm1, %v7780_v57  ;;  %5490 = vmatprep.mubr.msk.bf16.mxu1 %vm2593_vm1, %v7780_v57  ;;  %v2382_v37 = vmax.f32 %v2310_v55, 0.0  ;;  %v2384_v8 = vmax.f32 %v2312_v21, 0.0  ;;  %v5953_v45 = vpop.f32.mrf.mxu0  ;;  %v9980_v55 = vld [vmem:[#allocation63_spill] sm:$0xff]  ;;  %v9982_v14 = vld [vmem:[#allocation129_spill] sm:$0xff] }
 0x1ea   : > { %v9979_v38 = vmax.f32 %v9977_v27, %v9978_v49  ;;  %v2315_v2 = vadd.f32 %v9951_v61, %v2226_v4  ;;  %v1995_v48 = vpop.f32.mrf.mxu1  ;;  %2651 = vmatmul.mubr.bf16.vlgmr.msra.gmra.mxu0 %v2442_v42  ;;  %2842 = vmatmul.mubr.bf16.gmra.mxu1 %v2442_v42  ;;  %v2309_v53 = vadd.f32 %v9951_v61, %v2220_v56  ;;  %v2383_v6 = vmax.f32 %v2311_v51, 0.0  ;;  %v9984_v56 = vld [vmem:[#allocation66_spill] sm:$0xff] }
 0x1eb   : > { %v2385_v13 = vmax.f32 %v2313_v23, 0.0  ;;  %v2314_v20 = vadd.f32 %v7541_v50, %v2225_v54  ;;  %v2227_v40 = vmax.f32 %v7648_v31, %v1995_v48  ;;  %2994 = vmatpush1.bf16.msra.mxu0 %v7787_v12  ;;  %3204 = vmatpush1.bf16.msra.mxu1 %v9980_v55  ;;  %v2378_v21 = vmax.f32 %v2306_v26, 0.0  ;;  %v2140_v42 = vpop.f32.mrf.mxu0  ;;  %v9985_v49 = vld [vmem:[#allocation130_spill] sm:$0xff] }
 0x1ec   : > { %v7807_v46 = vmax.f32 %v9979_v38, %v7458_v33  ;;  %v7817_v33 = vld [vmem:[%s9550_s3 + $0xf0] sm:$0xff]   ;;  %v2387_v35 = vmax.f32 %v2315_v2, 0.0  ;;  %v2235_v11 = vmax.f32 %v9981_v5, %v5953_v45  ;;  %3124 = vrot.lane.b32.xlu0 %v7780_v57, %s6243_s19  ;;  %v1997_v17 = vpop.f32.mrf.mxu1  ;;  %2995 = vmatprep.subr.bf16.mxu0 %v9950_v32  ;;  %v2381_v22 = vmax.f32 %v2309_v53, 0.0  ;;  %v9988_v53 = vld [vmem:[#allocation86_spill] sm:$0xff] }
 0x1ed   : > { %v2386_v31 = vmax.f32 %v2314_v20, 0.0  ;;  %v2316_v47 = vadd.f32 %v7532_v62, %v2227_v40  ;;  %v2228_v59 = vmax.f32 %v7654_v39, %v1997_v17  ;;  %3205 = vmatprep.subr.bf16.mxu1 %v9950_v32  ;;  %v2229_v29 = vmax.f32 %v9982_v14, %v2140_v42  ;;  %v5954_v0 = vpop.f32.mrf.mxu0  ;;  %v7839_v39 = vld [vmem:[%s9550_s3 + $0xe8] sm:$0xff]   ;;  %v9987_v20 = vld [vmem:[#allocation35_spill] sm:$0xff] }
 0x1ee   : > { %v2324_v51 = vadd.f32 %v9951_v61, %v2235_v11  ;;  %v1999_v26 = vpop.f32.mrf.mxu1  ;;  %v2445_v4 = vpack.c.bf16 %v2385_v13, %v2382_v37  ;;  %v7829_v19 = vpack.c.bf16 %v2387_v35, %v2384_v8  ;;  %v2238_v38 = vmax.f32 %v9985_v49, %v5954_v0  ;;  %v9986_v13 = vld [vmem:[#allocation135_spill] sm:$0xff] }
 0x1ef   : > { %v7831_v25 = vpack.c.bf16 %v2386_v31, %v2383_v6  ;;  %v2317_v23 = vadd.f32 %v7541_v50, %v2228_v59  ;;  %v2230_v54 = vmax.f32 %v7662_v44, %v1999_v26  ;;  %2996 = vmatpush1.bf16.msra.mxu0 %v7817_v33  ;;  %3206 = vmatpush1.bf16.msra.mxu1 %v9984_v56  ;;  %v2143_v8 = vpop.f32.mrf.mxu0  ;;  %v2388_v6 = vmax.f32 %v2316_v47, 0.0  ;;  %v7869_v31 = vld [vmem:[%s9550_s3 + $0xe0] sm:$0xff]   ;;  %v9991_v56 = vld [vmem:[#allocation69_spill] sm:$0xff] }
 0x1f0   : > { %v2318_v27 = vadd.f32 %v9951_v61, %v2229_v29  ;;  %3126 = vrot.lane.b32.xlu1 %v2445_v4, %s6243_s19  ;;  %v2001_v37 = vpop.f32.mrf.mxu1  ;;  %2997 = vmatprep.subr.bf16.mxu0 %v9950_v32  ;;  %v7846_v44 = vpack.c.bf16 %v2381_v22, %v2378_v21  ;;  %v2232_v45 = vmax.f32 %v7748_v63, %v2143_v8  ;;  %v2396_v21 = vmax.f32 %v2324_v51, 0.0  ;;  %v9990_v51 = vld [vmem:[#allocation131_spill] sm:$0xff] }
 0x1f1   : > { %9983 = vst [vmem:[#allocation6_spill] sm:$0xff] %v7831_v25  ;;  %v2319_v2 = vadd.f32 %v7532_v62, %v2230_v54  ;;  %v2231_v48 = vmax.f32 %v7669_v16, %v2001_v37  ;;  %5469 = vmatprep.mubr.msk.bf16.mxu0 %vm2593_vm1, %v7831_v25  ;;  %5491 = vmatprep.mubr.msk.bf16.mxu1 %vm2593_vm1, %v7831_v25  ;;  %v5957_v16 = vpop.f32.mrf.mxu0  ;;  %v2389_v22 = vmax.f32 %v2317_v23, 0.0 }
 0x1f2   : > { %v9989_v40 = vmax.f32 %v9987_v20, %v9988_v53  ;;  %v2327_v35 = vadd.f32 %v9951_v61, %v2238_v38  ;;  %v2005_v5 = vpop.f32.mrf.mxu1  ;;  %2659 = vmatmul.mubr.bf16.gmra.mxu0 %v2445_v4  ;;  %2850 = vmatmul.mubr.bf16.gmra.mxu1 %v2445_v4  ;;  %v2321_v17 = vadd.f32 %v9951_v61, %v2232_v45  ;;  %v2390_v47 = vmax.f32 %v2318_v27, 0.0  ;;  %v9992_v38 = vld [vmem:[#allocation132_spill] sm:$0xff]  ;;  %v9993_v20 = vld [vmem:[#allocation134_spill] sm:$0xff] }
 0x1f3   : > { %v2391_v63 = vmax.f32 %v2319_v2, 0.0  ;;  %v2320_v11 = vadd.f32 %v7541_v50, %v2231_v48  ;;  %v2233_v42 = vmax.f32 %v7676_v30, %v2005_v5  ;;  %2998 = vmatpush1.bf16.msra.mxu0 %v7839_v39  ;;  %3207 = vmatprep.subr.bf16.mxu1 %v9950_v32  ;;  %v2247_v14 = vmax.f32 %v9990_v51, %v5957_v16  ;;  %v2156_v26 = vpop.f32.mrf.mxu0  ;;  %v9994_v53 = vld [vmem:[#allocation44_spill] sm:$0xff]  ;;  %v9997_v5 = vld [vmem:[#allocation133_spill] sm:$0xff]  ;;  %v10000_v51 = vld [vmem:[#allocation91_spill] sm:$0xff] }
 0x1f4   : > { %v7859_v55 = vmax.f32 %v9989_v40, %v9986_v13  ;;  %v2399_v59 = vmax.f32 %v2327_v35, 0.0  ;;  %3128 = vrot.lane.b32.xlu1 %v7831_v25, %s6243_s19  ;;  %v2007_v29 = vpop.f32.mrf.mxu1  ;;  %2999 = vmatprep.subr.bf16.mxu0 %v9950_v32  ;;  %v2393_v4 = vmax.f32 %v2321_v17, 0.0  ;;  %v2241_v37 = vmax.f32 %v9992_v38, %v2156_v26  ;;  %v9995_v40 = vld [vmem:[#allocation95_spill] sm:$0xff] }
 0x1f5   : > { %v7876_v30 = vpack.c.bf16 %v2391_v63, %v2388_v6  ;;  %v2392_v0 = vmax.f32 %v2320_v11, 0.0  ;;  %v2322_v54 = vadd.f32 %v7532_v62, %v2233_v42  ;;  %3208 = vmatpush1.bf16.msra.mxu1 %v9991_v56  ;;  %v2336_v27 = vadd.f32 %v9951_v61, %v2247_v14  ;;  %v5958_v2 = vpop.f32.mrf.mxu0 }
 0x1f6   : > { %v7880_v23 = vpack.c.bf16 %v2399_v59, %v2396_v21  ;;  %v2234_v49 = vmax.f32 %v7686_v28, %v2007_v29  ;;  %v2009_v8 = vpop.f32.mrf.mxu1  ;;  %3209 = vmatprep.subr.bf16.mxu1 %v9950_v32  ;;  %v7888_v45 = vpack.c.bf16 %v2393_v4, %v2390_v47  ;;  %v7897_v28 = vld [vmem:[%s9550_s3 + $0xd8] sm:$0xff]   ;;  %v9996_v6 = vmax.f32 %v9994_v53, %v9995_v40  ;;  %v9998_v47 = vld [vmem:[#allocation143_spill] sm:$0xff]  ;;  %v9999_v59 = vld [vmem:[#allocation40_spill] sm:$0xff] }
 0x1f7   : > { %v7886_v48 = vpack.c.bf16 %v2392_v0, %v2389_v22  ;;  %v2236_v13 = vmax.f32 %v7692_v58, %v2009_v8  ;;  %3130 = vrot.lane.b32.xlu0 %v7876_v30, %s6243_s19  ;;  %3000 = vmatpush1.bf16.msra.mxu0 %v7869_v31  ;;  %v2330_v58 = vadd.f32 %v9951_v61, %v2241_v37  ;;  %v2159_v11 = vpop.f32.mrf.mxu0  ;;  %v2394_v26 = vmax.f32 %v2322_v54, 0.0  ;;  %v7934_v54 = vld [vmem:[%s9550_s3 + $0xd0] sm:$0xff]  }
 0x1f8   : > { %v7903_v21 = vmax.f32 %v9996_v6, %v9993_v20  ;;  %v2323_v35 = vadd.f32 %v7541_v50, %v2234_v49  ;;  %v2250_v16 = vmax.f32 %v9997_v5, %v5958_v2  ;;  %v2011_v63 = vpop.f32.mrf.mxu1  ;;  %3001 = vmatprep.subr.bf16.mxu0 %v9950_v32  ;;  %v2244_v22 = vmax.f32 %v7859_v55, %v2159_v11  ;;  %v10003_v6 = vld [vmem:[#allocation73_spill] sm:$0xff] }
 0x1f9   : > { %v2325_v17 = vadd.f32 %v7532_v62, %v2236_v13  ;;  %v2237_v42 = vmax.f32 %v7698_v36, %v2011_v63  ;;  %3132 = vrot.lane.b32.xlu1 %v7886_v48, %s6243_s19  ;;  %5470 = vmatprep.mubr.msk.bf16.mxu0 %vm2593_vm1, %v7886_v48  ;;  %v10001_v14 = vmax.f32 %v9999_v59, %v10000_v51  ;;  %v2408_v0 = vmax.f32 %v2336_v27, 0.0  ;;  %v5961_v55 = vpop.f32.mrf.mxu0  ;;  %v10002_v13 = vld [vmem:[#allocation137_spill] sm:$0xff] }
 0x1fa   : > { %v2339_v4 = vadd.f32 %v9951_v61, %v2250_v16  ;;  %5492 = vmatprep.mubr.msk.bf16.mxu1 %vm2593_vm1, %v7886_v48  ;;  %v2015_v36 = vpop.f32.mrf.mxu1  ;;  %2667 = vmatmul.mubr.bf16.gmra.mxu0 %v7876_v30  ;;  %v2333_v38 = vadd.f32 %v9951_v61, %v2244_v22  ;;  %v2395_v27 = vmax.f32 %v2323_v35, 0.0  ;;  %v2402_v8 = vmax.f32 %v2330_v58, 0.0 }
 0x1fb   : > { %v7920_v29 = vmax.f32 %v10001_v14, %v9998_v47  ;;  %v2397_v56 = vmax.f32 %v2325_v17, 0.0  ;;  %v2326_v49 = vadd.f32 %v7541_v50, %v2237_v42  ;;  %v2239_v37 = vmax.f32 %v7714_v10, %v2015_v36  ;;  %2858 = vmatmul.mubr.bf16.gmra.mxu1 %v7876_v30  ;;  %3002 = vmatpush1.bf16.msra.mxu0 %v7897_v28  ;;  %v2172_v40 = vpop.f32.mrf.mxu0  ;;  %v10004_v17 = vld [vmem:[#allocation139_spill] sm:$0xff] }
 0x1fc   : > { %v2411_v2 = vmax.f32 %v2339_v4, 0.0  ;;  %v2259_v20 = vmax.f32 %v10002_v13, %v5961_v55  ;;  %v2017_v53 = vpop.f32.mrf.mxu1  ;;  %3003 = vmatprep.subr.bf16.mxu0 %v9950_v32  ;;  %3210 = vmatpush1.bf16.msra.mxu1 %v10003_v6  ;;  %v2405_v16 = vmax.f32 %v2333_v38, 0.0  ;;  %v2253_v42 = vmax.f32 %v10004_v17, %v2172_v40  ;;  %v10005_v4 = vld [vmem:[#allocation141_spill] sm:$0xff] }
 0x1fd   : > { %v7939_v10 = vpack.c.bf16 %v2397_v56, %v2394_v26  ;;  %v2398_v5 = vmax.f32 %v2326_v49, 0.0  ;;  %v2328_v63 = vadd.f32 %v7532_v62, %v2239_v37  ;;  %3219 = vmatprep.subr.bf16.mxu1 %v9950_v32  ;;  %v2240_v58 = vmax.f32 %v7722_v41, %v2017_v53  ;;  %v5962_v47 = vpop.f32.mrf.mxu0  ;;  %v7959_v26 = vld [vmem:[%s9550_s3 + $0xc8] sm:$0xff]  }
 0x1fe   : > { %v7943_v11 = vpack.c.bf16 %v2411_v2, %v2408_v0  ;;  %v2348_v35 = vadd.f32 %v9951_v61, %v2259_v20  ;;  %v2019_v22 = vpop.f32.mrf.mxu1  ;;  %v7950_v51 = vpack.c.bf16 %v2405_v16, %v2402_v8  ;;  %v2342_v0 = vadd.f32 %v9951_v61, %v2253_v42  ;;  %v10008_v8 = vld [vmem:[#allocation45_spill] sm:$0xff]  ;;  %v10009_v2 = vld [vmem:[#allocation96_spill] sm:$0xff] }
 0x1ff   : > { %v7948_v59 = vpack.c.bf16 %v2398_v5, %v2395_v27  ;;  %v2242_v14 = vmax.f32 %v7728_v43, %v2019_v22  ;;  %3134 = vrot.lane.b32.xlu0 %v7939_v10, %s6243_s19  ;;  %3004 = vmatpush1.bf16.msra.mxu0 %v7934_v54  ;;  %v2329_v41 = vadd.f32 %v7541_v50, %v2240_v58  ;;  %v2175_v56 = vpop.f32.mrf.mxu0  ;;  %v10006_v43 = vld [vmem:[#allocation76_spill] sm:$0xff]  ;;  %v10007_v27 = vld [vmem:[#allocation151_spill] sm:$0xff]  ;;  %v2400_v53 = vmax.f32 %v2328_v63, 0.0 }
 0x200   : > { %v2262_v36 = vmax.f32 %v10005_v4, %v5962_v47  ;;  %v2021_v55 = vpop.f32.mrf.mxu1  ;;  %3005 = vmatprep.subr.bf16.mxu0 %v9950_v32  ;;  %3220 = vmatpush2.bf16.msra.mxu1 %v10006_v43  ;;  %v2256_v37 = vmax.f32 %v7920_v29, %v2175_v56  ;;  %v10010_v13 = vmax.f32 %v10008_v8, %v10009_v2  ;;  %v2420_v40 = vmax.f32 %v2348_v35, 0.0  ;;  %v7991_v63 = vld [vmem:[%s9550_s3 + $0xc0] sm:$0xff]   ;;  %v10012_v47 = vld [vmem:[#allocation145_spill] sm:$0xff] }
 0x201   : > { %v2331_v49 = vadd.f32 %v7532_v62, %v2242_v14  ;;  %v2243_v38 = vmax.f32 %v7738_v60, %v2021_v55  ;;  %3136 = vrot.lane.b32.xlu1 %v7948_v59, %s6243_s19  ;;  %5471 = vmatprep.mubr.msk.bf16.mxu0 %vm2593_vm1, %v7948_v59  ;;  %v5965_v29 = vpop.f32.mrf.mxu0  ;;  %10011 = vst [vmem:[#allocation52_spill] sm:$0xff] %v7991_v63  ;;  %v2401_v35 = vmax.f32 %v2329_v41, 0.0  ;;  %v2414_v42 = vmax.f32 %v2342_v0, 0.0  ;;  %v8002_v41 = vld [vmem:[%s9550_s3 + $0xb0] sm:$0xff]  }
 0x202   : > { %v7977_v20 = vmax.f32 %v10010_v13, %v10007_v27  ;;  %v2351_v6 = vadd.f32 %v9951_v61, %v2262_v36  ;;  %5493 = vmatprep.mubr.msk.bf16.mxu1 %vm2593_vm1, %v7948_v59  ;;  %v2025_v60 = vpop.f32.mrf.mxu1  ;;  %2675 = vmatmul.mubr.bf16.gmra.mxu0 %v7939_v10  ;;  %v2345_v58 = vadd.f32 %v9951_v61, %v2256_v37 }
 0x203   : > { %v2403_v5 = vmax.f32 %v2331_v49, 0.0  ;;  %v2332_v16 = vadd.f32 %v7541_v50, %v2243_v38  ;;  %v2245_v17 = vmax.f32 %v7758_v7, %v2025_v60  ;;  %2866 = vmatmul.mubr.bf16.gmra.mxu1 %v7939_v10  ;;  %3006 = vmatpush1.bf16.msra.mxu0 %v7959_v26  ;;  %v2271_v14 = vmax.f32 %v10012_v47, %v5965_v29  ;;  %v2188_v36 = vpop.f32.mrf.mxu0  ;;  %v10014_v38 = vld [vmem:[#allocation147_spill] sm:$0xff] }
 0x204   : > { %v2423_v22 = vmax.f32 %v2351_v6, 0.0  ;;  %v2027_v4 = vpop.f32.mrf.mxu1  ;;  %3007 = vmatprep.subr.bf16.mxu0 %v9950_v32  ;;  %3221 = vmatprep.subr.bf16.mxu1 %v9950_v32  ;;  %v2417_v56 = vmax.f32 %v2345_v58, 0.0  ;;  %10013 = vst [vmem:[#allocation80_spill] sm:$0xff] %v8002_v41  ;;  %v2265_v37 = vmax.f32 %v10014_v38, %v2188_v36  ;;  %v10015_v6 = vld [vmem:[#allocation149_spill] sm:$0xff]  ;;  %v10017_v29 = vld [vmem:[#allocation51_spill] sm:$0xff]  ;;  %v10019_v36 = vld [vmem:[#allocation136_spill] sm:$0xff] }
 0x205   : > { %v7996_v7 = vpack.c.bf16 %v2403_v5, %v2400_v53  ;;  %v2404_v55 = vmax.f32 %v2332_v16, 0.0  ;;  %v2334_v43 = vadd.f32 %v7532_v62, %v2245_v17  ;;  %3222 = vmatpush2.bf16.msra.mxu1 %v8002_v41  ;;  %v2360_v0 = vadd.f32 %v9951_v61, %v2271_v14  ;;  %v5966_v8 = vpop.f32.mrf.mxu0 }
 0x206   : > { %v2246_v49 = vmax.f32 %v7778_v24, %v2027_v4  ;;  %v2029_v27 = vpop.f32.mrf.mxu1  ;;  %v8008_v2 = vpack.c.bf16 %v2423_v22, %v2420_v40  ;;  %3223 = vmatprep.subr.bf16.mxu1 %v9950_v32  ;;  %v2274_v60 = vmax.f32 %v10015_v6, %v5966_v8  ;;  %v10016_v24 = vld [vmem:[#allocation100_spill] sm:$0xff]  ;;  %v2354_v40 = vadd.f32 %v9951_v61, %v2265_v37 }
 0x207   : > { %v8011_v13 = vpack.c.bf16 %v2404_v55, %v2401_v35  ;;  %v2248_v53 = vmax.f32 %v7807_v46, %v2029_v27  ;;  %3138 = vrot.lane.b32.xlu0 %v7996_v7, %s6243_s19  ;;  %3008 = vmatpush1.bf16.msra.mxu0 %v7991_v63  ;;  %v1426_v5 = vmax.f32 %v10017_v29, %v10016_v24  ;;  %v2191_v17 = vpop.f32.mrf.mxu0  ;;  %v8026_v46 = vld [vmem:[%s9550_s3 + $0x118] sm:$0xff]   ;;  %v10020_v55 = vld [vmem:[#allocation47_spill] sm:$0xff]  ;;  %v10024_v8 = vld [vmem:[#allocation48_spill] sm:$0xff] }
 0x208   : > { %v2335_v16 = vadd.f32 %v7541_v50, %v2246_v49  ;;  %v2031_v58 = vpop.f32.mrf.mxu1  ;;  %3017 = vmatprep.subr.bf16.mxu0 %v9950_v32  ;;  %10018 = vst [vmem:[#allocation29_spill] sm:$0xff] %v8026_v46  ;;  %v8028_v35 = vpack.c.bf16 %v2417_v56, %v2414_v42  ;;  %v2363_v47 = vadd.f32 %v9951_v61, %v2274_v60  ;;  %v10021_v49 = vld [vmem:[#allocation97_spill] sm:$0xff]  ;;  %v10023_v27 = vld [vmem:[#allocation138_spill] sm:$0xff]  ;;  %v10029_v60 = vld [vmem:[#allocation99_spill] sm:$0xff] }
 0x209   : > { %v2337_v22 = vadd.f32 %v7532_v62, %v2248_v53  ;;  %v2249_v14 = vmax.f32 %v7903_v21, %v2031_v58  ;;  %v2268_v4 = vmax.f32 %v7977_v20, %v2191_v17  ;;  %3140 = vrot.lane.b32.xlu1 %v8011_v13, %s6243_s19  ;;  %v10022_v38 = vmax.f32 %v10020_v55, %v10021_v49  ;;  %v10025_v42 = vld [vmem:[#allocation98_spill] sm:$0xff]  ;;  %v10027_v53 = vld [vmem:[#allocation140_spill] sm:$0xff] }
 0x20a   : > { %v10026_v56 = vmax.f32 %v10024_v8, %v10025_v42  ;;  %v10028_v24 = vld [vmem:[#allocation50_spill] sm:$0xff]  ;;  %v2406_v58 = vmax.f32 %v2334_v43, 0.0  ;;  %5472 = vmatprep.mubr.msk.bf16.mxu0 %vm2593_vm1, %v8011_v13  ;;  %5494 = vmatprep.mubr.msk.bf16.mxu1 %vm2593_vm1, %v8011_v13  ;;  %v2035_v20 = vpop.f32.mrf.mxu1  ;;  %v2426_v43 = vmax.f32 %v2354_v40, 0.0 }
 0x20b   : > { %v1897_v37 = vmax.f32 %v10022_v38, %v10019_v36  ;;  %v10030_v29 = vmax.f32 %v10028_v24, %v10029_v60  ;;  %v2409_v17 = vmax.f32 %v2337_v22, 0.0  ;;  %v2435_v36 = vmax.f32 %v2363_v47, 0.0  ;;  %2683 = vmatmul.mubr.bf16.gmra.mxu0 %v7996_v7  ;;  %2874 = vmatmul.mubr.bf16.gmra.mxu1 %v7996_v7  ;;  %v8060_v22 = vld [vmem:[%s9550_s3 + $0x110] sm:$0xff]  }
 0x20c   : > { %v1898_v6 = vmax.f32 %v10026_v56, %v10023_v27  ;;  %v2338_v55 = vadd.f32 %v7541_v50, %v2249_v14  ;;  %v2357_v49 = vadd.f32 %v9951_v61, %v2268_v4  ;;  %v2432_v38 = vmax.f32 %v2360_v0, 0.0  ;;  %v2037_v42 = vpop.f32.mrf.mxu1  ;;  %3018 = vmatpush2.bf16.msra.mxu0 %v8026_v46  ;;  %10031 = vst [vmem:[#allocation81_spill] sm:$0xff] %v8060_v22  ;;  %v8065_v61 = vld [vmem:[%s9550_s3 + $0xa8] sm:$0xff]   ;;  %v10033_v14 = vld [vmem:[#allocation142_spill] sm:$0xff] }
 0x20d   : > { %v1900_v21 = vmax.f32 %v10030_v29, %v10027_v53  ;;  %v2407_v27 = vmax.f32 %v2335_v16, 0.0  ;;  %v2251_v8 = vmax.f32 %v1897_v37, %v2035_v20  ;;  %10032 = vst [vmem:[#allocation30_spill] sm:$0xff] %v8065_v61  ;;  %3224 = vmatpush2.bf16.msra.mxu1 %v8065_v61  ;;  %v8068_v47 = vpack.c.bf16 %v2409_v17, %v2406_v58  ;;  %v10037_v58 = vld [vmem:[#allocation54_spill] sm:$0xff]  ;;  %v10038_v20 = vld [vmem:[#allocation101_spill] sm:$0xff]  ;;  %v10063_v61 = vld [vmem:[#allocation19_spill] sm:$0xff] }
 0x20e   : > { %v2410_v0 = vmax.f32 %v2338_v55, 0.0  ;;  %v2429_v16 = vmax.f32 %v2357_v49, 0.0  ;;  %v2252_v40 = vmax.f32 %v1898_v6, %v2037_v42  ;;  %3019 = vmatprep.subr.bf16.mxu0 %v9950_v32  ;;  %3225 = vmatprep.subr.bf16.mxu1 %v9950_v32  ;;  %v1901_v4 = vmax.f32 %v1426_v5, %v10033_v14  ;;  %v2039_v37 = vpop.f32.mrf.mxu1  ;;  %v10036_v6 = vld [vmem:[#allocation144_spill] sm:$0xff]  ;;  %v10044_v42 = vld [vmem:[#allocation103_spill] sm:$0xff] }
 0x20f   : > { %v8073_v56 = vpack.c.bf16 %v2435_v36, %v2432_v38  ;;  %v2340_v24 = vadd.f32 %v7532_v62, %v2251_v8  ;;  %v2254_v60 = vmax.f32 %v1900_v21, %v2039_v37  ;;  %3142 = vrot.lane.b32.xlu0 %v8068_v47, %s6243_s19  ;;  %v10039_v17 = vmax.f32 %v10037_v58, %v10038_v20  ;;  %v8090_v5 = vld [vmem:[%s9550_s3 + $0x108] sm:$0xff]   ;;  %v8095_v21 = vld [vmem:[%s9550_s3 + $0xa0] sm:$0xff]   ;;  %v10047_v58 = vld [vmem:[#allocation61_spill] sm:$0xff] }
 0x210   : > { %v8075_v53 = vpack.c.bf16 %v2410_v0, %v2407_v27  ;;  %v8080_v29 = vpack.c.bf16 %v2429_v16, %v2426_v43  ;;  %v2041_v49 = vpop.f32.mrf.mxu1  ;;  %3020 = vmatpush2.bf16.msra.mxu0 %v8060_v22  ;;  %10040 = vst [vmem:[#allocation102_spill] sm:$0xff] %v8090_v5  ;;  %10041 = vst [vmem:[#allocation8_spill] sm:$0xff] %v8095_v21  ;;  %v2341_v36 = vadd.f32 %v7541_v50, %v2252_v40  ;;  %v10042_v43 = vld [vmem:[#allocation146_spill] sm:$0xff]  ;;  %v10043_v8 = vld [vmem:[#allocation56_spill] sm:$0xff] }
 0x211   : > { %10034 = vst [vmem:[#allocation85_spill] sm:$0xff] %v8073_v56  ;;  %v1903_v55 = vmax.f32 %v10039_v17, %v10036_v6  ;;  %3226 = vmatpush2.bf16.msra.mxu1 %v8095_v21  ;;  %v2343_v38 = vadd.f32 %v7532_v62, %v2254_v60  ;;  %v2255_v27 = vmax.f32 %v1901_v4, %v2041_v49  ;;  %v2412_v40 = vmax.f32 %v2340_v24, 0.0  ;;  %v10046_v6 = vld [vmem:[#allocation106_spill] sm:$0xff]  ;;  %v10048_v17 = vld [vmem:[#allocation148_spill] sm:$0xff]  ;;  %v10049_v49 = vld [vmem:[#allocation59_spill] sm:$0xff] }
 0x212   : > { %10035 = vst [vmem:[#allocation34_spill] sm:$0xff] %v8080_v29  ;;  %3144 = vrot.lane.b32.xlu1 %v8075_v53, %s6243_s19  ;;  %5473 = vmatprep.mubr.msk.bf16.mxu0 %vm2593_vm1, %v8075_v53  ;;  %v10045_v0 = vmax.f32 %v10043_v8, %v10044_v42  ;;  %v2045_v14 = vpop.f32.mrf.mxu1  ;;  %v1432_v20 = vmax.f32 %v10047_v58, %v10046_v6  ;;  %v8124_v24 = vld [vmem:[%s9550_s3 + $0x100] sm:$0xff]   ;;  %v10067_v22 = vld [vmem:[#allocation68_spill] sm:$0xff] }
 0x213   : > { %5495 = vmatprep.mubr.msk.bf16.mxu1 %vm2593_vm1, %v8075_v53  ;;  %3021 = vmatprep.subr.bf16.mxu0 %v9950_v32  ;;  %v2415_v37 = vmax.f32 %v2343_v38, 0.0  ;;  %v2344_v4 = vadd.f32 %v7541_v50, %v2255_v27  ;;  %v2257_v60 = vmax.f32 %v1903_v55, %v2045_v14  ;;  %10052 = vst [vmem:[#allocation55_spill] sm:$0xff] %v8124_v24  ;;  %v2413_v55 = vmax.f32 %v2341_v36, 0.0  ;;  %v10053_v6 = vld [vmem:[#allocation107_spill] sm:$0xff]  ;;  %v10056_v36 = vld [vmem:[#allocation152_spill] sm:$0xff] }
 0x214   : > { %v1904_v16 = vmax.f32 %v10045_v0, %v10042_v43  ;;  %2691 = vmatmul.mubr.bf16.gmra.mxu0 %v8068_v47  ;;  %2882 = vmatmul.mubr.bf16.gmra.mxu1 %v8068_v47  ;;  %v10050_v43 = vld [vmem:[#allocation104_spill] sm:$0xff]  ;;  %v2047_v0 = vpop.f32.mrf.mxu1  ;;  %v10054_v58 = vld [vmem:[#allocation3_spill] sm:$0xff] }
 0x215   : > { %v10051_v8 = vmax.f32 %v10049_v49, %v10050_v43  ;;  %3022 = vmatpush2.bf16.msra.mxu0 %v8090_v5  ;;  %3433 = vmatprep.subr.bf16.mxu1 %v9950_v32  ;;  %v2416_v38 = vmax.f32 %v2344_v4, 0.0  ;;  %v8127_v14 = vpack.c.bf16 %v2415_v37, %v2412_v40  ;;  %v10055_v43 = vld [vmem:[#allocation150_spill] sm:$0xff]  ;;  %v2346_v57 = vadd.f32 %v7532_v62, %v2257_v60  ;;  %v10057_v60 = vld [vmem:[#allocation111_spill] sm:$0xff] }
 0x216   : > { %v2258_v27 = vmax.f32 %v1904_v16, %v2047_v0  ;;  %3023 = vmatprep.subr.bf16.mxu0 %v9950_v32  ;;  %v2049_v49 = vpop.f32.mrf.mxu1 }
 0x217   : > { %v1906_v42 = vmax.f32 %v10051_v8, %v10048_v17  ;;  %v1434_v17 = vmax.f32 %v10054_v58, %v10053_v6  ;;  %v1907_v8 = vmax.f32 %v1432_v20, %v10055_v43  ;;  %v8133_v25 = vpack.c.bf16 %v2416_v38, %v2413_v55  ;;  %3146 = vrot.lane.b32.xlu0 %v8127_v14, %s6243_s19  ;;  %v10058_v20 = vld [vmem:[#allocation5_spill] sm:$0xff] }
 0x218   : > { %v2051_v40 = vpop.f32.mrf.mxu1  ;;  %v2347_v37 = vadd.f32 %v7541_v50, %v2258_v27  ;;  %v2418_v38 = vmax.f32 %v2346_v57, 0.0  ;;  %v10061_v43 = vld [vmem:[#allocation113_spill] sm:$0xff]  ;;  %v10064_v57 = vld [vmem:[#allocation115_spill] sm:$0xff] }
 0x219   : > { %v2260_v21 = vmax.f32 %v1906_v42, %v2049_v49  ;;  %v1909_v16 = vmax.f32 %v1434_v17, %v10056_v36  ;;  %3024 = vmatpush2.bf16.msra.mxu0 %v8124_v24  ;;  %v2261_v0 = vmax.f32 %v1907_v8, %v2051_v40  ;;  %3148 = vrot.lane.b32.xlu1 %v8133_v25, %s6243_s19  ;;  %v10060_v17 = vld [vmem:[#allocation4_spill] sm:$0xff]  ;;  %v10062_v8 = vld [vmem:[#allocation7_spill] sm:$0xff] }
 0x21a   : > { %5474 = vmatprep.mubr.msk.bf16.mxu0 %vm2593_vm1, %v8133_v25  ;;  %v1437_v42 = vmax.f32 %v10058_v20, %v10057_v60  ;;  %v2055_v55 = vpop.f32.mrf.mxu1  ;;  %3314 = vmatprep.subr.bf16.mxu0 %v9950_v32  ;;  %v1438_v36 = vmax.f32 %v10062_v8, %v10061_v43  ;;  %v2419_v60 = vmax.f32 %v2347_v37, 0.0  ;;  %v10069_v37 = vld [vmem:[#allocation11_spill] sm:$0xff] }
 0x21b   : > { %v2349_v4 = vadd.f32 %v7532_v62, %v2260_v21  ;;  %v2350_v58 = vadd.f32 %v7541_v50, %v2261_v0  ;;  %v2263_v27 = vmax.f32 %v1909_v16, %v2055_v55  ;;  %v10059_v21 = vld [vmem:[#allocation109_spill] sm:$0xff] }
 0x21c   : > { %2699 = vmatmul.mubr.bf16.gmra.mxu0 %v8127_v14  ;;  %v1435_v49 = vmax.f32 %v10060_v17, %v10059_v21  ;;  %v2057_v40 = vpop.f32.mrf.mxu1  ;;  %v1912_v41 = vmax.f32 %v1437_v42, %v10063_v61  ;;  %v10066_v0 = vld [vmem:[#allocation153_spill] sm:$0xff]  ;;  %v1913_v46 = vmax.f32 %v1438_v36, %v10067_v22  ;;  %v10073_v36 = vld [vmem:[#allocation24_spill] sm:$0xff] }
 0x21d   : > { %v2421_v6 = vmax.f32 %v2349_v4, 0.0  ;;  %v2422_v20 = vmax.f32 %v2350_v58, 0.0  ;;  %v10065_v4 = vld [vmem:[#allocation9_spill] sm:$0xff]  ;;  %v2352_v21 = vadd.f32 %v7532_v62, %v2263_v27 }
 0x21e   : > { %v1440_v5 = vmax.f32 %v10065_v4, %v10064_v57  ;;  %v1910_v16 = vmax.f32 %v1435_v49, %v10066_v0  ;;  %v2059_v55 = vpop.f32.mrf.mxu1  ;;  %v10068_v61 = vld [vmem:[#allocation117_spill] sm:$0xff]  ;;  %v10075_v0 = vld [vmem:[#allocation15_spill] sm:$0xff] }
 0x21f   : > { %v8156_v24 = vpack.c.bf16 %v2421_v6, %v2418_v38  ;;  %v8162_v63 = vpack.c.bf16 %v2422_v20, %v2419_v60  ;;  %v2266_v17 = vmax.f32 %v1912_v41, %v2059_v55  ;;  %v1441_v42 = vmax.f32 %v10069_v37, %v10068_v61  ;;  %v10070_v38 = vld [vmem:[#allocation20_spill] sm:$0xff]  ;;  %v10071_v41 = vld [vmem:[#allocation119_spill] sm:$0xff]  ;;  %v10072_v22 = vld [vmem:[#allocation13_spill] sm:$0xff] }
 0x220   : > { %v1915_v6 = vmax.f32 %v1440_v5, %v10070_v38  ;;  %v2061_v58 = vpop.f32.mrf.mxu1  ;;  %v2264_v43 = vmax.f32 %v1910_v16, %v2057_v40  ;;  %v1443_v27 = vmax.f32 %v10072_v22, %v10071_v41  ;;  %v2424_v57 = vmax.f32 %v2352_v21, 0.0 }
 0x221   : > { %3150 = vrot.lane.b32.xlu0 %v8156_v24, %s6243_s19  ;;  %v2355_v49 = vadd.f32 %v7532_v62, %v2266_v17  ;;  %v2267_v8 = vmax.f32 %v1913_v46, %v2061_v58  ;;  %3152 = vrot.lane.b32.xlu1 %v8162_v63, %s6243_s19  ;;  %v1916_v60 = vmax.f32 %v1441_v42, %v10073_v36  ;;  %v10074_v46 = vld [vmem:[#allocation121_spill] sm:$0xff]  ;;  %v10076_v17 = vld [vmem:[#allocation74_spill] sm:$0xff] }
 0x222   : > { %5475 = vmatprep.mubr.msk.bf16.mxu0 %vm2593_vm1, %v8162_v63  ;;  %v2065_v20 = vpop.f32.mrf.mxu1  ;;  %v1444_v16 = vmax.f32 %v10075_v0, %v10074_v46  ;;  %v1918_v61 = vmax.f32 %v1443_v27, %v10076_v17  ;;  %v2353_v21 = vadd.f32 %v7541_v50, %v2264_v43  ;;  %v8290_v46 = vld [vmem:[%s9550_s3 + $0x8] sm:$0xff]   ;;  %v8313_v0 = vld [vmem:[%s9550_s3 + $0x58] sm:$0xff]  }
 0x223   : > { %v2427_v4 = vmax.f32 %v2355_v49, 0.0  ;;  %v2356_v5 = vadd.f32 %v7541_v50, %v2267_v8  ;;  %v2269_v40 = vmax.f32 %v1915_v6, %v2065_v20  ;;  %10084 = vst [vmem:[#allocation14_spill] sm:$0xff] %v8290_v46  ;;  %10085 = vst [vmem:[#allocation62_spill] sm:$0xff] %v8313_v0 }
 0x224   : > { %2707 = vmatmul.mubr.bf16.gmra.mxu0 %v8156_v24  ;;  %v2067_v55 = vpop.f32.mrf.mxu1  ;;  %v2425_v41 = vmax.f32 %v2353_v21, 0.0 }
 0x225   : > { %3296 = vrot.lane.b32.xlu0 %v7607_v1, %s6243_s19  ;;  %5532 = vmatprep.mubr.msk.bf16.mxu0 %vm2593_vm1, %v7886_v48  ;;  %v2270_v37 = vmax.f32 %v1916_v60, %v2067_v55  ;;  %v8190_v42 = vpack.c.bf16 %v2427_v4, %v2424_v57  ;;  %v1919_v1 = vmax.f32 %v1444_v16, %v7656_v15  ;;  %v2428_v6 = vmax.f32 %v2356_v5, 0.0  ;;  %v8226_v4 = vld [vmem:[%s9550_s3 + $0x30] sm:$0xff]   ;;  %v8240_v5 = vld [vmem:[%s9550_s3 + $0x28] sm:$0xff]   ;;  %v8337_v55 = vld [vmem:[%s9550_s3 + $0x40] sm:$0xff]  }
 0x226   : > { %3298 = vrot.lane.b32.xlu1 %v7633_v3, %s6243_s19  ;;  %v2069_v38 = vpop.f32.mrf.mxu1  ;;  %v2358_v58 = vadd.f32 %v7532_v62, %v2269_v40  ;;  %10079 = vst [vmem:[#allocation10_spill] sm:$0xff] %v8226_v4  ;;  %10080 = vst [vmem:[#allocation57_spill] sm:$0xff] %v8240_v5  ;;  %v8265_v40 = vld [vmem:[%s9550_s3 + $0x18] sm:$0xff]   ;;  %v8320_v16 = vld [vmem:[%s9550_s3 + $0x50] sm:$0xff]  }
 0x227   : > { %v2272_v49 = vmax.f32 %v1918_v61, %v2069_v38  ;;  %v2359_v43 = vadd.f32 %v7541_v50, %v2270_v37  ;;  %10082 = vst [vmem:[#allocation12_spill] sm:$0xff] %v8265_v40  ;;  %10086 = vst [vmem:[#allocation108_spill] sm:$0xff] %v8320_v16 }
 0x228   : > { %v2071_v8 = vpop.f32.mrf.mxu1  ;;  %v2430_v36 = vmax.f32 %v2358_v58, 0.0  ;;  %10088 = vst [vmem:[#allocation64_spill] sm:$0xff] %v8337_v55 }
 0x229   : > { %3300 = vrot.lane.b32.xlu0 %v7707_v52, %s6243_s19  ;;  %v2361_v22 = vadd.f32 %v7532_v62, %v2272_v49  ;;  %v2273_v27 = vmax.f32 %v1919_v1, %v2071_v8  ;;  %v8204_v52 = vpack.c.bf16 %v2428_v6, %v2425_v41  ;;  %v8211_v62 = vld [vmem:[%s9550_s3 + $0x38] sm:$0xff]   ;;  %v2431_v20 = vmax.f32 %v2359_v43, 0.0  ;;  %v10093_v6 = vld [vmem:[#allocation52_spill] sm:$0xff]  ;;  %v10094_v49 = vld [vmem:[#allocation29_spill] sm:$0xff] }
 0x22a   : > { %3302 = vrot.lane.b32.xlu1 %v7730_v18, %s6243_s19  ;;  %v10096_v8 = vld [vmem:[#allocation81_spill] sm:$0xff] }
 0x22b   : > { %v2433_v60 = vmax.f32 %v2361_v22, 0.0  ;;  %v2362_v15 = vadd.f32 %v7541_v50, %v2273_v27  ;;  %10077 = vst [vmem:[#allocation90_spill] sm:$0xff] %v8204_v52  ;;  %v10097_v22 = vld [vmem:[#allocation102_spill] sm:$0xff] }
 0x22c   : > { %3026 = vmatmul.mubr.bf16.vlgmr.msra.gmra.mxu0 %v7876_v30 }
 0x22d   : > { %3415 = vrot.lane.b32.xlu0 %v8190_v42, %s6243_s19  ;;  %5533 = vmatprep.mubr.msk.bf16.mxu0 %vm2593_vm1, %v7948_v59  ;;  %v2434_v57 = vmax.f32 %v2362_v15, 0.0  ;;  %v8216_v50 = vpack.c.bf16 %v2433_v60, %v2430_v36  ;;  %v10099_v60 = vld [vmem:[#allocation55_spill] sm:$0xff] }
 0x22e   : > { %3315 = vmatpush1.bf16.msra.mxu0 %v8211_v62  ;;  %3417 = vrot.lane.b32.xlu1 %v8204_v52, %s6243_s19 }
 0x22f   : > { %3316 = vmatprep.subr.bf16.mxu0 %v9950_v32  ;;  %v8221_v30 = vpack.c.bf16 %v2434_v57, %v2431_v20 }
 0x231   : > { %3419 = vrot.lane.b32.xlu0 %v8216_v50, %s6243_s19  ;;  %10078 = vst [vmem:[#allocation39_spill] sm:$0xff] %v8221_v30 }
 0x232   : > { %3317 = vmatpush1.bf16.msra.mxu0 %v8226_v4  ;;  %3421 = vrot.lane.b32.xlu1 %v8221_v30, %s6243_s19 }
 0x233   : > { %3318 = vmatprep.subr.bf16.mxu0 %v9950_v32 }
 0x234   : > { %3034 = vmatmul.mubr.bf16.gmra.mxu0 %v7939_v10  ;;  %v8251_v10 = vld [vmem:[%s9550_s3 + $0x20] sm:$0xff]  }
 0x235   : > { %3897 = vrot.lane.b32.xlu0 %v7846_v44, %s6243_s19  ;;  %5534 = vmatprep.mubr.msk.bf16.mxu0 %vm2593_vm1, %v8011_v13  ;;  %10081 = vst [vmem:[#allocation105_spill] sm:$0xff] %v8251_v10 }
 0x236   : > { %3319 = vmatpush1.bf16.msra.mxu0 %v8240_v5  ;;  %3899 = vrot.lane.b32.xlu1 %v7829_v19, %s6243_s19 }
 0x237   : > { %3320 = vmatprep.subr.bf16.mxu0 %v9950_v32 }
 0x239   : > { %3901 = vrot.lane.b32.xlu0 %v7888_v45, %s6243_s19 }
 0x23a   : > { %3321 = vmatpush1.bf16.msra.mxu0 %v8251_v10  ;;  %3903 = vrot.lane.b32.xlu1 %v7880_v23, %s6243_s19 }
 0x23b   : > { %3322 = vmatprep.subr.bf16.mxu0 %v9950_v32 }
 0x23c   : > { %3042 = vmatmul.mubr.bf16.gmra.mxu0 %v7996_v7  ;;  %v8276_v7 = vld [vmem:[%s9550_s3 + $0x10] sm:$0xff]  }
 0x23d   : > { %3905 = vrot.lane.b32.xlu0 %v7950_v51, %s6243_s19  ;;  %5535 = vmatprep.mubr.msk.bf16.mxu0 %vm2593_vm1, %v8075_v53  ;;  %10083 = vst [vmem:[#allocation60_spill] sm:$0xff] %v8276_v7 }
 0x23e   : > { %3323 = vmatpush1.bf16.msra.mxu0 %v8265_v40  ;;  %3907 = vrot.lane.b32.xlu1 %v7943_v11, %s6243_s19 }
 0x23f   : > { %3324 = vmatprep.subr.bf16.mxu0 %v9950_v32 }
 0x241   : > { %3909 = vrot.lane.b32.xlu0 %v8028_v35, %s6243_s19 }
 0x242   : > { %3325 = vmatpush1.bf16.msra.mxu0 %v8276_v7  ;;  %3911 = vrot.lane.b32.xlu1 %v8008_v2, %s6243_s19 }
 0x243   : > { %3326 = vmatprep.subr.bf16.mxu0 %v9950_v32 }
 0x244   : > { %3050 = vmatmul.mubr.bf16.gmra.mxu0 %v8068_v47  ;;  %v8301_v47 = vld [vmem:[%s9550_s3] sm:$0xff]  }
 0x245   : > { %4052 = vrot.lane.b32.xlu0 %v7794_v9, %s6243_s19  ;;  %5536 = vmatprep.mubr.msk.bf16.mxu0 %vm2593_vm1, %v8133_v25 }
 0x246   : > { %3327 = vmatpush1.bf16.msra.mxu0 %v8290_v46  ;;  %4054 = vrot.lane.b32.xlu1 %v7772_v34, %s6243_s19 }
 0x247   : > { %3328 = vmatprep.subr.bf16.mxu0 %v9950_v32 }
 0x249   : > { %4165 = vrot.lane.b32.xlu0 %v8080_v29, %s6243_s19 }
 0x24a   : > { %3329 = vmatpush1.bf16.msra.mxu0 %v8301_v47  ;;  %4167 = vrot.lane.b32.xlu1 %v8073_v56, %s6243_s19 }
 0x24b   : > { %3338 = vmatprep.subr.bf16.mxu0 %v9950_v32 }
 0x24c   : > { %3058 = vmatmul.mubr.bf16.gmra.mxu0 %v8127_v14  ;;  %v8330_v14 = vld [vmem:[%s9550_s3 + $0x48] sm:$0xff]  }
 0x24d   : > { %5537 = vmatprep.mubr.msk.bf16.mxu0 %vm2593_vm1, %v8162_v63  ;;  %10087 = vst [vmem:[#allocation16_spill] sm:$0xff] %v8330_v14 }
 0x24e   : > { %3339 = vmatpush2.bf16.msra.mxu0 %v8313_v0 }
 0x24f   : > { %3340 = vmatprep.subr.bf16.mxu0 %v9950_v32 }
 0x252   : > { %3341 = vmatpush2.bf16.msra.mxu0 %v8320_v16 }
 0x253   : > { %3342 = vmatprep.subr.bf16.mxu0 %v9950_v32 }
 0x254   : > { %3066 = vmatmul.mubr.bf16.gmra.mxu0 %v8156_v24 }
 0x255   : > { %5538 = vmatprep.mubr.msk.bf16.mxu0 %vm2593_vm1, %v8204_v52 }
 0x256   : > { %3343 = vmatpush2.bf16.msra.mxu0 %v8330_v14 }
 0x257   : > { %3344 = vmatprep.subr.bf16.mxu0 %v9950_v32 }
 0x25a   : > { %3345 = vmatpush2.bf16.msra.mxu0 %v8337_v55  ;;  %v3123_v24 = vpop.permute.xlu0 %3122 }
 0x25b   : > { %3570 = vmatprep.subr.bf16.mxu0 %v9950_v32 }
 0x25c   : > { %3074 = vmatmul.mubr.bf16.gmra.mxu0 %v8190_v42 }
 0x25d   : > { %5539 = vmatprep.mubr.msk.bf16.mxu0 %vm2593_vm1, %v8221_v30  ;;  %v8479_v30 = vld [vmem:[%s9550_s3 + $0x88] sm:$0xff]  }
 0x25e   : > { %v8344_v17 = vpop.permute.xlu0 %3124 }
 0x25f   : > { %v8348_v61 = vsel %vm2593_vm1, %v3123_v24, %v8344_v17  ;;  %5540 = vmatprep.mubr.msk.bf16.mxu1 %vm2593_vm1, %v8344_v17 }
 0x260   : > { %3228 = vmatmul.mubr.bf16.vlgmr.msra.gmra.mxu1 %v8348_v61 }
 0x261   : > { %3434 = vmatpush1.bf16.msra.mxu1 %v7787_v12 }
 0x262   : > { %v3127_v21 = vpop.permute.xlu1 %3126  ;;  %3435 = vmatprep.subr.bf16.mxu1 %v9950_v32 }
 0x264   : > { %3082 = vmatmul.mubr.bf16.gmra.mxu0 %v8216_v50 }
 0x265   : > { %3436 = vmatpush1.bf16.msra.mxu1 %v7817_v33 }
 0x266   : > { %v8357_v37 = vpop.permute.xlu1 %3128  ;;  %3437 = vmatprep.subr.bf16.mxu1 %v9950_v32 }
 0x267   : > { %10089 = vst [vmem:[#allocation110_spill] sm:$0xff] %v8357_v37  ;;  %5541 = vmatprep.mubr.msk.bf16.mxu1 %vm2593_vm1, %v8357_v37  ;;  %v8364_v42 = vsel %vm2593_vm1, %v3127_v21, %v8357_v37 }
 0x268   : > { %3236 = vmatmul.mubr.bf16.gmra.mxu1 %v8364_v42 }
 0x269   : > { %3438 = vmatpush1.bf16.msra.mxu1 %v7839_v39  ;;  %v3131_v33 = vpop.permute.xlu0 %3130 }
 0x26a   : > { %3439 = vmatprep.subr.bf16.mxu1 %v9950_v32 }
 0x26b   : > { %v8369_v12 = vpop.permute.xlu1 %3132 }
 0x26c   : > { %10090 = vst [vmem:[#allocation17_spill] sm:$0xff] %v8369_v12  ;;  %5542 = vmatprep.mubr.msk.bf16.mxu1 %vm2593_vm1, %v8369_v12  ;;  %v8377_v38 = vsel %vm2593_vm1, %v3131_v33, %v8369_v12 }
 0x26d   : > { %3440 = vmatpush1.bf16.msra.mxu1 %v7869_v31 }
 0x26e   : > { %3441 = vmatprep.subr.bf16.mxu1 %v9950_v32 }
 0x270   : > { %3244 = vmatmul.mubr.bf16.gmra.mxu1 %v8377_v38 }
 0x271   : > { %3442 = vmatpush1.bf16.msra.mxu1 %v7897_v28  ;;  %v3135_v31 = vpop.permute.xlu0 %3134 }
 0x272   : > { %3443 = vmatprep.subr.bf16.mxu1 %v9950_v32 }
 0x273   : > { %v8382_v39 = vpop.permute.xlu1 %3136 }
 0x274   : > { %10091 = vst [vmem:[#allocation65_spill] sm:$0xff] %v8382_v39  ;;  %5543 = vmatprep.mubr.msk.bf16.mxu1 %vm2593_vm1, %v8382_v39  ;;  %v8390_v1 = vsel %vm2593_vm1, %v3135_v31, %v8382_v39 }
 0x275   : > { %3444 = vmatpush1.bf16.msra.mxu1 %v7934_v54 }
 0x276   : > { %3445 = vmatprep.subr.bf16.mxu1 %v9950_v32 }
 0x278   : > { %3252 = vmatmul.mubr.bf16.gmra.mxu1 %v8390_v1 }
 0x279   : > { %3446 = vmatpush1.bf16.msra.mxu1 %v7959_v26  ;;  %v3139_v54 = vpop.permute.xlu0 %3138 }
 0x27a   : > { %3447 = vmatprep.subr.bf16.mxu1 %v9950_v32 }
 0x27b   : > { %v8395_v28 = vpop.permute.xlu1 %3140 }
 0x27c   : > { %10092 = vst [vmem:[#allocation112_spill] sm:$0xff] %v8395_v28  ;;  %5544 = vmatprep.mubr.msk.bf16.mxu1 %vm2593_vm1, %v8395_v28  ;;  %v8403_v58 = vsel %vm2593_vm1, %v3139_v54, %v8395_v28 }
 0x27d   : > { %3448 = vmatpush1.bf16.msra.mxu1 %v10093_v6  ;;  %v8452_v6 = vld [vmem:[%s9550_s3 + $0x98] sm:$0xff]  }
 0x27e   : > { %3457 = vmatprep.subr.bf16.mxu1 %v9950_v32 }
 0x280   : > { %3260 = vmatmul.mubr.bf16.gmra.mxu1 %v8403_v58 }
 0x281   : > { %3458 = vmatpush2.bf16.msra.mxu1 %v10094_v49  ;;  %v3143_v41 = vpop.permute.xlu0 %3142 }
 0x282   : > { %3459 = vmatprep.subr.bf16.mxu1 %v9950_v32 }
 0x284   : > { %v8408_v26 = vpop.permute.xlu1 %3144 }
 0x285   : > { %10095 = vst [vmem:[#allocation18_spill] sm:$0xff] %v8408_v26  ;;  %5545 = vmatprep.mubr.msk.bf16.mxu1 %vm2593_vm1, %v8408_v26  ;;  %3460 = vmatpush2.bf16.msra.mxu1 %v10096_v8  ;;  %v8416_v43 = vsel %vm2593_vm1, %v3143_v41, %v8408_v26 }
 0x286   : > { %3461 = vmatprep.subr.bf16.mxu1 %v9950_v32 }
 0x288   : > { %3268 = vmatmul.mubr.bf16.gmra.mxu1 %v8416_v43 }
 0x289   : > { %3462 = vmatpush2.bf16.msra.mxu1 %v10097_v22  ;;  %v3147_v36 = vpop.permute.xlu0 %3146 }
 0x28a   : > { %3463 = vmatprep.subr.bf16.mxu1 %v9950_v32 }
 0x28b   : > { %v8421_v27 = vpop.permute.xlu1 %3148 }
 0x28c   : > { %10098 = vst [vmem:[#allocation67_spill] sm:$0xff] %v8421_v27  ;;  %5546 = vmatprep.mubr.msk.bf16.mxu1 %vm2593_vm1, %v8421_v27  ;;  %v8429_v15 = vsel %vm2593_vm1, %v3147_v36, %v8421_v27 }
 0x28d   : > { %3464 = vmatpush2.bf16.msra.mxu1 %v10099_v60 }
 0x28e   : > { %3673 = vmatprep.subr.bf16.mxu1 %v9950_v32 }
 0x290   : > { %3276 = vmatmul.mubr.bf16.gmra.mxu1 %v8429_v15 }
 0x293   : > { %v3151_v20 = vpop.permute.xlu0 %3150  ;;  %v8432_v57 = vpop.permute.xlu1 %3152 }
 0x294   : > { %10100 = vst [vmem:[#allocation114_spill] sm:$0xff] %v8432_v57  ;;  %5547 = vmatprep.mubr.msk.bf16.mxu1 %vm2593_vm1, %v8432_v57  ;;  %v8438_v24 = vsel %vm2593_vm1, %v3151_v20, %v8432_v57  ;;  %v2827_v31 = vpop.f32.mrf.mxu1  ;;  %v8463_v20 = vld [vmem:[%s9550_s3 + $0x90] sm:$0xff]  }
 0x296   : > { %v2829_v41 = vpop.f32.mrf.mxu1 }
 0x297   : > { %v3297_v50 = vpop.permute.xlu0 %3296 }
 0x298   : > { %v8440_v21 = vpop.permute.xlu1 %3298  ;;  %3284 = vmatmul.mubr.bf16.gmra.mxu1 %v8438_v24  ;;  %v2830_v36 = vpop.f32.mrf.mxu1 }
 0x299   : > { %10101 = vst [vmem:[#allocation116_spill] sm:$0xff] %v8440_v21  ;;  %v3304_v33 = vsel %vm2593_vm1, %v3297_v50, %v8440_v21  ;;  %5548 = vmatprep.mubr.msk.bf16.mxu0 %vm2593_vm1, %v8440_v21  ;;  %5556 = vmatprep.mubr.msk.bf16.mxu1 %vm2593_vm1, %v8369_v12 }
 0x29a   : > { %3347 = vmatmul.mubr.bf16.vlgmr.msra.gmra.mxu0 %v3304_v33  ;;  %v2832_v33 = vpop.f32.mrf.mxu1 }
 0x29b   : > { %3571 = vmatpush1.bf16.msra.mxu0 %v8452_v6  ;;  %v3301_v50 = vpop.permute.xlu0 %3300 }
 0x29c   : > { %v8455_v54 = vpop.permute.xlu1 %3302  ;;  %3572 = vmatprep.subr.bf16.mxu0 %v9950_v32 }
 0x29d   : > { %10102 = vst [vmem:[#allocation21_spill] sm:$0xff] %v8455_v54  ;;  %5549 = vmatprep.mubr.msk.bf16.mxu0 %vm2593_vm1, %v8455_v54  ;;  %v3305_v41 = vsel %vm2593_vm1, %v3301_v50, %v8455_v54 }
 0x29f   : > { %3573 = vmatpush1.bf16.msra.mxu0 %v8463_v20 }
 0x2a0   : > { %3574 = vmatprep.subr.bf16.mxu0 %v9950_v32  ;;  %3466 = vmatmul.mubr.bf16.vlgmr.msra.gmra.mxu1 %v8377_v38 }
 0x2a1   : > { %5557 = vmatprep.mubr.msk.bf16.mxu1 %vm2593_vm1, %v8382_v39  ;;  %3674 = vmatpush1.bf16.msra.mxu1 %v8211_v62  ;;  %v2835_v21 = vpop.f32.mrf.mxu1 }
 0x2a2   : > { %3355 = vmatmul.mubr.bf16.gmra.mxu0 %v3305_v41  ;;  %3675 = vmatprep.subr.bf16.mxu1 %v9950_v32  ;;  %v8488_v41 = vld [vmem:[%s9550_s3 + $0x80] sm:$0xff]  }
 0x2a3   : > { %5550 = vmatprep.mubr.msk.bf16.mxu0 %vm2593_vm1, %v8344_v17  ;;  %3575 = vmatpush1.bf16.msra.mxu0 %v8479_v30  ;;  %v2837_v33 = vpop.f32.mrf.mxu1 }
 0x2a4   : > { %3576 = vmatprep.subr.bf16.mxu0 %v9950_v32 }
 0x2a5   : > { %3676 = vmatpush1.bf16.msra.mxu1 %v8226_v4  ;;  %v2838_v50 = vpop.f32.mrf.mxu1 }
 0x2a6   : > { %3677 = vmatprep.subr.bf16.mxu1 %v9950_v32 }
 0x2a7   : > { %3577 = vmatpush1.bf16.msra.mxu0 %v8488_v41  ;;  %v2840_v54 = vpop.f32.mrf.mxu1 }
 0x2a8   : > { %3474 = vmatmul.mubr.bf16.gmra.mxu1 %v8390_v1  ;;  %3578 = vmatprep.subr.bf16.mxu0 %v9950_v32  ;;  %v8505_v54 = vld [vmem:[%s9550_s3 + $0x78] sm:$0xff]  }
 0x2a9   : > { %5558 = vmatprep.mubr.msk.bf16.mxu1 %vm2593_vm1, %v8395_v28  ;;  %3678 = vmatpush1.bf16.msra.mxu1 %v8240_v5 }
 0x2aa   : > { %3363 = vmatmul.mubr.bf16.gmra.mxu0 %v8348_v61  ;;  %v2652_v33 = vpop.f32.mrf.mxu0  ;;  %v2843_v56 = vpop.f32.mrf.mxu1  ;;  %3679 = vmatprep.subr.bf16.mxu1 %v9950_v32 }
 0x2ab   : > { %v8498_v52 = vadd.f32 %v2827_v31, %v2652_v33  ;;  %5551 = vmatprep.mubr.msk.bf16.mxu0 %vm2593_vm1, %v8357_v37  ;;  %3579 = vmatpush1.bf16.msra.mxu0 %v8505_v54  ;;  %v8516_v33 = vld [vmem:[%s9550_s3 + $0x70] sm:$0xff]  }
 0x2ac   : > { %v2654_v29 = vpop.f32.mrf.mxu0  ;;  %v2845_v5 = vpop.f32.mrf.mxu1  ;;  %3580 = vmatprep.subr.bf16.mxu0 %v9950_v32 }
 0x2ad   : > { %3680 = vmatpush1.bf16.msra.mxu1 %v8251_v10 }
 0x2ae   : > { %v2655_v61 = vpop.f32.mrf.mxu0  ;;  %v2846_v4 = vpop.f32.mrf.mxu1  ;;  %3681 = vmatprep.subr.bf16.mxu1 %v9950_v32 }
 0x2af   : > { %v8511_v31 = vadd.f32 %v2830_v36, %v2655_v61  ;;  %3581 = vmatpush1.bf16.msra.mxu0 %v8516_v33 }
 0x2b0   : > { %3482 = vmatmul.mubr.bf16.gmra.mxu1 %v8403_v58  ;;  %v2657_v29 = vpop.f32.mrf.mxu0  ;;  %v2848_v5 = vpop.f32.mrf.mxu1  ;;  %3582 = vmatprep.subr.bf16.mxu0 %v9950_v32 }
 0x2b1   : > { %5559 = vmatprep.mubr.msk.bf16.mxu1 %vm2593_vm1, %v8408_v26  ;;  %3682 = vmatpush1.bf16.msra.mxu1 %v8265_v40  ;;  %v8533_v29 = vld [vmem:[%s9550_s3 + $0x68] sm:$0xff]  }
 0x2b2   : > { %3371 = vmatmul.mubr.bf16.gmra.mxu0 %v8364_v42  ;;  %v2660_v36 = vpop.f32.mrf.mxu0  ;;  %v2851_v61 = vpop.f32.mrf.mxu1  ;;  %3683 = vmatprep.subr.bf16.mxu1 %v9950_v32 }
 0x2b3   : > { %v8526_v10 = vadd.f32 %v2835_v21, %v2660_v36  ;;  %5552 = vmatprep.mubr.msk.bf16.mxu0 %vm2593_vm1, %v8369_v12  ;;  %3583 = vmatpush1.bf16.msra.mxu0 %v8533_v29  ;;  %v8544_v36 = vld [vmem:[%s9550_s3 + $0x60] sm:$0xff]  }
 0x2b4   : > { %v2662_v5 = vpop.f32.mrf.mxu0  ;;  %v2853_v40 = vpop.f32.mrf.mxu1  ;;  %3584 = vmatprep.subr.bf16.mxu0 %v9950_v32 }
 0x2b5   : > { %3684 = vmatpush1.bf16.msra.mxu1 %v8276_v7 }
 0x2b6   : > { %v2663_v42 = vpop.f32.mrf.mxu0  ;;  %v2854_v37 = vpop.f32.mrf.mxu1  ;;  %3685 = vmatprep.subr.bf16.mxu1 %v9950_v32 }
 0x2b7   : > { %v8539_v21 = vadd.f32 %v2838_v50, %v2663_v42  ;;  %3585 = vmatpush1.bf16.msra.mxu0 %v8544_v36 }
 0x2b8   : > { %3490 = vmatmul.mubr.bf16.gmra.mxu1 %v8416_v43  ;;  %v2665_v40 = vpop.f32.mrf.mxu0  ;;  %v2856_v5 = vpop.f32.mrf.mxu1  ;;  %3594 = vmatprep.subr.bf16.mxu0 %v9950_v32 }
 0x2b9   : > { %5560 = vmatprep.mubr.msk.bf16.mxu1 %vm2593_vm1, %v8421_v27  ;;  %3686 = vmatpush1.bf16.msra.mxu1 %v8290_v46  ;;  %v8561_v40 = vld [vmem:[%s9550_s3 + $0xb8] sm:$0xff]  }
 0x2ba   : > { %3379 = vmatmul.mubr.bf16.gmra.mxu0 %v8377_v38  ;;  %v2668_v50 = vpop.f32.mrf.mxu0  ;;  %3687 = vmatprep.subr.bf16.mxu1 %v9950_v32 }
 0x2bb   : > { %v8554_v42 = vadd.f32 %v2843_v56, %v2668_v50  ;;  %v2859_v7 = vpop.f32.mrf.mxu1  ;;  %5553 = vmatprep.mubr.msk.bf16.mxu0 %vm2593_vm1, %v8382_v39  ;;  %3595 = vmatpush2.bf16.msra.mxu0 %v8561_v40  ;;  %v10103_v39 = vld [vmem:[#allocation80_spill] sm:$0xff] }
 0x2bc   : > { %v2670_v5 = vpop.f32.mrf.mxu0  ;;  %3596 = vmatprep.subr.bf16.mxu0 %v9950_v32 }
 0x2bd   : > { %v2861_v38 = vpop.f32.mrf.mxu1  ;;  %3688 = vmatpush1.bf16.msra.mxu1 %v8301_v47 }
 0x2be   : > { %v2671_v27 = vpop.f32.mrf.mxu0  ;;  %3697 = vmatprep.subr.bf16.mxu1 %v9950_v32 }
 0x2bf   : > { %v8567_v56 = vadd.f32 %v2846_v4, %v2671_v27  ;;  %v2862_v50 = vpop.f32.mrf.mxu1  ;;  %3597 = vmatpush2.bf16.msra.mxu0 %v10103_v39 }
 0x2c0   : > { %3498 = vmatmul.mubr.bf16.gmra.mxu1 %v8429_v15  ;;  %v2673_v46 = vpop.f32.mrf.mxu0  ;;  %3598 = vmatprep.subr.bf16.mxu0 %v9950_v32 }
 0x2c1   : > { %v2864_v12 = vpop.f32.mrf.mxu1  ;;  %5561 = vmatprep.mubr.msk.bf16.mxu1 %vm2593_vm1, %v8432_v57  ;;  %3698 = vmatpush2.bf16.msra.mxu1 %v8313_v0  ;;  %v10104_v46 = vld [vmem:[#allocation30_spill] sm:$0xff]  ;;  %v10107_v0 = vld [vmem:[#allocation25_spill] sm:$0xff] }
 0x2c2   : > { %3387 = vmatmul.mubr.bf16.gmra.mxu0 %v8390_v1  ;;  %v2676_v5 = vpop.f32.mrf.mxu0  ;;  %3699 = vmatprep.subr.bf16.mxu1 %v9950_v32 }
 0x2c3   : > { %v8577_v4 = vadd.f32 %v2851_v61, %v2676_v5  ;;  %v2867_v27 = vpop.f32.mrf.mxu1  ;;  %5554 = vmatprep.mubr.msk.bf16.mxu0 %vm2593_vm1, %v8395_v28  ;;  %3599 = vmatpush2.bf16.msra.mxu0 %v10104_v46  ;;  %v10105_v61 = vld [vmem:[#allocation8_spill] sm:$0xff]  ;;  %v8588_v5 = vpop.permute.xlu1 %3417 }
 0x2c4   : > { %v2678_v39 = vpop.f32.mrf.mxu0  ;;  %3600 = vmatprep.subr.bf16.mxu0 %v9950_v32  ;;  %10106 = vst [vmem:[#allocation70_spill] sm:$0xff] %v8588_v5 }
 0x2c5   : > { %v2869_v12 = vpop.f32.mrf.mxu1  ;;  %3700 = vmatpush2.bf16.msra.mxu1 %v8320_v16 }
 0x2c6   : > { %v2679_v15 = vpop.f32.mrf.mxu0  ;;  %3701 = vmatprep.subr.bf16.mxu1 %v9950_v32 }
 0x2c7   : > { %v8585_v1 = vadd.f32 %v2854_v37, %v2679_v15  ;;  %v2870_v38 = vpop.f32.mrf.mxu1  ;;  %3601 = vmatpush2.bf16.msra.mxu0 %v10105_v61  ;;  %v3416_v15 = vpop.permute.xlu0 %3415 }
 0x2c8   : > { %3506 = vmatmul.mubr.bf16.gmra.mxu1 %v8438_v24  ;;  %v2681_v57 = vpop.f32.mrf.mxu0  ;;  %3776 = vmatprep.subr.bf16.mxu0 %v9950_v32  ;;  %v8605_v16 = vpop.permute.xlu1 %3421 }
 0x2c9   : > { %v2872_v46 = vpop.f32.mrf.mxu1  ;;  %5562 = vmatprep.mubr.msk.bf16.mxu1 %vm2593_vm1, %v8588_v5  ;;  %3702 = vmatpush2.bf16.msra.mxu1 %v8330_v14 }
 0x2ca   : > { %3395 = vmatmul.mubr.bf16.gmra.mxu0 %v8403_v58  ;;  %3703 = vmatprep.subr.bf16.mxu1 %v9950_v32  ;;  %v3423_v58 = vsel %vm2593_vm1, %v3416_v15, %v8588_v5 }
 0x2cb   : > { %v2684_v37 = vpop.f32.mrf.mxu0  ;;  %v2875_v39 = vpop.f32.mrf.mxu1  ;;  %5555 = vmatprep.mubr.msk.bf16.mxu0 %vm2593_vm1, %v8408_v26 }
 0x2cc   : > { %v8599_v12 = vadd.f32 %v2859_v7, %v2684_v37 }
 0x2cd   : > { %v2686_v57 = vpop.f32.mrf.mxu0  ;;  %v2877_v24 = vpop.f32.mrf.mxu1  ;;  %3704 = vmatpush2.bf16.msra.mxu1 %v8337_v55 }
 0x2ce   : > { %3953 = vmatprep.subr.bf16.mxu1 %v9950_v32  ;;  %v3420_v55 = vpop.permute.xlu0 %3419 }
 0x2cf   : > { %v2687_v46 = vpop.f32.mrf.mxu0  ;;  %v2878_v14 = vpop.f32.mrf.mxu1 }
 0x2d0   : > { %v8607_v28 = vadd.f32 %v2862_v50, %v2687_v46  ;;  %3514 = vmatmul.mubr.bf16.gmra.mxu1 %v3423_v58 }
 0x2d1   : > { %v2689_v26 = vpop.f32.mrf.mxu0  ;;  %v2880_v7 = vpop.f32.mrf.mxu1  ;;  %5563 = vmatprep.mubr.msk.bf16.mxu1 %vm2593_vm1, %v8605_v16 }
 0x2d2   : > { %3403 = vmatmul.mubr.bf16.gmra.mxu0 %v8416_v43  ;;  %v3424_v26 = vsel %vm2593_vm1, %v3420_v55, %v8605_v16 }
 0x2d3   : > { %5564 = vmatprep.mubr.msk.bf16.mxu0 %vm2593_vm1, %v7846_v44 }
 0x2d4   : > { %v2692_v37 = vpop.f32.mrf.mxu0  ;;  %v2883_v57 = vpop.f32.mrf.mxu1 }
 0x2d5   : > { %v8614_v24 = vadd.f32 %v2867_v27, %v2692_v37 }
 0x2d6   : > { %v2694_v15 = vpop.f32.mrf.mxu0  ;;  %v2885_v5 = vpop.f32.mrf.mxu1 }
 0x2d7   : > { %v8628_v5 = vld [vmem:[%s9550_s3 + $0xf8] sm:$0xff]  }
 0x2d8   : > { %v2695_v50 = vpop.f32.mrf.mxu0  ;;  %v2886_v46 = vpop.f32.mrf.mxu1  ;;  %3522 = vmatmul.mubr.bf16.gmra.mxu1 %v3424_v26 }
 0x2d9   : > { %v8618_v58 = vadd.f32 %v2870_v38, %v2695_v50  ;;  %5572 = vmatprep.mubr.msk.bf16.mxu1 %vm2593_vm1, %v7794_v9  ;;  %v8637_v9 = vld [vmem:[%s9550_s3 + $0xf0] sm:$0xff]  }
 0x2da   : > { %v2697_v7 = vpop.f32.mrf.mxu0  ;;  %v2888_v43 = vpop.f32.mrf.mxu1  ;;  %3603 = vmatmul.mubr.bf16.vlgmr.msra.gmra.mxu0 %v10107_v0 }
 0x2db   : > { %5565 = vmatprep.mubr.msk.bf16.mxu0 %vm2593_vm1, %v7829_v19  ;;  %3777 = vmatpush1.bf16.msra.mxu0 %v8628_v5  ;;  %v8665_v7 = vld [vmem:[%s9550_s3 + $0xe0] sm:$0xff]  }
 0x2dc   : > { %v2700_v27 = vpop.f32.mrf.mxu0  ;;  %3778 = vmatprep.subr.bf16.mxu0 %v9950_v32 }
 0x2dd   : > { %v8631_v55 = vadd.f32 %v2875_v39, %v2700_v27  ;;  %v10108_v39 = vld [vmem:[#allocation6_spill] sm:$0xff]  ;;  %v8694_v27 = vld [vmem:[%s9550_s3 + $0xd0] sm:$0xff]  }
 0x2de   : > { %v2702_v38 = vpop.f32.mrf.mxu0 }
 0x2df   : > { %3779 = vmatpush1.bf16.msra.mxu0 %v8637_v9 }
 0x2e0   : > { %v2703_v37 = vpop.f32.mrf.mxu0  ;;  %3706 = vmatmul.mubr.bf16.vlgmr.msra.gmra.mxu1 %v7633_v3  ;;  %3780 = vmatprep.subr.bf16.mxu0 %v9950_v32  ;;  %v8654_v3 = vld [vmem:[%s9550_s3 + $0xe8] sm:$0xff]  }
 0x2e1   : > { %v8640_v15 = vadd.f32 %v2878_v14, %v2703_v37  ;;  %5573 = vmatprep.mubr.msk.bf16.mxu1 %vm2593_vm1, %v7772_v34  ;;  %3954 = vmatpush1.bf16.msra.mxu1 %v8452_v6  ;;  %v8724_v37 = vld [vmem:[%s9550_s3 + $0xc0] sm:$0xff]  }
 0x2e2   : > { %v2705_v50 = vpop.f32.mrf.mxu0  ;;  %3611 = vmatmul.mubr.bf16.gmra.mxu0 %v10108_v39  ;;  %3955 = vmatprep.subr.bf16.mxu1 %v9950_v32 }
 0x2e3   : > { %5566 = vmatprep.mubr.msk.bf16.mxu0 %vm2593_vm1, %v7888_v45  ;;  %3781 = vmatpush1.bf16.msra.mxu0 %v8654_v3 }
 0x2e4   : > { %v2708_v26 = vpop.f32.mrf.mxu0  ;;  %3782 = vmatprep.subr.bf16.mxu0 %v9950_v32 }
 0x2e5   : > { %v8657_v14 = vadd.f32 %v2883_v57, %v2708_v26  ;;  %3956 = vmatpush1.bf16.msra.mxu1 %v8463_v20 }
 0x2e6   : > { %v2710_v34 = vpop.f32.mrf.mxu0  ;;  %3957 = vmatprep.subr.bf16.mxu1 %v9950_v32 }
 0x2e7   : > { %3783 = vmatpush1.bf16.msra.mxu0 %v8665_v7 }
 0x2e8   : > { %v2711_v6 = vpop.f32.mrf.mxu0  ;;  %3714 = vmatmul.mubr.bf16.gmra.mxu1 %v7730_v18  ;;  %3784 = vmatprep.subr.bf16.mxu0 %v9950_v32  ;;  %v8682_v18 = vld [vmem:[%s9550_s3 + $0xd8] sm:$0xff]  }
 0x2e9   : > { %v8668_v43 = vadd.f32 %v2886_v46, %v2711_v6  ;;  %5574 = vmatprep.mubr.msk.bf16.mxu1 %vm2593_vm1, %v7846_v44  ;;  %3958 = vmatpush1.bf16.msra.mxu1 %v8479_v30 }
 0x2ea   : > { %v2713_v57 = vpop.f32.mrf.mxu0  ;;  %3619 = vmatmul.mubr.bf16.gmra.mxu0 %v7886_v48  ;;  %3959 = vmatprep.subr.bf16.mxu1 %v9950_v32 }
 0x2eb   : > { %5567 = vmatprep.mubr.msk.bf16.mxu0 %vm2593_vm1, %v7880_v23  ;;  %3785 = vmatpush1.bf16.msra.mxu0 %v8682_v18 }
 0x2ec   : > { %v3027_v20 = vpop.f32.mrf.mxu0  ;;  %3786 = vmatprep.subr.bf16.mxu0 %v9950_v32 }
 0x2ed   : > { %v8686_v46 = vadd.f32 %v3027_v20, %v8498_v52  ;;  %3960 = vmatpush1.bf16.msra.mxu1 %v8488_v41  ;;  %v6212_v20 = vld [vmem:[%s9550_s3 + $0xa8] sm:$0xff]  }
 0x2ee   : > { %v3029_v44 = vpop.f32.mrf.mxu0  ;;  %3961 = vmatprep.subr.bf16.mxu1 %v9950_v32 }
 0x2ef   : > { %3787 = vmatpush1.bf16.msra.mxu0 %v8694_v27 }
 0x2f0   : > { %v3030_v30 = vpop.f32.mrf.mxu0  ;;  %3722 = vmatmul.mubr.bf16.gmra.mxu1 %v10107_v0  ;;  %3788 = vmatprep.subr.bf16.mxu0 %v9950_v32  ;;  %v8712_v0 = vld [vmem:[%s9550_s3 + $0xc8] sm:$0xff]  }
 0x2f1   : > { %v8698_v38 = vadd.f32 %v3030_v30, %v8511_v31  ;;  %5575 = vmatprep.mubr.msk.bf16.mxu1 %vm2593_vm1, %v7829_v19  ;;  %3962 = vmatpush1.bf16.msra.mxu1 %v8505_v54 }
 0x2f2   : > { %v3032_v52 = vpop.f32.mrf.mxu0  ;;  %3627 = vmatmul.mubr.bf16.gmra.mxu0 %v7948_v59  ;;  %3963 = vmatprep.subr.bf16.mxu1 %v9950_v32 }
 0x2f3   : > { %5568 = vmatprep.mubr.msk.bf16.mxu0 %vm2593_vm1, %v7950_v51  ;;  %3789 = vmatpush1.bf16.msra.mxu0 %v8712_v0 }
 0x2f4   : > { %v3035_v41 = vpop.f32.mrf.mxu0  ;;  %3790 = vmatprep.subr.bf16.mxu0 %v9950_v32 }
 0x2f5   : > { %v8716_v31 = vadd.f32 %v3035_v41, %v8526_v10  ;;  %3964 = vmatpush1.bf16.msra.mxu1 %v8516_v33 }
 0x2f6   : > { %v3037_v19 = vpop.f32.mrf.mxu0  ;;  %3965 = vmatprep.subr.bf16.mxu1 %v9950_v32 }
 0x2f7   : > { %3791 = vmatpush1.bf16.msra.mxu0 %v8724_v37 }
 0x2f8   : > { %v3038_v54 = vpop.f32.mrf.mxu0  ;;  %3730 = vmatmul.mubr.bf16.gmra.mxu1 %v10108_v39  ;;  %3800 = vmatprep.subr.bf16.mxu0 %v9950_v32 }
 0x2f9   : > { %v8728_v50 = vadd.f32 %v3038_v54, %v8539_v21  ;;  %5576 = vmatprep.mubr.msk.bf16.mxu1 %vm2593_vm1, %v7888_v45  ;;  %3966 = vmatpush1.bf16.msra.mxu1 %v8533_v29 }
 0x2fa   : > { %v3040_v10 = vpop.f32.mrf.mxu0  ;;  %3635 = vmatmul.mubr.bf16.gmra.mxu0 %v8011_v13  ;;  %3967 = vmatprep.subr.bf16.mxu1 %v9950_v32 }
 0x2fb   : > { %5569 = vmatprep.mubr.msk.bf16.mxu0 %vm2593_vm1, %v7943_v11  ;;  %3801 = vmatpush2.bf16.msra.mxu0 %v10094_v49 }
 0x2fc   : > { %v3043_v33 = vpop.f32.mrf.mxu0  ;;  %3802 = vmatprep.subr.bf16.mxu0 %v9950_v32 }
 0x2fd   : > { %v8741_v21 = vadd.f32 %v3043_v33, %v8554_v42  ;;  %3968 = vmatpush1.bf16.msra.mxu1 %v8544_v36  ;;  %v8808_v33 = vpop.permute.xlu0 %3897 }
 0x2fe   : > { %v3045_v39 = vpop.f32.mrf.mxu0  ;;  %3977 = vmatprep.subr.bf16.mxu1 %v9950_v32 }
 0x2ff   : > { %v4292_v29 = vmax.f32 %v8686_v46, %v8741_v21  ;;  %3803 = vmatpush2.bf16.msra.mxu0 %v10096_v8 }
 0x300   : > { %v3046_v26 = vpop.f32.mrf.mxu0  ;;  %3738 = vmatmul.mubr.bf16.gmra.mxu1 %v7886_v48  ;;  %3804 = vmatprep.subr.bf16.mxu0 %v9950_v32 }
 0x301   : > { %v8750_v34 = vadd.f32 %v3046_v26, %v8567_v56  ;;  %5577 = vmatprep.mubr.msk.bf16.mxu1 %vm2593_vm1, %v7880_v23  ;;  %3978 = vmatpush2.bf16.msra.mxu1 %v8561_v40  ;;  %v6211_v40 = vld [vmem:[%s9550_s3 + $0xb0] sm:$0xff]  }
 0x302   : > { %v3048_v49 = vpop.f32.mrf.mxu0  ;;  %3643 = vmatmul.mubr.bf16.gmra.mxu0 %v8075_v53  ;;  %3979 = vmatprep.subr.bf16.mxu1 %v9950_v32 }
 0x303   : > { %5570 = vmatprep.mubr.msk.bf16.mxu0 %vm2593_vm1, %v8028_v35  ;;  %3805 = vmatpush2.bf16.msra.mxu0 %v10097_v22  ;;  %v8829_v49 = vsel %vm2593_vm1, %v8344_v17, %v8808_v33  ;;  %v10132_v46 = vmax.f32 %v8698_v38, %v8750_v34 }
 0x304   : > { %v3051_v8 = vpop.f32.mrf.mxu0  ;;  %3806 = vmatprep.subr.bf16.mxu0 %v9950_v32 }
 0x305   : > { %v8765_v42 = vadd.f32 %v3051_v8, %v8577_v4  ;;  %3980 = vmatpush2.bf16.msra.mxu1 %v6211_v40  ;;  %v10109_v8 = vld [vmem:[#allocation10_spill] sm:$0xff] }
 0x306   : > { %v3053_v56 = vpop.f32.mrf.mxu0  ;;  %3981 = vmatprep.subr.bf16.mxu1 %v9950_v32 }
 0x307   : > { %3807 = vmatpush2.bf16.msra.mxu0 %v10099_v60 }
 0x308   : > { %v3054_v57 = vpop.f32.mrf.mxu0  ;;  %3746 = vmatmul.mubr.bf16.gmra.mxu1 %v7948_v59  ;;  %4066 = vmatprep.subr.bf16.mxu0 %v9950_v32 }
 0x309   : > { %v8776_v22 = vadd.f32 %v3054_v57, %v8585_v1  ;;  %5578 = vmatprep.mubr.msk.bf16.mxu1 %vm2593_vm1, %v7950_v51  ;;  %3982 = vmatpush2.bf16.msra.mxu1 %v6212_v20  ;;  %v10110_v57 = vld [vmem:[#allocation57_spill] sm:$0xff] }
 0x30a   : > { %v3056_v4 = vpop.f32.mrf.mxu0  ;;  %3651 = vmatmul.mubr.bf16.gmra.mxu0 %v8133_v25  ;;  %3983 = vmatprep.subr.bf16.mxu1 %v9950_v32 }
 0x30b   : > { %5571 = vmatprep.mubr.msk.bf16.mxu0 %vm2593_vm1, %v8008_v2 }
 0x30c   : > { %v3059_v60 = vpop.f32.mrf.mxu0 }
 0x30d   : > { %v8792_v1 = vadd.f32 %v3059_v60, %v8599_v12  ;;  %3984 = vmatpush2.bf16.msra.mxu1 %v10105_v61 }
 0x30e   : > { %v3061_v30 = vpop.f32.mrf.mxu0  ;;  %4179 = vmatprep.subr.bf16.mxu1 %v9950_v32 }
 0x310   : > { %v3062_v52 = vpop.f32.mrf.mxu0  ;;  %3754 = vmatmul.mubr.bf16.gmra.mxu1 %v8011_v13 }
 0x311   : > { %v8797_v41 = vadd.f32 %v3062_v52, %v8607_v28  ;;  %5579 = vmatprep.mubr.msk.bf16.mxu1 %vm2593_vm1, %v7943_v11 }
 0x312   : > { %v3064_v19 = vpop.f32.mrf.mxu0  ;;  %3659 = vmatmul.mubr.bf16.gmra.mxu0 %v8162_v63 }
 0x313   : > { %5580 = vmatprep.mubr.msk.bf16.mxu0 %vm2593_vm1, %v7888_v45  ;;  %v8867_v19 = vpop.permute.xlu0 %3901 }
 0x314   : > { %v3067_v54 = vpop.f32.mrf.mxu0 }
 0x315   : > { %v8806_v61 = vadd.f32 %v3067_v54, %v8614_v24 }
 0x316   : > { %v3069_v12 = vpop.f32.mrf.mxu0 }
 0x318   : > { %v3070_v10 = vpop.f32.mrf.mxu0  ;;  %3762 = vmatmul.mubr.bf16.gmra.mxu1 %v8075_v53 }
 0x319   : > { %v8811_v28 = vadd.f32 %v3070_v10, %v8618_v58  ;;  %5588 = vmatprep.mubr.msk.bf16.mxu1 %vm2593_vm1, %v8808_v33 }
 0x31a   : > { %v3072_v39 = vpop.f32.mrf.mxu0  ;;  %3809 = vmatmul.mubr.bf16.vlgmr.msra.gmra.mxu0 %v7886_v48 }
 0x31b   : > { %5581 = vmatprep.mubr.msk.bf16.mxu0 %vm2593_vm1, %v7880_v23  ;;  %4067 = vmatpush1.bf16.msra.mxu0 %v8211_v62  ;;  %v8832_v23 = vpop.permute.xlu1 %3899 }
 0x31c   : > { %v3075_v26 = vpop.f32.mrf.mxu0  ;;  %4068 = vmatprep.subr.bf16.mxu0 %v9950_v32 }
 0x31d   : > { %v8821_v45 = vadd.f32 %v3075_v26, %v8631_v55 }
 0x31e   : > { %v3077_v24 = vpop.f32.mrf.mxu0 }
 0x31f   : > { %4069 = vmatpush1.bf16.msra.mxu0 %v10109_v8  ;;  %v10114_v24 = vld [vmem:[#allocation17_spill] sm:$0xff]  ;;  %v8897_v8 = vpop.permute.xlu1 %3903 }
 0x320   : > { %v3078_v48 = vpop.f32.mrf.mxu0  ;;  %v8837_v55 = vpop.f32.mrf.mxu1  ;;  %3986 = vmatmul.mubr.bf16.vlgmr.msra.gmra.mxu1 %v8829_v49  ;;  %4070 = vmatprep.subr.bf16.mxu0 %v9950_v32 }
 0x321   : > { %v8835_v62 = vadd.f32 %v3078_v48, %v8640_v15  ;;  %5589 = vmatprep.mubr.msk.bf16.mxu1 %vm2593_vm1, %v8832_v23  ;;  %4180 = vmatpush1.bf16.msra.mxu1 %v8628_v5  ;;  %v10115_v48 = vld [vmem:[#allocation60_spill] sm:$0xff] }
 0x322   : > { %v3080_v56 = vpop.f32.mrf.mxu0  ;;  %v3231_v40 = vpop.f32.mrf.mxu1  ;;  %3817 = vmatmul.mubr.bf16.gmra.mxu0 %v7948_v59  ;;  %4181 = vmatprep.subr.bf16.mxu1 %v9950_v32 }
 0x323   : > { %5582 = vmatprep.mubr.msk.bf16.mxu0 %vm2593_vm1, %v7950_v51  ;;  %4071 = vmatpush1.bf16.msra.mxu0 %v10110_v57  ;;  %v10111_v51 = vld [vmem:[#allocation110_spill] sm:$0xff]  ;;  %v8922_v57 = vpop.permute.xlu0 %3905 }
 0x324   : > { %v3083_v15 = vpop.f32.mrf.mxu0  ;;  %v8854_v20 = vpop.f32.mrf.mxu1  ;;  %4072 = vmatprep.subr.bf16.mxu0 %v9950_v32  ;;  %v8864_v52 = vsel %vm2593_vm1, %v10111_v51, %v8832_v23  ;;  %v10116_v56 = vld [vmem:[#allocation14_spill] sm:$0xff] }
 0x325   : > { %v8852_v4 = vadd.f32 %v3083_v15, %v8657_v14  ;;  %4182 = vmatpush1.bf16.msra.mxu1 %v8637_v9  ;;  %v10112_v14 = vld [vmem:[#allocation105_spill] sm:$0xff]  ;;  %v8947_v51 = vpop.permute.xlu1 %3907 }
 0x326   : > { %v3085_v5 = vpop.f32.mrf.mxu0  ;;  %v3234_v60 = vpop.f32.mrf.mxu1  ;;  %4183 = vmatprep.subr.bf16.mxu1 %v9950_v32 }
 0x327   : > { %4073 = vmatpush1.bf16.msra.mxu0 %v10112_v14 }
 0x328   : > { %v3086_v30 = vpop.f32.mrf.mxu0  ;;  %v8872_v9 = vpop.f32.mrf.mxu1  ;;  %3994 = vmatmul.mubr.bf16.gmra.mxu1 %v8864_v52  ;;  %4074 = vmatprep.subr.bf16.mxu0 %v9950_v32 }
 0x329   : > { %v8870_v54 = vadd.f32 %v3086_v30, %v8668_v43  ;;  %5590 = vmatprep.mubr.msk.bf16.mxu1 %vm2593_vm1, %v8867_v19  ;;  %4184 = vmatpush1.bf16.msra.mxu1 %v8654_v3  ;;  %v10113_v43 = vld [vmem:[#allocation12_spill] sm:$0xff] }
 0x32a   : > { %v3088_v12 = vpop.f32.mrf.mxu0  ;;  %v3239_v39 = vpop.f32.mrf.mxu1  ;;  %3825 = vmatmul.mubr.bf16.gmra.mxu0 %v8011_v13  ;;  %4185 = vmatprep.subr.bf16.mxu1 %v9950_v32  ;;  %v8894_v13 = vsel %vm2593_vm1, %v10114_v24, %v8867_v19  ;;  %v10120_v30 = vld [vmem:[#allocation108_spill] sm:$0xff] }
 0x32b   : > { %5583 = vmatprep.mubr.msk.bf16.mxu0 %vm2593_vm1, %v7943_v11  ;;  %4075 = vmatpush1.bf16.msra.mxu0 %v10113_v43  ;;  %v10121_v12 = vld [vmem:[#allocation34_spill] sm:$0xff]  ;;  %v10122_v39 = vld [vmem:[#allocation16_spill] sm:$0xff] }
 0x32c   : > { %v8886_v26 = vpop.f32.mrf.mxu1  ;;  %4076 = vmatprep.subr.bf16.mxu0 %v9950_v32 }
 0x32d   : > { %4186 = vmatpush1.bf16.msra.mxu1 %v8665_v7 }
 0x32e   : > { %v3242_v3 = vpop.f32.mrf.mxu1  ;;  %4187 = vmatprep.subr.bf16.mxu1 %v9950_v32 }
 0x32f   : > { %4077 = vmatpush1.bf16.msra.mxu0 %v10115_v48  ;;  %v6214_v3 = vld [vmem:[%s9550_s3 + $0x110] sm:$0xff]  }
 0x330   : > { %v8899_v11 = vpop.f32.mrf.mxu1  ;;  %4002 = vmatmul.mubr.bf16.gmra.mxu1 %v8894_v13  ;;  %4078 = vmatprep.subr.bf16.mxu0 %v9950_v32 }
 0x331   : > { %5591 = vmatprep.mubr.msk.bf16.mxu1 %vm2593_vm1, %v8897_v8  ;;  %4188 = vmatpush1.bf16.msra.mxu1 %v8682_v18  ;;  %v10117_v18 = vld [vmem:[#allocation65_spill] sm:$0xff] }
 0x332   : > { %v3247_v7 = vpop.f32.mrf.mxu1  ;;  %3833 = vmatmul.mubr.bf16.gmra.mxu0 %v8075_v53  ;;  %4189 = vmatprep.subr.bf16.mxu1 %v9950_v32  ;;  %v8919_v53 = vsel %vm2593_vm1, %v10117_v18, %v8897_v8  ;;  %v6215_v18 = vld [vmem:[%s9550_s3 + $0x108] sm:$0xff]  }
 0x333   : > { %5584 = vmatprep.mubr.msk.bf16.mxu0 %vm2593_vm1, %v8028_v35  ;;  %4079 = vmatpush1.bf16.msra.mxu0 %v10116_v56  ;;  %v10124_v7 = vld [vmem:[#allocation64_spill] sm:$0xff]  ;;  %v8976_v56 = vpop.permute.xlu0 %3909 }
 0x334   : > { %v8911_v40 = vpop.f32.mrf.mxu1  ;;  %4080 = vmatprep.subr.bf16.mxu0 %v9950_v32 }
 0x335   : > { %4190 = vmatpush1.bf16.msra.mxu1 %v8694_v27 }
 0x336   : > { %v3250_v15 = vpop.f32.mrf.mxu1  ;;  %4191 = vmatprep.subr.bf16.mxu1 %v9950_v32 }
 0x337   : > { %4081 = vmatpush1.bf16.msra.mxu0 %v8301_v47  ;;  %v10118_v47 = vld [vmem:[#allocation62_spill] sm:$0xff] }
 0x338   : > { %v8924_v35 = vpop.f32.mrf.mxu1  ;;  %4010 = vmatmul.mubr.bf16.gmra.mxu1 %v8919_v53  ;;  %4090 = vmatprep.subr.bf16.mxu0 %v9950_v32 }
 0x339   : > { %5592 = vmatprep.mubr.msk.bf16.mxu1 %vm2593_vm1, %v8922_v57  ;;  %4192 = vmatpush1.bf16.msra.mxu1 %v8712_v0  ;;  %v10119_v0 = vld [vmem:[#allocation112_spill] sm:$0xff] }
 0x33a   : > { %v3255_v27 = vpop.f32.mrf.mxu1  ;;  %3841 = vmatmul.mubr.bf16.gmra.mxu0 %v8133_v25  ;;  %4193 = vmatprep.subr.bf16.mxu1 %v9950_v32  ;;  %v8944_v25 = vsel %vm2593_vm1, %v10119_v0, %v8922_v57 }
 0x33b   : > { %5585 = vmatprep.mubr.msk.bf16.mxu0 %vm2593_vm1, %v8008_v2  ;;  %4091 = vmatpush2.bf16.msra.mxu0 %v10118_v47  ;;  %v10125_v47 = vld [vmem:[#allocation90_spill] sm:$0xff] }
 0x33c   : > { %v8936_v5 = vpop.f32.mrf.mxu1  ;;  %4092 = vmatprep.subr.bf16.mxu0 %v9950_v32 }
 0x33d   : > { %4194 = vmatpush1.bf16.msra.mxu1 %v8724_v37  ;;  %v6213_v37 = vld [vmem:[%s9550_s3 + $0x118] sm:$0xff]  }
 0x33e   : > { %v3258_v60 = vpop.f32.mrf.mxu1  ;;  %4203 = vmatprep.subr.bf16.mxu1 %v9950_v32 }
 0x33f   : > { %4093 = vmatpush2.bf16.msra.mxu0 %v10120_v30  ;;  %v10126_v60 = vld [vmem:[#allocation85_spill] sm:$0xff]  ;;  %v6216_v30 = vld [vmem:[%s9550_s3 + $0x100] sm:$0xff]  }
 0x340   : > { %v8949_v2 = vpop.f32.mrf.mxu1  ;;  %4018 = vmatmul.mubr.bf16.gmra.mxu1 %v8944_v25  ;;  %4094 = vmatprep.subr.bf16.mxu0 %v9950_v32 }
 0x341   : > { %5593 = vmatprep.mubr.msk.bf16.mxu1 %vm2593_vm1, %v8947_v51  ;;  %4204 = vmatpush2.bf16.msra.mxu1 %v6213_v37 }
 0x342   : > { %v3263_v14 = vpop.f32.mrf.mxu1  ;;  %3849 = vmatmul.mubr.bf16.gmra.mxu0 %v8162_v63  ;;  %4205 = vmatprep.subr.bf16.mxu1 %v9950_v32  ;;  %v10123_v63 = vld [vmem:[#allocation18_spill] sm:$0xff] }
 0x343   : > { %5586 = vmatprep.mubr.msk.bf16.mxu0 %vm2593_vm1, %v10121_v12  ;;  %4095 = vmatpush2.bf16.msra.mxu0 %v10122_v39  ;;  %v8973_v48 = vsel %vm2593_vm1, %v10123_v63, %v8947_v51  ;;  %v10127_v14 = vld [vmem:[#allocation67_spill] sm:$0xff]  ;;  %v9000_v39 = vpop.permute.xlu1 %3911 }
 0x344   : > { %v8963_v43 = vpop.f32.mrf.mxu1  ;;  %4096 = vmatprep.subr.bf16.mxu0 %v9950_v32  ;;  %v8998_v12 = vsel %vm2593_vm1, %v10127_v14, %v8976_v56  ;;  %v10128_v63 = vld [vmem:[#allocation39_spill] sm:$0xff] }
 0x345   : > { %4206 = vmatpush2.bf16.msra.mxu1 %v6214_v3 }
 0x346   : > { %v3266_v24 = vpop.f32.mrf.mxu1  ;;  %4207 = vmatprep.subr.bf16.mxu1 %v9950_v32 }
 0x347   : > { %4097 = vmatpush2.bf16.msra.mxu0 %v10124_v7 }
 0x348   : > { %v8978_v15 = vpop.f32.mrf.mxu1  ;;  %4026 = vmatmul.mubr.bf16.gmra.mxu1 %v8973_v48 }
 0x349   : > { %5594 = vmatprep.mubr.msk.bf16.mxu1 %vm2593_vm1, %v8976_v56  ;;  %4208 = vmatpush2.bf16.msra.mxu1 %v6215_v18 }
 0x34a   : > { %v3271_v27 = vpop.f32.mrf.mxu1  ;;  %3857 = vmatmul.mubr.bf16.gmra.mxu0 %v10125_v47  ;;  %4209 = vmatprep.subr.bf16.mxu1 %v9950_v32  ;;  %v4053_v32 = vpop.permute.xlu0 %4052 }
 0x34b   : > { %5587 = vmatprep.mubr.msk.bf16.mxu0 %vm2593_vm1, %v10126_v60  ;;  %v10129_v27 = vld [vmem:[#allocation114_spill] sm:$0xff] }
 0x34c   : > { %v8990_v0 = vpop.f32.mrf.mxu1  ;;  %v9014_v47 = vsel %vm2593_vm1, %v10129_v27, %v9000_v39 }
 0x34d   : > { %4210 = vmatpush2.bf16.msra.mxu1 %v6216_v30  ;;  %v10130_v30 = vld [vmem:[#allocation116_spill] sm:$0xff] }
 0x34e   : > { %v3274_v37 = vpop.f32.mrf.mxu1 }
 0x34f   : > { %v4056_v37 = vsel %vm2593_vm1, %v10130_v30, %v4053_v32  ;;  %v10131_v30 = vld [vmem:[#allocation21_spill] sm:$0xff] }
 0x350   : > { %v9002_v3 = vpop.f32.mrf.mxu1  ;;  %4034 = vmatmul.mubr.bf16.gmra.mxu1 %v8998_v12 }
 0x351   : > { %5595 = vmatprep.mubr.msk.bf16.mxu1 %vm2593_vm1, %v9000_v39 }
 0x352   : > { %v3279_v24 = vpop.f32.mrf.mxu1  ;;  %3865 = vmatmul.mubr.bf16.gmra.mxu0 %v10128_v63 }
 0x353   : > { %5596 = vmatprep.mubr.msk.bf16.mxu0 %vm2593_vm1, %v4053_v32  ;;  %v4055_v24 = vpop.permute.xlu1 %4054 }
 0x354   : > { %v9009_v7 = vpop.f32.mrf.mxu1  ;;  %v4057_v6 = vsel %vm2593_vm1, %v10131_v30, %v4055_v24 }
 0x356   : > { %v3282_v18 = vpop.f32.mrf.mxu1 }
 0x358   : > { %v9016_v60 = vpop.f32.mrf.mxu1  ;;  %4042 = vmatmul.mubr.bf16.gmra.mxu1 %v9014_v47 }
 0x359   : > { %5604 = vmatprep.mubr.msk.bf16.mxu1 %vm2593_vm1, %v8867_v19 }
 0x35a   : > { %v3348_v14 = vpop.f32.mrf.mxu0  ;;  %v3287_v63 = vpop.f32.mrf.mxu1  ;;  %4099 = vmatmul.mubr.bf16.vlgmr.msra.gmra.mxu0 %v4056_v37 }
 0x35b   : > { %v3349_v18 = vadd.f32 %v3348_v14, %v8837_v55  ;;  %5597 = vmatprep.mubr.msk.bf16.mxu0 %vm2593_vm1, %v4055_v24 }
 0x35c   : > { %v3350_v27 = vpop.f32.mrf.mxu0  ;;  %v9025_v10 = vpop.f32.mrf.mxu1 }
 0x35e   : > { %v3351_v59 = vpop.f32.mrf.mxu0  ;;  %v3290_v17 = vpop.f32.mrf.mxu1 }
 0x35f   : > { %v3352_v58 = vadd.f32 %v3351_v59, %v8854_v20 }
 0x360   : > { %v3353_v44 = vpop.f32.mrf.mxu0  ;;  %v3467_v32 = vpop.f32.mrf.mxu1  ;;  %4212 = vmatmul.mubr.bf16.vlgmr.msra.gmra.mxu1 %v8894_v13 }
 0x361   : > { %v3530_v63 = vadd.f32 %v3467_v32, %v3349_v18  ;;  %5605 = vmatprep.mubr.msk.bf16.mxu1 %vm2593_vm1, %v8897_v8 }
 0x362   : > { %v3356_v55 = vpop.f32.mrf.mxu0  ;;  %v3469_v37 = vpop.f32.mrf.mxu1  ;;  %4107 = vmatmul.mubr.bf16.gmra.mxu0 %v4057_v6 }
 0x363   : > { %v3357_v14 = vadd.f32 %v3356_v55, %v8872_v9  ;;  %5598 = vmatprep.mubr.msk.bf16.mxu0 %vm2593_vm1, %v8808_v33 }
 0x364   : > { %v3358_v17 = vpop.f32.mrf.mxu0  ;;  %v3470_v44 = vpop.f32.mrf.mxu1 }
 0x365   : > { %v3531_v20 = vadd.f32 %v3470_v44, %v3352_v58 }
 0x366   : > { %v3359_v59 = vpop.f32.mrf.mxu0  ;;  %v3472_v27 = vpop.f32.mrf.mxu1 }
 0x367   : > { %v3360_v36 = vadd.f32 %v3359_v59, %v8886_v26 }
 0x368   : > { %v3361_v24 = vpop.f32.mrf.mxu0  ;;  %v3475_v18 = vpop.f32.mrf.mxu1  ;;  %4220 = vmatmul.mubr.bf16.gmra.mxu1 %v8919_v53 }
 0x369   : > { %v3532_v32 = vadd.f32 %v3475_v18, %v3357_v14  ;;  %5606 = vmatprep.mubr.msk.bf16.mxu1 %vm2593_vm1, %v8922_v57 }
 0x36a   : > { %v3364_v6 = vpop.f32.mrf.mxu0  ;;  %v3477_v9 = vpop.f32.mrf.mxu1  ;;  %4115 = vmatmul.mubr.bf16.gmra.mxu0 %v8829_v49 }
 0x36b   : > { %v3365_v33 = vadd.f32 %v3364_v6, %v8899_v11  ;;  %5599 = vmatprep.mubr.msk.bf16.mxu0 %vm2593_vm1, %v8832_v23  ;;  %v9058_v6 = vld [vmem:[%s9551_s4] ss:$0 sm:$0xff] }
 0x36c   : > { %v3366_v58 = vpop.f32.mrf.mxu0  ;;  %v3478_v30 = vpop.f32.mrf.mxu1 }
 0x36d   : > { %v3533_v26 = vadd.f32 %v3478_v30, %v3360_v36 }
 0x36e   : > { %v3367_v55 = vpop.f32.mrf.mxu0  ;;  %v3480_v37 = vpop.f32.mrf.mxu1 }
 0x36f   : > { %v3368_v17 = vadd.f32 %v3367_v55, %v8911_v40 }
 0x370   : > { %v3369_v14 = vpop.f32.mrf.mxu0  ;;  %v3483_v44 = vpop.f32.mrf.mxu1  ;;  %4228 = vmatmul.mubr.bf16.gmra.mxu1 %v8944_v25 }
 0x371   : > { %v3534_v59 = vadd.f32 %v3483_v44, %v3365_v33  ;;  %5607 = vmatprep.mubr.msk.bf16.mxu1 %vm2593_vm1, %v8947_v51  ;;  %v10133_v44 = vmax.f32 %v8716_v31, %v8765_v42 }
 0x372   : > { %v3372_v49 = vpop.f32.mrf.mxu0  ;;  %v3485_v11 = vpop.f32.mrf.mxu1  ;;  %4123 = vmatmul.mubr.bf16.gmra.mxu0 %v8864_v52 }
 0x373   : > { %v4296_v23 = vmax.f32 %v3530_v63, %v3534_v59  ;;  %v3373_v27 = vadd.f32 %v3372_v49, %v8924_v35  ;;  %5600 = vmatprep.mubr.msk.bf16.mxu0 %vm2593_vm1, %v8867_v19 }
 0x374   : > { %v3374_v36 = vpop.f32.mrf.mxu0  ;;  %v3486_v40 = vpop.f32.mrf.mxu1 }
 0x375   : > { %v4300_v24 = vmax.f32 %v4292_v29, %v4296_v23  ;;  %v3535_v18 = vadd.f32 %v3486_v40, %v3368_v17  ;;  %v10134_v36 = vmax.f32 %v8728_v50, %v8776_v22 }
 0x376   : > { %v3375_v9 = vpop.f32.mrf.mxu0  ;;  %v3488_v52 = vpop.f32.mrf.mxu1 }
 0x377   : > { %v4297_v63 = vmax.f32 %v3531_v20, %v3535_v18  ;;  %v3376_v35 = vadd.f32 %v3375_v9, %v8936_v5  ;;  %v4311_v19 = vadd.f32 %v9058_v6, %v4300_v24 }
 0x378   : > { %v3377_v33 = vpop.f32.mrf.mxu0  ;;  %v3491_v58 = vpop.f32.mrf.mxu1  ;;  %4236 = vmatmul.mubr.bf16.gmra.mxu1 %v8973_v48 }
 0x379   : > { %v4301_v21 = vmax.f32 %v10132_v46, %v4297_v63  ;;  %v3536_v29 = vadd.f32 %v3491_v58, %v3373_v27  ;;  %5608 = vmatprep.mubr.msk.bf16.mxu1 %vm2593_vm1, %v8976_v56  ;;  %v4315_v38 = vmax.f32 %v4311_v19, 0.0 }
 0x37a   : > { %v3380_v30 = vpop.f32.mrf.mxu0  ;;  %v3493_v55 = vpop.f32.mrf.mxu1  ;;  %4131 = vmatmul.mubr.bf16.gmra.mxu0 %v8894_v13 }
 0x37b   : > { %v4312_v5 = vadd.f32 %v9058_v6, %v4301_v21  ;;  %v4298_v20 = vmax.f32 %v3532_v32, %v3536_v29  ;;  %v3381_v37 = vadd.f32 %v3380_v30, %v8949_v2  ;;  %5601 = vmatprep.mubr.msk.bf16.mxu0 %vm2593_vm1, %v8897_v8 }
 0x37c   : > { %v3382_v17 = vpop.f32.mrf.mxu0  ;;  %v3494_v14 = vpop.f32.mrf.mxu1 }
 0x37d   : > { %v4316_v34 = vmax.f32 %v4312_v5, 0.0  ;;  %v4302_v56 = vmax.f32 %v10133_v44, %v4298_v20  ;;  %v3537_v59 = vadd.f32 %v3494_v14, %v3376_v35  ;;  %v4166_v35 = vpop.permute.xlu0 %4165  ;;  %v10135_v5 = vld [vmem:[#allocation70_spill] sm:$0xff]  ;;  %v4168_v20 = vpop.permute.xlu1 %4167 }
 0x37e   : > { %v3383_v49 = vpop.f32.mrf.mxu0  ;;  %v3496_v11 = vpop.f32.mrf.mxu1 }
 0x37f   : > { %v9076_v13 = vpack.c.bf16 %v4316_v34, %v4315_v38  ;;  %v4299_v23 = vmax.f32 %v3533_v26, %v3537_v59  ;;  %v3384_v32 = vadd.f32 %v3383_v49, %v8963_v43  ;;  %v4313_v8 = vadd.f32 %v9058_v6, %v4302_v56 }
 0x380   : > { %v3385_v2 = vpop.f32.mrf.mxu0  ;;  %v3499_v27 = vpop.f32.mrf.mxu1  ;;  %4244 = vmatmul.mubr.bf16.gmra.mxu1 %v8998_v12  ;;  %v10136_v59 = vmax.f32 %v8792_v1, %v8821_v45 }
 0x381   : > { %v4303_v40 = vmax.f32 %v10134_v36, %v4299_v23  ;;  %v3538_v31 = vadd.f32 %v3499_v27, %v3381_v37  ;;  %5609 = vmatprep.mubr.msk.bf16.mxu1 %vm2593_vm1, %v9000_v39  ;;  %v4317_v9 = vmax.f32 %v4313_v8, 0.0  ;;  %v10137_v36 = vmax.f32 %v8797_v41, %v8835_v62  ;;  %v6107_v62 = vld [vmem:[%s9552_s5 + $0x78] sm:$0xff]  }
 0x382   : > { %v3388_v42 = vpop.f32.mrf.mxu0  ;;  %v3501_v24 = vpop.f32.mrf.mxu1  ;;  %4139 = vmatmul.mubr.bf16.gmra.mxu0 %v8919_v53  ;;  %5750 = vmatprep.subr.bf16.mxu0 %v6107_v62 }
 0x383   : > { %v4314_v43 = vadd.f32 %v9058_v6, %v4303_v40  ;;  %v3389_v26 = vadd.f32 %v3388_v42, %v8978_v15  ;;  %5602 = vmatprep.mubr.msk.bf16.mxu0 %vm2593_vm1, %v8922_v57 }
 0x384   : > { %v3390_v12 = vpop.f32.mrf.mxu0  ;;  %v3502_v18 = vpop.f32.mrf.mxu1 }
 0x385   : > { %v4318_v50 = vmax.f32 %v4314_v43, 0.0  ;;  %v3539_v22 = vadd.f32 %v3502_v18, %v3384_v32  ;;  %v4170_v32 = vsel %vm2593_vm1, %v8605_v16, %v4168_v20 }
 0x386   : > { %v3391_v52 = vpop.f32.mrf.mxu0  ;;  %v3504_v63 = vpop.f32.mrf.mxu1 }
 0x387   : > { %v9091_v39 = vpack.c.bf16 %v4318_v50, %v4317_v9  ;;  %v3392_v33 = vadd.f32 %v3391_v52, %v8990_v0 }
 0x388   : > { %v3393_v53 = vpop.f32.mrf.mxu0  ;;  %v3507_v58 = vpop.f32.mrf.mxu1  ;;  %4252 = vmatmul.mubr.bf16.gmra.mxu1 %v9014_v47  ;;  %v4169_v47 = vsel %vm2593_vm1, %v10135_v5, %v4166_v35 }
 0x389   : > { %v3540_v15 = vadd.f32 %v3507_v58, %v3389_v26  ;;  %5610 = vmatprep.mubr.msk.bf16.mxu1 %vm2593_vm1, %v4166_v35 }
 0x38a   : > { %v3396_v57 = vpop.f32.mrf.mxu0  ;;  %v3509_v19 = vpop.f32.mrf.mxu1  ;;  %4147 = vmatmul.mubr.bf16.gmra.mxu0 %v8944_v25 }
 0x38b   : > { %v3397_v46 = vadd.f32 %v3396_v57, %v9002_v3  ;;  %5603 = vmatprep.mubr.msk.bf16.mxu0 %vm2593_vm1, %v8947_v51 }
 0x38c   : > { %v3398_v21 = vpop.f32.mrf.mxu0  ;;  %v3510_v29 = vpop.f32.mrf.mxu1 }
 0x38d   : > { %v3541_v30 = vadd.f32 %v3510_v29, %v3392_v33  ;;  %v6108_v33 = vld [vmem:[%s9552_s5 + $0x38] sm:$0xff]  }
 0x38e   : > { %v3399_v0 = vpop.f32.mrf.mxu0  ;;  %v3512_v55 = vpop.f32.mrf.mxu1  ;;  %5751 = vmatpush3.bf16.msra.mxu0 %v6108_v33  ;;  %v6110_v21 = vld [vmem:[%s9552_s5 + $0xb8] sm:$0xff]  }
 0x38f   : > { %v3400_v37 = vadd.f32 %v3399_v0, %v9009_v7 }
 0x390   : > { %v3401_v17 = vpop.f32.mrf.mxu0  ;;  %v3515_v14 = vpop.f32.mrf.mxu1  ;;  %4260 = vmatmul.mubr.bf16.gmra.mxu1 %v4169_v47 }
 0x391   : > { %v3542_v25 = vadd.f32 %v3515_v14, %v3397_v46  ;;  %5611 = vmatprep.mubr.msk.bf16.mxu1 %vm2593_vm1, %v4168_v20  ;;  %v6109_v46 = vld [vmem:[%s9552_s5 + $0xf8] sm:$0xff]   ;;  %v6113_v17 = vld [vmem:[%s9552_s5 + $0x68] sm:$0xff]  }
 0x392   : > { %v3404_v3 = vpop.f32.mrf.mxu0  ;;  %v3517_v38 = vpop.f32.mrf.mxu1  ;;  %4155 = vmatmul.mubr.bf16.gmra.mxu0 %v8973_v48  ;;  %5772 = vmatprep.subr.bf16.mxu1 %v6109_v46 }
 0x393   : > { %v4347_v51 = vmax.f32 %v3538_v31, %v3542_v25  ;;  %v3405_v34 = vadd.f32 %v3404_v3, %v9016_v60  ;;  %5773 = vmatpush3.bf16.msra.mxu1 %v6110_v21  ;;  %v6114_v3 = vld [vmem:[%s9552_s5 + $0x28] sm:$0xff]   ;;  %v6131_v21 = vld [vmem:[%s9552_s5 + $0x178] sm:$0xff]  }
 0x394   : > { %v3406_v44 = vpop.f32.mrf.mxu0  ;;  %v3518_v56 = vpop.f32.mrf.mxu1 }
 0x395   : > { %v4351_v49 = vmax.f32 %v10136_v59, %v4347_v51  ;;  %v3543_v7 = vadd.f32 %v3518_v56, %v3400_v37  ;;  %v6115_v44 = vld [vmem:[%s9552_s5 + $0xf0] sm:$0xff]   ;;  %v6117_v59 = vld [vmem:[%s9552_s5 + $0x60] sm:$0xff]  }
 0x396   : > { %v3407_v11 = vpop.f32.mrf.mxu0  ;;  %v3520_v23 = vpop.f32.mrf.mxu1  ;;  %v6116_v56 = vld [vmem:[%s9552_s5 + $0xb0] sm:$0xff]   ;;  %5774 = vmatprep.subr.bf16.mxu1 %v6115_v44 }
 0x397   : > { %v4348_v2 = vmax.f32 %v3539_v22, %v3543_v7  ;;  %v3408_v27 = vadd.f32 %v3407_v11, %v9025_v10  ;;  %v4355_v60 = vadd.f32 %v9058_v6, %v4351_v49  ;;  %v10138_v10 = vmax.f32 %v8806_v61, %v8852_v4  ;;  %v6118_v11 = vld [vmem:[%s9552_s5 + $0x20] sm:$0xff]   ;;  %5775 = vmatpush3.bf16.msra.mxu1 %v6116_v56 }
 0x398   : > { %v3409_v8 = vpop.f32.mrf.mxu0  ;;  %v3523_v48 = vpop.f32.mrf.mxu1  ;;  %4268 = vmatmul.mubr.bf16.gmra.mxu1 %v4170_v32  ;;  %v10139_v61 = vmax.f32 %v8811_v28, %v8870_v54  ;;  %v6111_v28 = vld [vmem:[%s9552_s5 + $0x70] sm:$0xff]  }
 0x399   : > { %v4352_v40 = vmax.f32 %v10137_v36, %v4348_v2  ;;  %v3544_v1 = vadd.f32 %v3523_v48, %v3405_v34  ;;  %v4359_v26 = vmax.f32 %v4355_v60, 0.0  ;;  %5752 = vmatprep.subr.bf16.mxu0 %v6111_v28  ;;  %v6120_v60 = vld [vmem:[%s9552_s5 + $0x18] sm:$0xff]  }
 0x39a   : > { %v3525_v45 = vpop.f32.mrf.mxu1  ;;  %v3604_v31 = vpop.f32.mrf.mxu0 }
 0x39b   : > { %v4356_v42 = vadd.f32 %v9058_v6, %v4352_v40  ;;  %v4349_v24 = vmax.f32 %v3540_v15, %v3544_v1  ;;  %v6123_v45 = vld [vmem:[%s9552_s5 + $0x50] sm:$0xff]  }
 0x39c   : > { %v3526_v43 = vpop.f32.mrf.mxu1  ;;  %v3606_v16 = vpop.f32.mrf.mxu0 }
 0x39d   : > { %v4360_v12 = vmax.f32 %v4356_v42, 0.0  ;;  %v4353_v18 = vmax.f32 %v10138_v10, %v4349_v24  ;;  %v3545_v9 = vadd.f32 %v3526_v43, %v3408_v27  ;;  %v6119_v27 = vld [vmem:[%s9552_s5 + $0x58] sm:$0xff]   ;;  %v6124_v24 = vld [vmem:[%s9552_s5 + $0x10] sm:$0xff]   ;;  %v6121_v16 = vld [vmem:[%s9552_s5 + $0xe8] sm:$0xff]  }
 0x39e   : > { %v3528_v50 = vpop.f32.mrf.mxu1  ;;  %v3607_v22 = vpop.f32.mrf.mxu0  ;;  %5776 = vmatprep.subr.bf16.mxu1 %v6121_v16  ;;  %v6144_v16 = vld [vmem:[%s9552_s5 + $0xc8] sm:$0xff]  }
 0x39f   : > { %v9120_v52 = vpack.c.bf16 %v4360_v12, %v4359_v26  ;;  %v4350_v41 = vmax.f32 %v3541_v30, %v3545_v9  ;;  %v4357_v53 = vadd.f32 %v9058_v6, %v4353_v18  ;;  %v6112_v30 = vld [vmem:[%s9552_s5 + $0x30] sm:$0xff]   ;;  %v6122_v26 = vld [vmem:[%s9552_s5 + $0xa8] sm:$0xff]  }
 0x3a0   : > { %v3609_v63 = vpop.f32.mrf.mxu0  ;;  %v3707_v35 = vpop.f32.mrf.mxu1  ;;  %5753 = vmatpush3.bf16.msra.mxu0 %v6112_v30  ;;  %v6125_v18 = vld [vmem:[%s9552_s5 + $0x48] sm:$0xff]   ;;  %5777 = vmatpush3.bf16.msra.mxu1 %v6122_v26 }
 0x3a1   : > { %v4354_v4 = vmax.f32 %v10139_v61, %v4350_v41  ;;  %v9132_v58 = vadd.f32 %v3707_v35, %v3604_v31  ;;  %v4361_v0 = vmax.f32 %v4357_v53, 0.0  ;;  %5754 = vmatprep.subr.bf16.mxu0 %v6113_v17  ;;  %v6129_v35 = vld [vmem:[%s9552_s5 + $0x40] sm:$0xff]   ;;  %v6146_v26 = vld [vmem:[%s9552_s5 + $0x88] sm:$0xff]  }
 0x3a2   : > { %v3612_v15 = vpop.f32.mrf.mxu0  ;;  %v3709_v57 = vpop.f32.mrf.mxu1  ;;  %v6130_v61 = vld [vmem:[%s9552_s5] sm:$0xff]  }
 0x3a3   : > { %v4358_v19 = vadd.f32 %v9058_v6, %v4354_v4  ;;  %v6128_v57 = vld [vmem:[%s9552_s5 + $0xa0] sm:$0xff]  }
 0x3a4   : > { %v3614_v54 = vpop.f32.mrf.mxu0  ;;  %v3710_v29 = vpop.f32.mrf.mxu1  ;;  %5755 = vmatpush3.bf16.msra.mxu0 %v6114_v3 }
 0x3a5   : > { %v4362_v55 = vmax.f32 %v4358_v19, 0.0  ;;  %v9147_v5 = vadd.f32 %v3710_v29, %v3607_v22  ;;  %5756 = vmatprep.subr.bf16.mxu0 %v6117_v59  ;;  %v6126_v22 = vld [vmem:[%s9552_s5 + $0x8] sm:$0xff]  }
 0x3a6   : > { %v3615_v47 = vpop.f32.mrf.mxu0  ;;  %v3712_v20 = vpop.f32.mrf.mxu1 }
 0x3a7   : > { %v9149_v37 = vpack.c.bf16 %v4362_v55, %v4361_v0  ;;  %v6132_v55 = vld [vmem:[%s9552_s5 + $0xd8] sm:$0xff]  }
 0x3a8   : > { %v3617_v14 = vpop.f32.mrf.mxu0  ;;  %v3715_v25 = vpop.f32.mrf.mxu1  ;;  %5757 = vmatpush3.bf16.msra.mxu0 %v6118_v11 }
 0x3a9   : > { %v9157_v38 = vadd.f32 %v3715_v25, %v3612_v15  ;;  %5758 = vmatprep.subr.bf16.mxu0 %v6119_v27  ;;  %v6127_v15 = vld [vmem:[%s9552_s5 + $0xe0] sm:$0xff]  }
 0x3aa   : > { %v3620_v51 = vpop.f32.mrf.mxu0  ;;  %v3717_v34 = vpop.f32.mrf.mxu1  ;;  %5778 = vmatprep.subr.bf16.mxu1 %v6127_v15  ;;  %v6152_v15 = vld [vmem:[%s9552_s5 + $0x80] sm:$0xff]  }
 0x3ab   : > { %5779 = vmatpush3.bf16.msra.mxu1 %v6128_v57 }
 0x3ac   : > { %v3622_v49 = vpop.f32.mrf.mxu0  ;;  %v3718_v7 = vpop.f32.mrf.mxu1  ;;  %5759 = vmatpush3.bf16.msra.mxu0 %v6120_v60  ;;  %5780 = vmatprep.subr.bf16.mxu1 %v6132_v55 }
 0x3ad   : > { %v9171_v23 = vadd.f32 %v3718_v7, %v3615_v47  ;;  %5760 = vmatprep.subr.bf16.mxu0 %v6123_v45  ;;  %v6134_v47 = vld [vmem:[%s9552_s5 + $0x98] sm:$0xff]   ;;  %v6138_v49 = vld [vmem:[%s9552_s5 + $0xd0] sm:$0xff]  }
 0x3ae   : > { %v3623_v32 = vpop.f32.mrf.mxu0  ;;  %v3720_v2 = vpop.f32.mrf.mxu1  ;;  %v6140_v7 = vld [vmem:[%s9552_s5 + $0x90] sm:$0xff]  }
 0x3af   : > { %5781 = vmatpush3.bf16.msra.mxu1 %v6134_v47 }
 0x3b0   : > { %v3625_v8 = vpop.f32.mrf.mxu0  ;;  %v3723_v48 = vpop.f32.mrf.mxu1  ;;  %5761 = vmatpush3.bf16.msra.mxu0 %v6124_v24  ;;  %5782 = vmatprep.subr.bf16.mxu1 %v6138_v49 }
 0x3b1   : > { %v9179_v36 = vadd.f32 %v3723_v48, %v3620_v51  ;;  %5762 = vmatprep.subr.bf16.mxu0 %v6125_v18 }
 0x3b2   : > { %v3628_v40 = vpop.f32.mrf.mxu0  ;;  %v3725_v1 = vpop.f32.mrf.mxu1 }
 0x3b3   : > { %5783 = vmatpush3.bf16.msra.mxu1 %v6140_v7 }
 0x3b4   : > { %v3630_v31 = vpop.f32.mrf.mxu0  ;;  %v3726_v42 = vpop.f32.mrf.mxu1  ;;  %5763 = vmatpush3.bf16.msra.mxu0 %v6126_v22  ;;  %5784 = vmatprep.subr.bf16.mxu1 %v6144_v16 }
 0x3b5   : > { %v9187_v43 = vadd.f32 %v3726_v42, %v3623_v32  ;;  %5764 = vmatprep.subr.bf16.mxu0 %v6129_v35 }
 0x3b6   : > { %v3631_v12 = vpop.f32.mrf.mxu0  ;;  %v3728_v10 = vpop.f32.mrf.mxu1 }
 0x3b7   : > { %5785 = vmatpush3.bf16.msra.mxu1 %v6146_v26 }
 0x3b8   : > { %v3633_v9 = vpop.f32.mrf.mxu0  ;;  %v3731_v50 = vpop.f32.mrf.mxu1  ;;  %5765 = vmatpush3.bf16.msra.mxu0 %v6130_v61 }
 0x3b9   : > { %v9201_v41 = vadd.f32 %v3731_v50, %v3628_v40  ;;  %5794 = vmatprep.subr.bf16.mxu0 %v6131_v21 }
 0x3ba   : > { %v3636_v62 = vpop.f32.mrf.mxu0  ;;  %v3733_v63 = vpop.f32.mrf.mxu1 }
 0x3bc   : > { %v3638_v33 = vpop.f32.mrf.mxu0  ;;  %v3734_v53 = vpop.f32.mrf.mxu1 }
 0x3bd   : > { %v9209_v4 = vadd.f32 %v3734_v53, %v3631_v12  ;;  %v6150_v53 = vld [vmem:[%s9552_s5 + $0xc0] sm:$0xff]  }
 0x3be   : > { %v3639_v19 = vpop.f32.mrf.mxu0  ;;  %v3736_v46 = vpop.f32.mrf.mxu1  ;;  %5786 = vmatprep.subr.bf16.mxu1 %v6150_v53 }
 0x3bf   : > { %5787 = vmatpush3.bf16.msra.mxu1 %v6152_v15 }
 0x3c0   : > { %v3641_v28 = vpop.f32.mrf.mxu0  ;;  %v3739_v54 = vpop.f32.mrf.mxu1 }
 0x3c1   : > { %v9220_v29 = vadd.f32 %v3739_v54, %v3636_v62  ;;  %v6155_v28 = vld [vmem:[%s9552_s5 + $0x1f8] sm:$0xff]  }
 0x3c2   : > { %v3644_v30 = vpop.f32.mrf.mxu0  ;;  %v3741_v0 = vpop.f32.mrf.mxu1  ;;  %5816 = vmatprep.subr.bf16.mxu1 %v6155_v28 }
 0x3c4   : > { %v3646_v20 = vpop.f32.mrf.mxu0  ;;  %v3742_v17 = vpop.f32.mrf.mxu1 }
 0x3c5   : > { %v9228_v14 = vadd.f32 %v3742_v17, %v3639_v19 }
 0x3c6   : > { %v3647_v25 = vpop.f32.mrf.mxu0  ;;  %v3744_v3 = vpop.f32.mrf.mxu1 }
 0x3c8   : > { %v3649_v51 = vpop.f32.mrf.mxu0  ;;  %v3747_v34 = vpop.f32.mrf.mxu1 }
 0x3c9   : > { %v9230_v44 = vadd.f32 %v3747_v34, %v3644_v30 }
 0x3ca   : > { %v3652_v56 = vpop.f32.mrf.mxu0  ;;  %v3749_v59 = vpop.f32.mrf.mxu1 }
 0x3cc   : > { %v3654_v11 = vpop.f32.mrf.mxu0  ;;  %v3750_v32 = vpop.f32.mrf.mxu1 }
 0x3cd   : > { %v9238_v2 = vadd.f32 %v3750_v32, %v3647_v25 }
 0x3ce   : > { %v3655_v27 = vpop.f32.mrf.mxu0  ;;  %v3752_v8 = vpop.f32.mrf.mxu1 }
 0x3d0   : > { %v3657_v48 = vpop.f32.mrf.mxu0  ;;  %v3755_v60 = vpop.f32.mrf.mxu1 }
 0x3d1   : > { %v9240_v40 = vadd.f32 %v3755_v60, %v3652_v56 }
 0x3d2   : > { %v3660_v1 = vpop.f32.mrf.mxu0  ;;  %v3757_v45 = vpop.f32.mrf.mxu1 }
 0x3d4   : > { %v3662_v31 = vpop.f32.mrf.mxu0  ;;  %v3758_v42 = vpop.f32.mrf.mxu1 }
 0x3d5   : > { %v9242_v24 = vadd.f32 %v3758_v42, %v3655_v27 }
 0x3d6   : > { %v3663_v12 = vpop.f32.mrf.mxu0  ;;  %v3760_v10 = vpop.f32.mrf.mxu1 }
 0x3d8   : > { %v3665_v18 = vpop.f32.mrf.mxu0  ;;  %v3763_v9 = vpop.f32.mrf.mxu1 }
 0x3d9   : > { %v9250_v50 = vadd.f32 %v3763_v9, %v3660_v1 }
 0x3da   : > { %v3765_v22 = vpop.f32.mrf.mxu1  ;;  %v3810_v62 = vpop.f32.mrf.mxu0 }
 0x3db   : > { %v9253_v63 = vadd.f32 %v3810_v62, %v9132_v58 }
 0x3dc   : > { %v3766_v35 = vpop.f32.mrf.mxu1  ;;  %v3812_v33 = vpop.f32.mrf.mxu0 }
 0x3dd   : > { %v9258_v61 = vadd.f32 %v3766_v35, %v3663_v12 }
 0x3de   : > { %v3768_v57 = vpop.f32.mrf.mxu1  ;;  %v3813_v19 = vpop.f32.mrf.mxu0 }
 0x3df   : > { %v9264_v46 = vadd.f32 %v3813_v19, %v9147_v5 }
 0x3e0   : > { %v3815_v58 = vpop.f32.mrf.mxu0  ;;  %v9266_v21 = vpop.f32.mrf.mxu1 }
 0x3e2   : > { %v3818_v54 = vpop.f32.mrf.mxu0  ;;  %v3989_v30 = vpop.f32.mrf.mxu1 }
 0x3e3   : > { %v9272_v0 = vadd.f32 %v3818_v54, %v9157_v38 }
 0x3e4   : > { %v3820_v55 = vpop.f32.mrf.mxu0  ;;  %v9274_v47 = vpop.f32.mrf.mxu1 }
 0x3e6   : > { %v3821_v20 = vpop.f32.mrf.mxu0  ;;  %v3992_v5 = vpop.f32.mrf.mxu1 }
 0x3e7   : > { %v9277_v17 = vadd.f32 %v3821_v20, %v9171_v23 }
 0x3e8   : > { %v3823_v25 = vpop.f32.mrf.mxu0  ;;  %v9279_v3 = vpop.f32.mrf.mxu1 }
 0x3ea   : > { %v3826_v51 = vpop.f32.mrf.mxu0  ;;  %v3997_v34 = vpop.f32.mrf.mxu1 }
 0x3eb   : > { %v9282_v56 = vadd.f32 %v3826_v51, %v9179_v36 }
 0x3ec   : > { %v3828_v59 = vpop.f32.mrf.mxu0  ;;  %v9284_v49 = vpop.f32.mrf.mxu1 }
 0x3ed   : > { %v4321_v38 = vmax.f32 %v9253_v63, %v9282_v56 }
 0x3ee   : > { %v3829_v7 = vpop.f32.mrf.mxu0  ;;  %v4000_v11 = vpop.f32.mrf.mxu1 }
 0x3ef   : > { %v9289_v32 = vadd.f32 %v3829_v7, %v9187_v43 }
 0x3f0   : > { %v3831_v23 = vpop.f32.mrf.mxu0  ;;  %v9291_v27 = vpop.f32.mrf.mxu1 }
 0x3f1   : > { %v4322_v8 = vmax.f32 %v9264_v46, %v9289_v32 }
 0x3f2   : > { %v3834_v48 = vpop.f32.mrf.mxu0  ;;  %v4005_v36 = vpop.f32.mrf.mxu1 }
 0x3f3   : > { %v9296_v60 = vadd.f32 %v3834_v48, %v9201_v41 }
 0x3f4   : > { %v3836_v1 = vpop.f32.mrf.mxu0  ;;  %v9298_v45 = vpop.f32.mrf.mxu1 }
 0x3f6   : > { %v3837_v42 = vpop.f32.mrf.mxu0  ;;  %v4008_v43 = vpop.f32.mrf.mxu1 }
 0x3f7   : > { %v9303_v16 = vadd.f32 %v3837_v42, %v9209_v4 }
 0x3f8   : > { %v3839_v26 = vpop.f32.mrf.mxu0  ;;  %v9305_v12 = vpop.f32.mrf.mxu1 }
 0x3fa   : > { %v3842_v18 = vpop.f32.mrf.mxu0  ;;  %v4013_v41 = vpop.f32.mrf.mxu1 }
 0x3fb   : > { %v9310_v9 = vadd.f32 %v3842_v18, %v9220_v29 }
 0x3fc   : > { %v3844_v22 = vpop.f32.mrf.mxu0  ;;  %v9312_v62 = vpop.f32.mrf.mxu1 }
 0x3fe   : > { %v3845_v35 = vpop.f32.mrf.mxu0  ;;  %v4016_v33 = vpop.f32.mrf.mxu1 }
 0x3ff   : > { %v9315_v53 = vadd.f32 %v3845_v35, %v9228_v14 }
 0x400   : > { %v3847_v4 = vpop.f32.mrf.mxu0  ;;  %v9317_v15 = vpop.f32.mrf.mxu1 }
 0x402   : > { %v3850_v57 = vpop.f32.mrf.mxu0  ;;  %v4021_v19 = vpop.f32.mrf.mxu1 }
 0x403   : > { %v9320_v58 = vadd.f32 %v3850_v57, %v9230_v44 }
 0x404   : > { %v3852_v28 = vpop.f32.mrf.mxu0  ;;  %v9322_v54 = vpop.f32.mrf.mxu1 }
 0x406   : > { %v3853_v29 = vpop.f32.mrf.mxu0  ;;  %v4024_v30 = vpop.f32.mrf.mxu1 }
 0x407   : > { %v9325_v55 = vadd.f32 %v3853_v29, %v9238_v2 }
 0x408   : > { %v3855_v20 = vpop.f32.mrf.mxu0  ;;  %v9327_v5 = vpop.f32.mrf.mxu1 }
 0x40a   : > { %v3858_v14 = vpop.f32.mrf.mxu0  ;;  %v4029_v25 = vpop.f32.mrf.mxu1 }
 0x40b   : > { %v9330_v51 = vadd.f32 %v3858_v14, %v9240_v40 }
 0x40c   : > { %v3860_v34 = vpop.f32.mrf.mxu0  ;;  %v9332_v59 = vpop.f32.mrf.mxu1 }
 0x40e   : > { %v3861_v7 = vpop.f32.mrf.mxu0  ;;  %v4032_v11 = vpop.f32.mrf.mxu1 }
 0x40f   : > { %v9337_v23 = vadd.f32 %v3861_v7, %v9242_v24 }
 0x410   : > { %v3863_v2 = vpop.f32.mrf.mxu0  ;;  %v9339_v48 = vpop.f32.mrf.mxu1 }
 0x412   : > { %v3866_v1 = vpop.f32.mrf.mxu0  ;;  %v4037_v40 = vpop.f32.mrf.mxu1 }
 0x413   : > { %v9344_v42 = vadd.f32 %v3866_v1, %v9250_v50 }
 0x414   : > { %v3868_v43 = vpop.f32.mrf.mxu0  ;;  %v9346_v26 = vpop.f32.mrf.mxu1 }
 0x416   : > { %v3869_v41 = vpop.f32.mrf.mxu0  ;;  %v4040_v24 = vpop.f32.mrf.mxu1 }
 0x417   : > { %v9351_v22 = vadd.f32 %v3869_v41, %v9258_v61 }
 0x418   : > { %v3871_v35 = vpop.f32.mrf.mxu0  ;;  %v9353_v33 = vpop.f32.mrf.mxu1 }
 0x41a   : > { %v4045_v57 = vpop.f32.mrf.mxu1  ;;  %v4100_v50 = vpop.f32.mrf.mxu0 }
 0x41c   : > { %v9357_v19 = vpop.f32.mrf.mxu1  ;;  %v4102_v28 = vpop.f32.mrf.mxu0 }
 0x41d   : > { %v4101_v28 = vadd.f32 %v4100_v50, %v9266_v21 }
 0x41e   : > { %v4048_v29 = vpop.f32.mrf.mxu1  ;;  %v4103_v30 = vpop.f32.mrf.mxu0 }
 0x420   : > { %v4105_v20 = vpop.f32.mrf.mxu0  ;;  %v4213_v14 = vpop.f32.mrf.mxu1 }
 0x421   : > { %v4276_v36 = vadd.f32 %v4213_v14, %v4101_v28 }
 0x422   : > { %v4108_v25 = vpop.f32.mrf.mxu0  ;;  %v4215_v34 = vpop.f32.mrf.mxu1 }
 0x423   : > { %v4109_v14 = vadd.f32 %v4108_v25, %v9279_v3 }
 0x424   : > { %v4110_v7 = vpop.f32.mrf.mxu0  ;;  %v4216_v61 = vpop.f32.mrf.mxu1 }
 0x426   : > { %v4111_v11 = vpop.f32.mrf.mxu0  ;;  %v4218_v2 = vpop.f32.mrf.mxu1 }
 0x427   : > { %v4104_v2 = vadd.f32 %v4103_v30, %v9274_v47  ;;  %v4112_v63 = vadd.f32 %v4111_v11, %v9284_v49 }
 0x428   : > { %v4113_v1 = vpop.f32.mrf.mxu0  ;;  %v4221_v40 = vpop.f32.mrf.mxu1 }
 0x429   : > { %v4277_v31 = vadd.f32 %v4216_v61, %v4104_v2  ;;  %v4278_v30 = vadd.f32 %v4221_v40, %v4109_v14  ;;  %v10140_v40 = vmax.f32 %v9272_v0, %v9296_v60  ;;  %v10141_v0 = vmax.f32 %v9277_v17, %v9303_v16  ;;  %v6137_v17 = vld [vmem:[%s9552_s5 + $0x168] sm:$0xff]  }
 0x42a   : > { %v4116_v43 = vpop.f32.mrf.mxu0  ;;  %v4223_v41 = vpop.f32.mrf.mxu1 }
 0x42b   : > { %v4117_v29 = vadd.f32 %v4116_v43, %v9291_v27 }
 0x42c   : > { %v4118_v24 = vpop.f32.mrf.mxu0  ;;  %v4224_v35 = vpop.f32.mrf.mxu1 }
 0x42e   : > { %v4119_v57 = vpop.f32.mrf.mxu0  ;;  %v4226_v4 = vpop.f32.mrf.mxu1 }
 0x42f   : > { %v4120_v1 = vadd.f32 %v4119_v57, %v9298_v45 }
 0x430   : > { %v4121_v20 = vpop.f32.mrf.mxu0  ;;  %v4229_v18 = vpop.f32.mrf.mxu1 }
 0x431   : > { %v4280_v34 = vadd.f32 %v4229_v18, %v4117_v29 }
 0x432   : > { %v4124_v7 = vpop.f32.mrf.mxu0  ;;  %v4231_v44 = vpop.f32.mrf.mxu1 }
 0x433   : > { %v4325_v10 = vmax.f32 %v4276_v36, %v4280_v34  ;;  %v4125_v18 = vadd.f32 %v4124_v7, %v9305_v12 }
 0x434   : > { %v4126_v41 = vpop.f32.mrf.mxu0  ;;  %v4232_v24 = vpop.f32.mrf.mxu1 }
 0x435   : > { %v4329_v21 = vmax.f32 %v4321_v38, %v4325_v10  ;;  %v4281_v4 = vadd.f32 %v4232_v24, %v4120_v1  ;;  %v6136_v24 = vld [vmem:[%s9552_s5 + $0x130] sm:$0xff]  }
 0x436   : > { %v4127_v27 = vpop.f32.mrf.mxu0  ;;  %v4234_v50 = vpop.f32.mrf.mxu1 }
 0x437   : > { %v4326_v44 = vmax.f32 %v4277_v31, %v4281_v4  ;;  %v4333_v61 = vadd.f32 %v9058_v6, %v4329_v21  ;;  %v4128_v10 = vadd.f32 %v4127_v27, %v9312_v62  ;;  %v4279_v31 = vadd.f32 %v4224_v35, %v4112_v63  ;;  %v6133_v62 = vld [vmem:[%s9552_s5 + $0x138] sm:$0xff]   ;;  %v6135_v35 = vld [vmem:[%s9552_s5 + $0x170] sm:$0xff]  }
 0x438   : > { %v4129_v43 = vpop.f32.mrf.mxu0  ;;  %v4237_v47 = vpop.f32.mrf.mxu1 }
 0x439   : > { %v4330_v45 = vmax.f32 %v4322_v8, %v4326_v44  ;;  %v4282_v36 = vadd.f32 %v4237_v47, %v4125_v18  ;;  %v4337_v8 = vmax.f32 %v4333_v61, 0.0  ;;  %v6139_v44 = vld [vmem:[%s9552_s5 + $0x128] sm:$0xff]   ;;  %v6142_v61 = vld [vmem:[%s9552_s5 + $0x120] sm:$0xff]  }
 0x43a   : > { %v4132_v56 = vpop.f32.mrf.mxu0  ;;  %v4239_v38 = vpop.f32.mrf.mxu1 }
 0x43b   : > { %v4327_v3 = vmax.f32 %v4278_v30, %v4282_v36  ;;  %v4334_v12 = vadd.f32 %v9058_v6, %v4330_v45  ;;  %v6141_v30 = vld [vmem:[%s9552_s5 + $0x160] sm:$0xff]  }
 0x43c   : > { %v4134_v25 = vpop.f32.mrf.mxu0  ;;  %v4240_v57 = vpop.f32.mrf.mxu1 }
 0x43d   : > { %v4331_v46 = vmax.f32 %v10140_v40, %v4327_v3  ;;  %v4283_v32 = vadd.f32 %v4240_v57, %v4128_v10  ;;  %v4338_v28 = vmax.f32 %v4334_v12, 0.0  ;;  %v6143_v10 = vld [vmem:[%s9552_s5 + $0x158] sm:$0xff]  }
 0x43e   : > { %v4135_v29 = vpop.f32.mrf.mxu0  ;;  %v4242_v20 = vpop.f32.mrf.mxu1  ;;  %v6145_v57 = vld [vmem:[%s9552_s5 + $0x118] sm:$0xff]  }
 0x43f   : > { %v4328_v49 = vmax.f32 %v4279_v31, %v4283_v32  ;;  %v4341_v11 = vpack.c.bf16 %v4338_v28, %v4337_v8  ;;  %v4335_v2 = vadd.f32 %v9058_v6, %v4331_v46  ;;  %v4133_v31 = vadd.f32 %v4132_v56, %v9317_v15  ;;  %v6147_v32 = vld [vmem:[%s9552_s5 + $0x150] sm:$0xff]  }
 0x440   : > { %v4137_v34 = vpop.f32.mrf.mxu0  ;;  %v4245_v7 = vpop.f32.mrf.mxu1  ;;  %v4136_v15 = vadd.f32 %v4135_v29, %v9322_v54 }
 0x441   : > { %v4332_v60 = vmax.f32 %v10141_v0, %v4328_v49  ;;  %4938 = vmatprep.mubr.bf16.mxu0 %v4341_v11  ;;  %v4339_v16 = vmax.f32 %v4335_v2, 0.0  ;;  %v4284_v8 = vadd.f32 %v4245_v7, %v4133_v31  ;;  %v6148_v11 = vld [vmem:[%s9552_s5 + $0x110] sm:$0xff]   ;;  %v6149_v7 = vld [vmem:[%s9552_s5 + $0x148] sm:$0xff]   ;;  %v10142_v0 = vmax.f32 %v9310_v9, %v9330_v51  ;;  %v6153_v9 = vld [vmem:[%s9552_s5 + $0x140] sm:$0xff]  }
 0x442   : > { %v4140_v1 = vpop.f32.mrf.mxu0  ;;  %v4247_v41 = vpop.f32.mrf.mxu1  ;;  %4939 = vmatmul.mubr.bf16.vlgmr.msra.gmra.mxu0 %v9076_v13 }
 0x443   : > { %5795 = vmatpush3.bf16.msra.mxu0 %v6133_v62  ;;  %v4336_v21 = vadd.f32 %v9058_v6, %v4332_v60  ;;  %v4141_v2 = vadd.f32 %v4140_v1, %v9327_v5 }
 0x444   : > { %v4142_v4 = vpop.f32.mrf.mxu0  ;;  %v4248_v27 = vpop.f32.mrf.mxu1  ;;  %5796 = vmatprep.subr.bf16.mxu0 %v6135_v35 }
 0x445   : > { %v4340_v50 = vmax.f32 %v4336_v21, 0.0  ;;  %v4285_v35 = vadd.f32 %v4248_v27, %v4136_v15  ;;  %v6151_v21 = vld [vmem:[%s9552_s5 + $0x108] sm:$0xff]   ;;  %v10143_v27 = vmax.f32 %v9315_v53, %v9337_v23  ;;  %v10144_v53 = vmax.f32 %v9320_v58, %v9344_v42  ;;  %v6217_v42 = vld [vmem:[%s9551_s4] ss:$0 sm:$0xff] }
 0x446   : > { %v4143_v14 = vpop.f32.mrf.mxu0  ;;  %v4250_v18 = vpop.f32.mrf.mxu1  ;;  %v6170_v15 = vld [vmem:[%s9552_s5 + $0x180] sm:$0xff]  }
 0x447   : > { %5797 = vmatpush3.bf16.msra.mxu0 %v6136_v24  ;;  %v4342_v13 = vpack.c.bf16 %v4340_v50, %v4339_v16  ;;  %v4144_v16 = vadd.f32 %v4143_v14, %v9332_v59 }
 0x448   : > { %v4145_v43 = vpop.f32.mrf.mxu0  ;;  %v4253_v47 = vpop.f32.mrf.mxu1  ;;  %5798 = vmatprep.subr.bf16.mxu0 %v6137_v17 }
 0x449   : > { %5020 = vmatprep.mubr.bf16.mxu0 %v4342_v13  ;;  %v4286_v51 = vadd.f32 %v4253_v47, %v4141_v2 }
 0x44a   : > { %v4148_v45 = vpop.f32.mrf.mxu0  ;;  %v4255_v36 = vpop.f32.mrf.mxu1 }
 0x44b   : > { %5799 = vmatpush3.bf16.msra.mxu0 %v6139_v44  ;;  %v4149_v25 = vadd.f32 %v4148_v45, %v9339_v48  ;;  %v6154_v44 = vld [vmem:[%s9552_s5 + $0x100] sm:$0xff]  }
 0x44c   : > { %v4150_v63 = vpop.f32.mrf.mxu0  ;;  %v4256_v38 = vpop.f32.mrf.mxu1  ;;  %5800 = vmatprep.subr.bf16.mxu0 %v6141_v30 }
 0x44d   : > { %v4287_v47 = vadd.f32 %v4256_v38, %v4144_v16  ;;  %v6156_v63 = vld [vmem:[%s9552_s5 + $0x1b8] sm:$0xff]   ;;  %v10145_v38 = vmax.f32 %v9325_v55, %v9351_v22  ;;  %v6159_v55 = vld [vmem:[%s9552_s5 + $0x1e8] sm:$0xff]  }
 0x44e   : > { %v4151_v3 = vpop.f32.mrf.mxu0  ;;  %v4258_v12 = vpop.f32.mrf.mxu1 }
 0x44f   : > { %5801 = vmatpush3.bf16.msra.mxu0 %v6142_v61  ;;  %v4152_v48 = vadd.f32 %v4151_v3, %v9346_v26  ;;  %v6158_v3 = vld [vmem:[%s9552_s5 + $0x1b0] sm:$0xff]  }
 0x450   : > { %v4153_v40 = vpop.f32.mrf.mxu0  ;;  %v4261_v46 = vpop.f32.mrf.mxu1  ;;  %5802 = vmatprep.subr.bf16.mxu0 %v6143_v10 }
 0x451   : > { %v4288_v28 = vadd.f32 %v4261_v46, %v4149_v25  ;;  %v6163_v40 = vld [vmem:[%s9552_s5 + $0x1d8] sm:$0xff]  }
 0x452   : > { %v4156_v20 = vpop.f32.mrf.mxu0  ;;  %v4263_v49 = vpop.f32.mrf.mxu1  ;;  %v6164_v46 = vld [vmem:[%s9552_s5 + $0x198] sm:$0xff]  }
 0x453   : > { %v4369_v56 = vmax.f32 %v4284_v8, %v4288_v28  ;;  %5803 = vmatpush3.bf16.msra.mxu0 %v6145_v57  ;;  %v4157_v41 = vadd.f32 %v4156_v20, %v9353_v33  ;;  %v6162_v57 = vld [vmem:[%s9552_s5 + $0x1a0] sm:$0xff]   ;;  %v6166_v8 = vld [vmem:[%s9552_s5 + $0x190] sm:$0xff]   ;;  %v6167_v28 = vld [vmem:[%s9552_s5 + $0x1c8] sm:$0xff]  }
 0x454   : > { %v4158_v62 = vpop.f32.mrf.mxu0  ;;  %v4264_v34 = vpop.f32.mrf.mxu1  ;;  %5804 = vmatprep.subr.bf16.mxu0 %v6147_v32  ;;  %v6165_v32 = vld [vmem:[%s9552_s5 + $0x1d0] sm:$0xff]   ;;  %v6168_v20 = vld [vmem:[%s9552_s5 + $0x188] sm:$0xff]   ;;  %v6169_v49 = vld [vmem:[%s9552_s5 + $0x1c0] sm:$0xff]  }
 0x455   : > { %v4373_v54 = vmax.f32 %v10142_v0, %v4369_v56  ;;  %v4289_v29 = vadd.f32 %v4264_v34, %v4152_v48  ;;  %v6171_v48 = vld [vmem:[%s9554_s7 + $0x38] sm:$0xff]   ;;  %v6244_v56 = vmov 0.0   ;;  %v6173_v62 = vld [vmem:[%s9554_s7 + $0x28] sm:$0xff]   ;;  %v6178_v0 = vld [vmem:[%s9554_s7] sm:$0xff]  }
 0x456   : > { %v4159_v26 = vpop.f32.mrf.mxu0  ;;  %v4266_v60 = vpop.f32.mrf.mxu1  ;;  %v6175_v34 = vld [vmem:[%s9554_s7 + $0x18] sm:$0xff]  }
 0x457   : > { %v4370_v24 = vmax.f32 %v4285_v35, %v4289_v29  ;;  %5805 = vmatpush3.bf16.msra.mxu0 %v6148_v11  ;;  %v4377_v33 = vadd.f32 %v9058_v6, %v4373_v54  ;;  %v4160_v18 = vadd.f32 %v4159_v26, %v9357_v19  ;;  %v6172_v11 = vld [vmem:[%s9554_s7 + $0x30] sm:$0xff]   ;;  %v6177_v35 = vld [vmem:[%s9554_s7 + $0x8] sm:$0xff]  }
 0x458   : > { %v4161_v4 = vpop.f32.mrf.mxu0  ;;  %v4269_v17 = vpop.f32.mrf.mxu1  ;;  %5806 = vmatprep.subr.bf16.mxu0 %v6149_v7  ;;  %v6176_v7 = vld [vmem:[%s9554_s7 + $0x10] sm:$0xff]  }
 0x459   : > { %v4374_v5 = vmax.f32 %v10143_v27, %v4370_v24  ;;  %v4290_v1 = vadd.f32 %v4269_v17, %v4157_v41  ;;  %v4381_v59 = vmax.f32 %v4377_v33, 0.0 }
 0x45a   : > { %v4271_v50 = vpop.f32.mrf.mxu1 }
 0x45b   : > { %v4371_v13 = vmax.f32 %v4286_v51, %v4290_v1  ;;  %5807 = vmatpush3.bf16.msra.mxu0 %v6151_v21  ;;  %v4378_v43 = vadd.f32 %v9058_v6, %v4374_v5  ;;  %v6157_v6 = vld [vmem:[%s9552_s5 + $0x1f0] sm:$0xff]  }
 0x45c   : > { %v4272_v30 = vpop.f32.mrf.mxu1  ;;  %5808 = vmatprep.subr.bf16.mxu0 %v6153_v9  ;;  %v5613_v9 = vld [vmem:[%s9553_s6] ss:$0 sm:$0xff] }
 0x45d   : > { %v4375_v23 = vmax.f32 %v10144_v53, %v4371_v13  ;;  %v4291_v45 = vadd.f32 %v4272_v30, %v4160_v18  ;;  %v4382_v14 = vmax.f32 %v4378_v43, 0.0 }
 0x45e   : > { %v4274_v36 = vpop.f32.mrf.mxu1 }
 0x45f   : > { %v4372_v19 = vmax.f32 %v4287_v47, %v4291_v45  ;;  %5809 = vmatpush3.bf16.msra.mxu0 %v6154_v44  ;;  %v4385_v61 = vpack.c.bf16 %v4382_v14, %v4381_v59  ;;  %v4379_v10 = vadd.f32 %v6217_v42, %v4375_v23 }
 0x460   : > { %5967 = vmatprep.subr.bf16.mxu0 %v6244_v56 }
 0x461   : > { %v4376_v58 = vmax.f32 %v10145_v38, %v4372_v19  ;;  %4979 = vmatprep.mubr.bf16.mxu1 %v4385_v61  ;;  %v4383_v22 = vmax.f32 %v4379_v10, 0.0 }
 0x462   : > { %5021 = vmatmul.mubr.bf16.vlgmr.msra.gmra.mxu0 %v9091_v39  ;;  %4980 = vmatmul.mubr.bf16.vlgmr.msra.gmra.mxu1 %v9120_v52  ;;  %v6160_v39 = vld [vmem:[%s9552_s5 + $0x1a8] sm:$0xff]   ;;  %v6161_v52 = vld [vmem:[%s9552_s5 + $0x1e0] sm:$0xff]  }
 0x463   : > { %5817 = vmatpush3.bf16.msra.mxu1 %v6156_v63  ;;  %v4380_v12 = vadd.f32 %v6217_v42, %v4376_v58  ;;  %5968 = vmatpush3.bf16.msra.mxu0 %v6171_v48  ;;  %v5678_v42 = vld [vmem:[%s9555_s8] ss:$0 sm:$0xff] }
 0x464   : > { %5818 = vmatprep.subr.bf16.mxu1 %v6157_v6  ;;  %5969 = vmatprep.subr.bf16.mxu0 %v6244_v56 }
 0x465   : > { %v4384_v31 = vmax.f32 %v4380_v12, 0.0  ;;  %5983 = vmatprep.mubr.msk.bf16.mxu0 %vm6245_vm2, %v6244_v56 }
 0x467   : > { %5819 = vmatpush3.bf16.msra.mxu1 %v6158_v3  ;;  %v4386_v25 = vpack.c.bf16 %v4384_v31, %v4383_v22  ;;  %5970 = vmatpush3.bf16.msra.mxu0 %v6172_v11 }
 0x468   : > { %5820 = vmatprep.subr.bf16.mxu1 %v6159_v55  ;;  %5971 = vmatprep.subr.bf16.mxu0 %v6244_v56 }
 0x469   : > { %5061 = vmatprep.mubr.bf16.mxu1 %v4386_v25 }
 0x46b   : > { %5821 = vmatpush3.bf16.msra.mxu1 %v6160_v39  ;;  %5972 = vmatpush3.bf16.msra.mxu0 %v6173_v62 }
 0x46c   : > { %5822 = vmatprep.subr.bf16.mxu1 %v6161_v52  ;;  %5973 = vmatprep.subr.bf16.mxu0 %v6244_v56 }
 0x46f   : > { %5823 = vmatpush3.bf16.msra.mxu1 %v6162_v57 }
 0x470   : > { %5824 = vmatprep.subr.bf16.mxu1 %v6163_v40 }
 0x473   : > { %5825 = vmatpush3.bf16.msra.mxu1 %v6164_v46 }
 0x474   : > { %5826 = vmatprep.subr.bf16.mxu1 %v6165_v32 }
 0x477   : > { %5827 = vmatpush3.bf16.msra.mxu1 %v6166_v8 }
 0x478   : > { %5828 = vmatprep.subr.bf16.mxu1 %v6167_v28 }
 0x47b   : > { %5829 = vmatpush3.bf16.msra.mxu1 %v6168_v20 }
 0x47c   : > { %5830 = vmatprep.subr.bf16.mxu1 %v6169_v49 }
 0x47f   : > { %5831 = vmatpush3.bf16.msra.mxu1 %v6170_v15 }
 0x482   : > { %5062 = vmatmul.mubr.bf16.vlgmr.msra.gmra.mxu1 %v9149_v37  ;;  %v6174_v37 = vld [vmem:[%s9554_s7 + $0x20] sm:$0xff]  }
 0x483   : > { %5974 = vmatpush3.bf16.msra.mxu0 %v6174_v37 }
 0x484   : > { %5975 = vmatprep.subr.bf16.mxu0 %v6244_v56 }
 0x487   : > { %5976 = vmatpush3.bf16.msra.mxu0 %v6175_v34 }
 0x488   : > { %5977 = vmatprep.subr.bf16.mxu0 %v6244_v56 }
 0x48b   : > { %5978 = vmatpush3.bf16.msra.mxu0 %v6176_v7 }
 0x48c   : > { %5979 = vmatprep.subr.bf16.mxu0 %v6244_v56 }
 0x48f   : > { %5980 = vmatpush3.bf16.msra.mxu0 %v6177_v35 }
 0x490   : > { %5981 = vmatprep.subr.bf16.mxu0 %v6244_v56 }
 0x493   : > { %5982 = vmatpush3.bf16.msra.mxu0 %v6178_v0 }
 0x502   : > { %v5766_v54 = vpop.f32.mrf.mxu0 }
 0x504   : > { %v5767_v29 = vpop.f32.mrf.mxu0 }
 0x505   : > { %v5768_v17 = vadd.f32 %v5767_v29, %v5766_v54 }
 0x506   : > { %v5769_v26 = vpop.f32.mrf.mxu0 }
 0x507   : > { %v4941_v33 = vadd.f32 %v5768_v17, %v5613_v9 }
 0x508   : > { %v5770_v2 = vpop.f32.mrf.mxu0 }
 0x509   : > { %v5771_v27 = vadd.f32 %v5770_v2, %v5769_v26 }
 0x50b   : > { %v4944_v18 = vadd.f32 %v5771_v27, %v5613_v9 }
 0x522   : > { %v5788_v60 = vpop.f32.mrf.mxu1  ;;  %v5810_v24 = vpop.f32.mrf.mxu0 }
 0x524   : > { %v5789_v41 = vpop.f32.mrf.mxu1  ;;  %v5811_v4 = vpop.f32.mrf.mxu0 }
 0x525   : > { %v5790_v5 = vadd.f32 %v5789_v41, %v5788_v60  ;;  %v5812_v47 = vadd.f32 %v5811_v4, %v5810_v24 }
 0x526   : > { %v5791_v21 = vpop.f32.mrf.mxu1  ;;  %v5813_v1 = vpop.f32.mrf.mxu0 }
 0x527   : > { %v4982_v13 = vadd.f32 %v5790_v5, %v4941_v33 }
 0x528   : > { %v5792_v51 = vpop.f32.mrf.mxu1  ;;  %v5814_v44 = vpop.f32.mrf.mxu0 }
 0x529   : > { %v5793_v16 = vadd.f32 %v5792_v51, %v5791_v21  ;;  %v5815_v45 = vadd.f32 %v5814_v44, %v5813_v1  ;;  %v5023_v59 = vadd.f32 %v5812_v47, %v4982_v13 }
 0x52b   : > { %v4985_v30 = vadd.f32 %v5793_v16, %v4944_v18 }
 0x52d   : > { %v5026_v19 = vadd.f32 %v5815_v45, %v4985_v30 }
 0x542   : > { %v5832_v50 = vpop.f32.mrf.mxu1 }
 0x544   : > { %v5833_v43 = vpop.f32.mrf.mxu1 }
 0x545   : > { %v5834_v53 = vadd.f32 %v5833_v43, %v5832_v50 }
 0x546   : > { %v5835_v23 = vpop.f32.mrf.mxu1 }
 0x547   : > { %v5064_v36 = vadd.f32 %v5834_v53, %v5023_v59 }
 0x548   : > { %v5836_v14 = vpop.f32.mrf.mxu1 }
 0x549   : > { %v5837_v61 = vadd.f32 %v5836_v14, %v5835_v23  ;;  %v5070_v6 = vmax.f32 %v5064_v36, 0.0 }
 0x54b   : > { %v5067_v63 = vadd.f32 %v5837_v61, %v5026_v19 }
 0x54d   : > { %v5071_v38 = vmax.f32 %v5067_v63, 0.0 }
 0x54f   : > { %v5072_v58 = vpack.c.bf16 %v5071_v38, %v5070_v6 }
 0x551   : > { %5984 = vmatmul.mubr.bf16.vlgmr.msra.gmra.mxu0 %v5072_v58 }
 0x611   : > { %v5178_v10 = vpop.f32.mrf.mxu0 }
 0x612   : > { %v5179_v3 = vadd.f32 %v5678_v42, %v5178_v10 }
 0x613   : > { %v5985_v12 = vpop.f32.mrf.mxu0 }
 0x614   : > { %5185 = vst [vmem:[%s565_s22] sm:$0xff] %v5179_v3 }
 0x615   : > { %v5181_v55 = vpop.f32.mrf.mxu0 }
 0x616   : > { %v5182_v22 = vadd.f32 %v5678_v42, %v5181_v55 }
 0x617   : > { %v5986_v31 = vpop.f32.mrf.mxu0 }
 0x618   : > { %5186 = vst [vmem:[%s565_s22 + $0x8] sm:$0xff] %v5182_v22 }
 0x619 PF: > { %p16_p9 = scmp.ge.s32.totalorder %s6313_s13, 4   ;;  %s10146_s30 = smov %s6236_s10 }
 0x61a   : > { %s10147_s10 = smov %s6322_s16  ;;  %s10148_s11 = smov %s6313_s13 }
 0x61b   :  { %18 = sbr.rel (!%p16_p9) target bundleno = 2 (0x2), region = 136 }

</bundles_post_ra>
